<compile_context>
chip_gen: v7x
topology: tpu7x:2x2x1
jax: 0.10.0
libtpu: 0.0.40
codegen_flags: <defaults>
</compile_context>

<pallas_src>
import jax
import jax.numpy as jnp
from jax.experimental import pallas as pl
from jax.experimental.pallas import tpu as pltpu

_LANE = 128
_VMEM_LIMIT = 48 * 1024 * 1024


def _round_up(x, m):
    return ((x + m - 1) // m) * m


def _pick_tm(m):
    # Row tile for the fused-stem matmul; prefer >=2 tiles (v7x 2-TC balance).
    for t in (512, 256, 128, 64, 32, 16, 8):
        if m % t == 0 and m // t >= 2:
            return t
    return m if m <= 512 else 512


# ----------------------------------------------------------------------------
# Pallas kernels
# ----------------------------------------------------------------------------
def _fused_stem_kernel(x_ref, w_ref, shift_ref, h1_ref, h2_ref, o0_ref):
    """Fused 1x1x1 stems (b1a | b2a | b0): single-K fast path.

    The f32 activation tile is cast to bf16 in-kernel (no HBM bf16 copy), one
    MXU matmul against the VMEM-resident fused weight, folded-BN shift + ReLU,
    then three 128-aligned column splits stored as separate outputs (h1/h2 as
    bf16 for the downstream 3x3x3 convs, out0 as f32)."""
    xb = x_ref[...].astype(jnp.bfloat16)
    y = jnp.dot(xb, w_ref[...], preferred_element_type=jnp.float32)
    y = jnp.maximum(y + shift_ref[...], 0.0)
    c1p = h1_ref.shape[-1]
    c2p = h2_ref.shape[-1]
    h1_ref[...] = y[:, :c1p].astype(h1_ref.dtype)
    h2_ref[...] = y[:, c1p:c1p + c2p].astype(h2_ref.dtype)
    o0_ref[...] = y[:, c1p + c2p:]


def _fused_stem(x_flat, w_fused, shift_fused, c1p, c2p, c0):
    M, K = x_flat.shape
    ctot = w_fused.shape[1]
    tm = _pick_tm(M)
    m_p = _round_up(M, tm)
    if m_p != M:
        x_flat = jnp.pad(x_flat, ((0, m_p - M), (0, 0)))
    # TODO(synk): K (=Cin) is kept as a single block; I3D Mixed blocks have
    # Cin <= 832 so the weight/activation blocks comfortably fit VMEM.
    h1, h2, o0 = pl.pallas_call(
        _fused_stem_kernel,
        out_shape=(
            jax.ShapeDtypeStruct((m_p, c1p), jnp.bfloat16),
            jax.ShapeDtypeStruct((m_p, c2p), jnp.bfloat16),
            jax.ShapeDtypeStruct((m_p, c0), jnp.float32),
        ),
        grid_spec=pltpu.PrefetchScalarGridSpec(
            num_scalar_prefetch=0,
            grid=(m_p // tm,),
            in_specs=[
                pl.BlockSpec((tm, K), lambda i: (i, 0)),
                pl.BlockSpec((K, ctot), lambda i: (0, 0)),
                pl.BlockSpec((1, ctot), lambda i: (0, 0)),
            ],
            out_specs=[
                pl.BlockSpec((tm, c1p), lambda i: (i, 0)),
                pl.BlockSpec((tm, c2p), lambda i: (i, 0)),
                pl.BlockSpec((tm, c0), lambda i: (i, 0)),
            ],
        ),
        compiler_params=pltpu.CompilerParams(
            dimension_semantics=("parallel",),
            vmem_limit_bytes=_VMEM_LIMIT),
    )(x_flat, w_fused, shift_fused)
    return h1[:M], h2[:M], o0[:M]


def _conv3x3_kernel(x0_ref, x1_ref, x2_ref, w_ref, shift_ref, o_ref):
    """Direct SAME 3x3x3 conv on one (n, d) output slab.

    The 27 taps are generated in-VMEM from the three padded depth slabs (the
    1-voxel spatial halo comes with the block), im2col'ed per depth offset and
    fed to three deep-K MXU matmuls accumulating in f32.  BN scale is folded
    into the weights; shift + ReLU applied in the epilogue."""
    H, W, cout = o_ref.shape
    acc = None
    for kd, xr in enumerate((x0_ref, x1_ref, x2_ref)):
        slab = xr[...]                                   # (H+2, W+2, Cin_p) bf16
        cin = slab.shape[-1]
        taps = [slab[kh:kh + H, kw:kw + W, :].reshape(H * W, cin)
                for kh in range(3) for kw in range(3)]
        cols = jnp.concatenate(taps, axis=-1)            # (H*W, 9*Cin_p)
        part = jnp.dot(cols, w_ref[kd], preferred_element_type=jnp.float32)
        acc = part if acc is None else acc + part
    y = jnp.maximum(acc + shift_ref[...], 0.0)
    o_ref[...] = y.reshape(H, W, cout)


def _conv3x3(h_pad, w_cols, shift):
    """h_pad: (N, D+2, H+2, W+2, Cin_p) bf16 zero-padded; w_cols: (3, 9*Cin_p,
    Cout) bf16 with BN scale folded; shift: (Cout,) f32."""
    N, Dp2, Hp2, Wp2, cin_p = h_pad.shape
    D, H, W = Dp2 - 2, Hp2 - 2, Wp2 - 2
    cout = w_cols.shape[-1]
    shift2 = shift.reshape(1, cout).astype(jnp.float32)

    def slab_spec(kd):
        return pl.BlockSpec((None, None, Hp2, Wp2, cin_p),
                            lambda n, d, kd=kd: (n, d + kd, 0, 0, 0))

    return pl.pallas_call(
        _conv3x3_kernel,
        out_shape=jax.ShapeDtypeStruct((N, D, H, W, cout), jnp.float32),
        grid_spec=pltpu.PrefetchScalarGridSpec(
            num_scalar_prefetch=0,
            grid=(N, D),
            in_specs=[
                slab_spec(0), slab_spec(1), slab_spec(2),
                pl.BlockSpec((3, w_cols.shape[1], cout), lambda n, d: (0, 0, 0)),
                pl.BlockSpec((1, cout), lambda n, d: (0, 0)),
            ],
            out_specs=pl.BlockSpec((None, None, H, W, cout),
                                   lambda n, d: (n, d, 0, 0, 0)),
        ),
        compiler_params=pltpu.CompilerParams(
            dimension_semantics=("parallel", "parallel"),
            vmem_limit_bytes=_VMEM_LIMIT),
    )(h_pad, h_pad, h_pad, w_cols, shift2)


def _pool_conv_kernel(x0_ref, x1_ref, x2_ref, w_ref, shift_ref, o_ref):
    """Branch 3: fused 3x3x3 SAME max-pool (ConstantPad3d(0) semantics carried
    by the zero-padded slabs) + 1x1x1 conv + folded-BN shift + ReLU."""
    H, W, cout = o_ref.shape
    m = None
    for xr in (x0_ref, x1_ref, x2_ref):
        slab = xr[...]                                   # (H+2, W+2, Cin) bf16
        for kh in range(3):
            for kw in range(3):
                t = slab[kh:kh + H, kw:kw + W, :]
                m = t if m is None else jnp.maximum(m, t)
    cols = m.reshape(H * W, m.shape[-1])
    y = jnp.dot(cols, w_ref[...], preferred_element_type=jnp.float32)
    y = jnp.maximum(y + shift_ref[...], 0.0)
    o_ref[...] = y.reshape(H, W, cout)


def _pool_conv(x_pad, w3, s3):
    N, Dp2, Hp2, Wp2, cin = x_pad.shape
    D, H, W = Dp2 - 2, Hp2 - 2, Wp2 - 2
    cout = w3.shape[1]
    s3_2 = s3.reshape(1, cout).astype(jnp.float32)

    def slab_spec(kd):
        return pl.BlockSpec((None, None, Hp2, Wp2, cin),
                            lambda n, d, kd=kd: (n, d + kd, 0, 0, 0))

    return pl.pallas_call(
        _pool_conv_kernel,
        out_shape=jax.ShapeDtypeStruct((N, D, H, W, cout), jnp.float32),
        grid_spec=pltpu.PrefetchScalarGridSpec(
            num_scalar_prefetch=0,
            grid=(N, D),
            in_specs=[
                slab_spec(0), slab_spec(1), slab_spec(2),
                pl.BlockSpec((cin, cout), lambda n, d: (0, 0)),
                pl.BlockSpec((1, cout), lambda n, d: (0, 0)),
            ],
            out_specs=pl.BlockSpec((None, None, H, W, cout),
                                   lambda n, d: (n, d, 0, 0, 0)),
        ),
        compiler_params=pltpu.CompilerParams(
            dimension_semantics=("parallel", "parallel"),
            vmem_limit_bytes=_VMEM_LIMIT),
    )(x_pad, x_pad, x_pad, w3, s3_2)


# ----------------------------------------------------------------------------
# Parameter prep (synthetic Unit3Dpy params, BN folded into weights)
# ----------------------------------------------------------------------------
def init_unit3d(key, cin, cout, ksize):
    """Deterministic synthetic Unit3Dpy params (conv no-bias + BatchNorm3d)."""
    kd, kh, kw = ksize
    k1, k2, k3, k4, k5 = jax.random.split(key, 5)
    w = 0.1 * jax.random.normal(k1, (cout, cin, kd, kh, kw), jnp.float32)
    gamma = 1.0 + 0.1 * jax.random.normal(k2, (cout,), jnp.float32)
    beta = 0.1 * jax.random.normal(k3, (cout,), jnp.float32)
    mean = 0.1 * jax.random.normal(k4, (cout,), jnp.float32)
    var = jnp.abs(jax.random.normal(k5, (cout,), jnp.float32)) + 0.5
    return {"w": w, "gamma": gamma, "beta": beta, "mean": mean, "var": var}


def _fold_bn(p, eps=1e-5):
    scale = p["gamma"] / jnp.sqrt(p["var"] + eps)
    shift = p["beta"] - p["mean"] * scale
    return scale, shift


def _prep_1x1(p):
    """-> (Cin, Cout) weight with BN scale folded in, plus (Cout,) shift."""
    scale, shift = _fold_bn(p)
    w = p["w"][:, :, 0, 0, 0].T * scale[None, :]
    return w, shift


def _prep_3x3(p, cin_p):
    """-> (3, 9*Cin_p, Cout) bf16 weight (Cin zero-padded to Cin_p, BN scale
    folded), plus (Cout,) f32 shift.  Row order matches the kernel's in-VMEM
    im2col: (kh, kw, cin)."""
    scale, shift = _fold_bn(p)
    w = p["w"]                                           # (Cout, Cin, 3, 3, 3)
    cout, cin = w.shape[0], w.shape[1]
    w_t = jnp.transpose(w, (2, 3, 4, 1, 0)) * scale[None, None, None, None, :]
    w_t = jnp.pad(w_t, ((0, 0), (0, 0), (0, 0), (0, cin_p - cin), (0, 0)))
    return w_t.reshape(3, 9 * cin_p, cout).astype(jnp.bfloat16), shift


def init_mixed(key, in_channels, out_channels):
    ks = jax.random.split(key, 6)
    return {
        "b0": init_unit3d(ks[0], in_channels, out_channels[0], (1, 1, 1)),
        "b1a": init_unit3d(ks[1], in_channels, out_channels[1], (1, 1, 1)),
        "b1b": init_unit3d(ks[2], out_channels[1], out_channels[2], (3, 3, 3)),
        "b2a": init_unit3d(ks[3], in_channels, out_channels[3], (1, 1, 1)),
        "b2b": init_unit3d(ks[4], out_channels[3], out_channels[4], (3, 3, 3)),
        "b3": init_unit3d(ks[5], in_channels, out_channels[5], (1, 1, 1)),
    }


# ----------------------------------------------------------------------------
# Forward
# ----------------------------------------------------------------------------
@jax.jit
def mixed_forward(params, x_ncdhw):
    N, C, D, H, W = x_ncdhw.shape
    x = jnp.transpose(x_ncdhw, (0, 2, 3, 4, 1))          # NDHWC
    M = N * D * H * W
    x_flat = x.reshape(M, C)

    # --- fused 1x1x1 stems: b1a | b2a | b0 share one read of x, one matmul ---
    w0, s0 = _prep_1x1(params["b0"])
    w1a, s1a = _prep_1x1(params["b1a"])
    w2a, s2a = _prep_1x1(params["b2a"])
    c0 = w0.shape[1]
    c1p = _round_up(w1a.shape[1], _LANE)
    c2p = _round_up(w2a.shape[1], _LANE)

    def pad_cols(w, s, cp):
        return (jnp.pad(w, ((0, 0), (0, cp - w.shape[1]))),
                jnp.pad(s, (0, cp - s.shape[0])))

    w1a_p, s1a_p = pad_cols(w1a, s1a, c1p)
    w2a_p, s2a_p = pad_cols(w2a, s2a, c2p)
    w_fused = jnp.concatenate([w1a_p, w2a_p, w0], axis=1).astype(jnp.bfloat16)
    s_fused = jnp.concatenate([s1a_p, s2a_p, s0]).reshape(1, -1).astype(jnp.float32)

    h1, h2, out0 = _fused_stem(x_flat, w_fused, s_fused, c1p, c2p, c0)

    # --- branches 1 / 2: direct 3x3x3 conv, taps generated in-kernel ---
    def branch_3x3(p, h, cin_p):
        w_cols, shift = _prep_3x3(p, cin_p)
        h_pad = jnp.pad(h.reshape(N, D, H, W, cin_p),
                        ((0, 0), (1, 1), (1, 1), (1, 1), (0, 0)))
        return _conv3x3(h_pad, w_cols, shift)

    out1 = branch_3x3(params["b1b"], h1, c1p)
    out2 = branch_3x3(params["b2b"], h2, c2p)

    # --- branch 3: fused 3x3x3 SAME max-pool + 1x1x1 conv + BN + ReLU ---
    w3, s3 = _prep_1x1(params["b3"])
    x_pad = jnp.pad(x.astype(jnp.bfloat16),
                    ((0, 0), (1, 1), (1, 1), (1, 1), (0, 0)))
    out3 = _pool_conv(x_pad, w3.astype(jnp.bfloat16), s3)

    out = jnp.concatenate(
        [out0.reshape(N, D, H, W, c0), out1, out2, out3], axis=-1)
    # TODO(synk): the channel concat + NCDHW transpose remain wrapper glue;
    # folding them into per-branch channel-offset stores needs 128-aligned
    # channel offsets that the module's out_channels don't guarantee.
    return jnp.transpose(out, (0, 4, 1, 2, 3))


if __name__ == "__main__":
    key = jax.random.PRNGKey(0)
    k_x, k_p = jax.random.split(key)

    N, Cin, D, H, W = 2, 8, 4, 8, 8
    out_channels = [4, 4, 8, 4, 8, 4]          # concat -> 4 + 8 + 8 + 4 = 24

    x = jax.random.normal(k_x, (N, Cin, D, H, W), jnp.float32)
    params = init_mixed(k_p, Cin, out_channels)

    y = jax.block_until_ready(mixed_forward(params, x))

    expected = (N,
                out_channels[0] + out_channels[2] + out_channels[4] + out_channels[5],
                D, H, W)
    assert y.shape == expected, (y.shape, expected)
    assert bool(jnp.all(jnp.isfinite(y)))
    print("KERNEL_OK")
</pallas_src>

<mosaic_0001>
module attributes {stable_mosaic.version = 11 : i64} {
  func.func @_fused_stem_kernel(%arg0: i32, %arg1: memref<256x8xf32, #tpu.memory_space<vmem>>, %arg2: memref<8x260xbf16, #tpu.memory_space<vmem>>, %arg3: memref<1x260xf32, #tpu.memory_space<vmem>>, %arg4: memref<256x128xbf16, #tpu.memory_space<vmem>>, %arg5: memref<256x128xbf16, #tpu.memory_space<vmem>>, %arg6: memref<256x4xf32, #tpu.memory_space<vmem>>) attributes {dimension_semantics = [#tpu.dimension_semantics<parallel>], iteration_bounds = array<i64: 2>, scalar_prefetch = 0 : i64, scratch_operands = 0 : i64, tpu.core_type = #tpu.core_type<tc>, window_params = [{transform_indices = @transform_0, window_bounds = array<i64: 256, 8>}, {pipeline_mode = #tpu.pipeline_mode<synchronous>, transform_indices = @transform_1, window_bounds = array<i64: 8, 260>}, {pipeline_mode = #tpu.pipeline_mode<synchronous>, transform_indices = @transform_2, window_bounds = array<i64: 1, 260>}, {transform_indices = @transform_3, window_bounds = array<i64: 256, 128>}, {transform_indices = @transform_4, window_bounds = array<i64: 256, 128>}, {transform_indices = @transform_5, window_bounds = array<i64: 256, 4>}]} {
    %c0 = arith.constant 0 : index
    %c0_0 = arith.constant 0 : index
    %0 = vector.load %arg1[%c0, %c0_0] : memref<256x8xf32, #tpu.memory_space<vmem>>, vector<256x8xf32>
    %1 = arith.truncf %0 : vector<256x8xf32> to vector<256x8xbf16>
    %c0_1 = arith.constant 0 : index
    %c0_2 = arith.constant 0 : index
    %2 = vector.load %arg2[%c0_1, %c0_2] : memref<8x260xbf16, #tpu.memory_space<vmem>>, vector<8x260xbf16>
    %cst = arith.constant dense<0.000000e+00> : vector<256x260xf32>
    %3 = tpu.matmul %1, %2, %cst {dimension_numbers = #tpu.dot_dimension_numbers<[1], [0], [0], [1], [0, 0, 1, 1], [], []>} : vector<256x8xbf16>, vector<8x260xbf16>, vector<256x260xf32> -> vector<256x260xf32>
    %c0_3 = arith.constant 0 : index
    %c0_4 = arith.constant 0 : index
    %4 = vector.load %arg3[%c0_3, %c0_4] : memref<1x260xf32, #tpu.memory_space<vmem>>, vector<1x260xf32>
    %5 = vector.broadcast %4 : vector<1x260xf32> to vector<256x260xf32>
    %6 = arith.addf %3, %5 : vector<256x260xf32>
    %cst_5 = arith.constant 0.000000e+00 : f32
    %7 = vector.broadcast %cst_5 : f32 to vector<256x260xf32>
    %8 = arith.maximumf %6, %7 : vector<256x260xf32>
    %9 = vector.extract_strided_slice %8 {offsets = [0, 0], sizes = [256, 128], strides = [1, 1]} : vector<256x260xf32> to vector<256x128xf32>
    %10 = arith.truncf %9 : vector<256x128xf32> to vector<256x128xbf16>
    %c0_6 = arith.constant 0 : index
    %c0_7 = arith.constant 0 : index
    %11 = vector.load %arg4[%c0_6, %c0_7] : memref<256x128xbf16, #tpu.memory_space<vmem>>, vector<256x128xbf16>
    tpu.vector_store %arg4[%c0_6, %c0_7], %10 {strides = array<i32>} : memref<256x128xbf16, #tpu.memory_space<vmem>>, vector<256x128xbf16>,
    %12 = vector.extract_strided_slice %8 {offsets = [0, 128], sizes = [256, 128], strides = [1, 1]} : vector<256x260xf32> to vector<256x128xf32>
    %13 = arith.truncf %12 : vector<256x128xf32> to vector<256x128xbf16>
    %c0_8 = arith.constant 0 : index
    %c0_9 = arith.constant 0 : index
    %14 = vector.load %arg5[%c0_8, %c0_9] : memref<256x128xbf16, #tpu.memory_space<vmem>>, vector<256x128xbf16>
    tpu.vector_store %arg5[%c0_8, %c0_9], %13 {strides = array<i32>} : memref<256x128xbf16, #tpu.memory_space<vmem>>, vector<256x128xbf16>,
    %15 = vector.extract_strided_slice %8 {offsets = [0, 256], sizes = [256, 4], strides = [1, 1]} : vector<256x260xf32> to vector<256x4xf32>
    %c0_10 = arith.constant 0 : index
    %c0_11 = arith.constant 0 : index
    %16 = vector.load %arg6[%c0_10, %c0_11] : memref<256x4xf32, #tpu.memory_space<vmem>>, vector<256x4xf32>
    tpu.vector_store %arg6[%c0_10, %c0_11], %15 {strides = array<i32>} : memref<256x4xf32, #tpu.memory_space<vmem>>, vector<256x4xf32>,
    return
  }
  func.func @transform_0(%arg0: i32) -> (i32, i32) {
    %c0_i32 = arith.constant 0 : i32
    %c0_i32_0 = arith.constant 0 : i32
    return %arg0, %c0_i32 : i32, i32
  }
  func.func @transform_1(%arg0: i32) -> (i32, i32) {
    %c0_i32 = arith.constant 0 : i32
    %c0_i32_0 = arith.constant 0 : i32
    %c0_i32_1 = arith.constant 0 : i32
    return %c0_i32, %c0_i32_0 : i32, i32
  }
  func.func @transform_2(%arg0: i32) -> (i32, i32) {
    %c0_i32 = arith.constant 0 : i32
    %c0_i32_0 = arith.constant 0 : i32
    %c0_i32_1 = arith.constant 0 : i32
    return %c0_i32, %c0_i32_0 : i32, i32
  }
  func.func @transform_3(%arg0: i32) -> (i32, i32) {
    %c0_i32 = arith.constant 0 : i32
    %c0_i32_0 = arith.constant 0 : i32
    return %arg0, %c0_i32 : i32, i32
  }
  func.func @transform_4(%arg0: i32) -> (i32, i32) {
    %c0_i32 = arith.constant 0 : i32
    %c0_i32_0 = arith.constant 0 : i32
    return %arg0, %c0_i32 : i32, i32
  }
  func.func @transform_5(%arg0: i32) -> (i32, i32) {
    %c0_i32 = arith.constant 0 : i32
    %c0_i32_0 = arith.constant 0 : i32
    return %arg0, %c0_i32 : i32, i32
  }
}

module attributes {stable_mosaic.version = 11 : i64} {
  func.func @_conv3x3_kernel(%arg0: i32, %arg1: i32, %arg2: memref<1x1x10x10x128xbf16, #tpu.memory_space<vmem>>, %arg3: memref<1x1x10x10x128xbf16, #tpu.memory_space<vmem>>, %arg4: memref<1x1x10x10x128xbf16, #tpu.memory_space<vmem>>, %arg5: memref<3x1152x8xbf16, #tpu.memory_space<vmem>>, %arg6: memref<1x8xf32, #tpu.memory_space<vmem>>, %arg7: memref<1x1x8x8x8xf32, #tpu.memory_space<vmem>>) attributes {dimension_semantics = [#tpu.dimension_semantics<parallel>, #tpu.dimension_semantics<parallel>], iteration_bounds = array<i64: 2, 4>, scalar_prefetch = 0 : i64, scratch_operands = 0 : i64, tpu.core_type = #tpu.core_type<tc>, window_params = [{transform_indices = @transform_0, window_bounds = array<i64: 1, 1, 10, 10, 128>}, {transform_indices = @transform_1, window_bounds = array<i64: 1, 1, 10, 10, 128>}, {transform_indices = @transform_2, window_bounds = array<i64: 1, 1, 10, 10, 128>}, {pipeline_mode = #tpu.pipeline_mode<synchronous>, transform_indices = @transform_3, window_bounds = array<i64: 3, 1152, 8>}, {pipeline_mode = #tpu.pipeline_mode<synchronous>, transform_indices = @transform_4, window_bounds = array<i64: 1, 8>}, {transform_indices = @transform_5, window_bounds = array<i64: 1, 1, 8, 8, 8>}]} {
    %c0 = arith.constant 0 : index
    %c0_0 = arith.constant 0 : index
    %c0_1 = arith.constant 0 : index
    %c0_2 = arith.constant 0 : index
    %c0_3 = arith.constant 0 : index
    %0 = vector.load %arg2[%c0, %c0_0, %c0_1, %c0_2, %c0_3] : memref<1x1x10x10x128xbf16, #tpu.memory_space<vmem>>, vector<1x1x10x10x128xbf16>
    %1 = vector.shape_cast %0 : vector<1x1x10x10x128xbf16> to vector<10x10x128xbf16>
    %2 = vector.extract_strided_slice %1 {offsets = [0, 0, 0], sizes = [8, 8, 128], strides = [1, 1, 1]} : vector<10x10x128xbf16> to vector<8x8x128xbf16>
    %3 = vector.shape_cast %2 : vector<8x8x128xbf16> to vector<64x128xbf16>
    %4 = vector.extract_strided_slice %1 {offsets = [0, 1, 0], sizes = [8, 8, 128], strides = [1, 1, 1]} : vector<10x10x128xbf16> to vector<8x8x128xbf16>
    %5 = vector.shape_cast %4 : vector<8x8x128xbf16> to vector<64x128xbf16>
    %6 = vector.extract_strided_slice %1 {offsets = [0, 2, 0], sizes = [8, 8, 128], strides = [1, 1, 1]} : vector<10x10x128xbf16> to vector<8x8x128xbf16>
    %7 = vector.shape_cast %6 : vector<8x8x128xbf16> to vector<64x128xbf16>
    %8 = vector.extract_strided_slice %1 {offsets = [1, 0, 0], sizes = [8, 8, 128], strides = [1, 1, 1]} : vector<10x10x128xbf16> to vector<8x8x128xbf16>
    %9 = vector.shape_cast %8 : vector<8x8x128xbf16> to vector<64x128xbf16>
    %10 = vector.extract_strided_slice %1 {offsets = [1, 1, 0], sizes = [8, 8, 128], strides = [1, 1, 1]} : vector<10x10x128xbf16> to vector<8x8x128xbf16>
    %11 = vector.shape_cast %10 : vector<8x8x128xbf16> to vector<64x128xbf16>
    %12 = vector.extract_strided_slice %1 {offsets = [1, 2, 0], sizes = [8, 8, 128], strides = [1, 1, 1]} : vector<10x10x128xbf16> to vector<8x8x128xbf16>
    %13 = vector.shape_cast %12 : vector<8x8x128xbf16> to vector<64x128xbf16>
    %14 = vector.extract_strided_slice %1 {offsets = [2, 0, 0], sizes = [8, 8, 128], strides = [1, 1, 1]} : vector<10x10x128xbf16> to vector<8x8x128xbf16>
    %15 = vector.shape_cast %14 : vector<8x8x128xbf16> to vector<64x128xbf16>
    %16 = vector.extract_strided_slice %1 {offsets = [2, 1, 0], sizes = [8, 8, 128], strides = [1, 1, 1]} : vector<10x10x128xbf16> to vector<8x8x128xbf16>
    %17 = vector.shape_cast %16 : vector<8x8x128xbf16> to vector<64x128xbf16>
    %18 = vector.extract_strided_slice %1 {offsets = [2, 2, 0], sizes = [8, 8, 128], strides = [1, 1, 1]} : vector<10x10x128xbf16> to vector<8x8x128xbf16>
    %19 = vector.shape_cast %18 : vector<8x8x128xbf16> to vector<64x128xbf16>
    %20 = tpu.concatenate %3, %5, %7, %9, %11, %13, %15, %17, %19 in 1 : vector<64x128xbf16>, vector<64x128xbf16>, vector<64x128xbf16>, vector<64x128xbf16>, vector<64x128xbf16>, vector<64x128xbf16>, vector<64x128xbf16>, vector<64x128xbf16>, vector<64x128xbf16> -> vector<64x1152xbf16>
    %c0_4 = arith.constant 0 : index
    %c0_5 = arith.constant 0 : index
    %c0_6 = arith.constant 0 : index
    %21 = vector.load %arg5[%c0_4, %c0_5, %c0_6] : memref<3x1152x8xbf16, #tpu.memory_space<vmem>>, vector<1x1152x8xbf16>
    %22 = vector.shape_cast %21 : vector<1x1152x8xbf16> to vector<1152x8xbf16>
    %cst = arith.constant dense<0.000000e+00> : vector<64x8xf32>
    %23 = tpu.matmul %20, %22, %cst {dimension_numbers = #tpu.dot_dimension_numbers<[1], [0], [0], [1], [0, 0, 1, 1], [], []>} : vector<64x1152xbf16>, vector<1152x8xbf16>, vector<64x8xf32> -> vector<64x8xf32>
    %c0_7 = arith.constant 0 : index
    %c0_8 = arith.constant 0 : index
    %c0_9 = arith.constant 0 : index
    %c0_10 = arith.constant 0 : index
    %c0_11 = arith.constant 0 : index
    %24 = vector.load %arg3[%c0_7, %c0_8, %c0_9, %c0_10, %c0_11] : memref<1x1x10x10x128xbf16, #tpu.memory_space<vmem>>, vector<1x1x10x10x128xbf16>
    %25 = vector.shape_cast %24 : vector<1x1x10x10x128xbf16> to vector<10x10x128xbf16>
    %26 = vector.extract_strided_slice %25 {offsets = [0, 0, 0], sizes = [8, 8, 128], strides = [1, 1, 1]} : vector<10x10x128xbf16> to vector<8x8x128xbf16>
    %27 = vector.shape_cast %26 : vector<8x8x128xbf16> to vector<64x128xbf16>
    %28 = vector.extract_strided_slice %25 {offsets = [0, 1, 0], sizes = [8, 8, 128], strides = [1, 1, 1]} : vector<10x10x128xbf16> to vector<8x8x128xbf16>
    %29 = vector.shape_cast %28 : vector<8x8x128xbf16> to vector<64x128xbf16>
    %30 = vector.extract_strided_slice %25 {offsets = [0, 2, 0], sizes = [8, 8, 128], strides = [1, 1, 1]} : vector<10x10x128xbf16> to vector<8x8x128xbf16>
    %31 = vector.shape_cast %30 : vector<8x8x128xbf16> to vector<64x128xbf16>
    %32 = vector.extract_strided_slice %25 {offsets = [1, 0, 0], sizes = [8, 8, 128], strides = [1, 1, 1]} : vector<10x10x128xbf16> to vector<8x8x128xbf16>
    %33 = vector.shape_cast %32 : vector<8x8x128xbf16> to vector<64x128xbf16>
    %34 = vector.extract_strided_slice %25 {offsets = [1, 1, 0], sizes = [8, 8, 128], strides = [1, 1, 1]} : vector<10x10x128xbf16> to vector<8x8x128xbf16>
    %35 = vector.shape_cast %34 : vector<8x8x128xbf16> to vector<64x128xbf16>
    %36 = vector.extract_strided_slice %25 {offsets = [1, 2, 0], sizes = [8, 8, 128], strides = [1, 1, 1]} : vector<10x10x128xbf16> to vector<8x8x128xbf16>
    %37 = vector.shape_cast %36 : vector<8x8x128xbf16> to vector<64x128xbf16>
    %38 = vector.extract_strided_slice %25 {offsets = [2, 0, 0], sizes = [8, 8, 128], strides = [1, 1, 1]} : vector<10x10x128xbf16> to vector<8x8x128xbf16>
    %39 = vector.shape_cast %38 : vector<8x8x128xbf16> to vector<64x128xbf16>
    %40 = vector.extract_strided_slice %25 {offsets = [2, 1, 0], sizes = [8, 8, 128], strides = [1, 1, 1]} : vector<10x10x128xbf16> to vector<8x8x128xbf16>
    %41 = vector.shape_cast %40 : vector<8x8x128xbf16> to vector<64x128xbf16>
    %42 = vector.extract_strided_slice %25 {offsets = [2, 2, 0], sizes = [8, 8, 128], strides = [1, 1, 1]} : vector<10x10x128xbf16> to vector<8x8x128xbf16>
    %43 = vector.shape_cast %42 : vector<8x8x128xbf16> to vector<64x128xbf16>
    %44 = tpu.concatenate %27, %29, %31, %33, %35, %37, %39, %41, %43 in 1 : vector<64x128xbf16>, vector<64x128xbf16>, vector<64x128xbf16>, vector<64x128xbf16>, vector<64x128xbf16>, vector<64x128xbf16>, vector<64x128xbf16>, vector<64x128xbf16>, vector<64x128xbf16> -> vector<64x1152xbf16>
    %c1 = arith.constant 1 : index
    %c0_12 = arith.constant 0 : index
    %c0_13 = arith.constant 0 : index
    %45 = vector.load %arg5[%c1, %c0_12, %c0_13] : memref<3x1152x8xbf16, #tpu.memory_space<vmem>>, vector<1x1152x8xbf16>
    %46 = vector.shape_cast %45 : vector<1x1152x8xbf16> to vector<1152x8xbf16>
    %cst_14 = arith.constant dense<0.000000e+00> : vector<64x8xf32>
    %47 = tpu.matmul %44, %46, %cst_14 {dimension_numbers = #tpu.dot_dimension_numbers<[1], [0], [0], [1], [0, 0, 1, 1], [], []>} : vector<64x1152xbf16>, vector<1152x8xbf16>, vector<64x8xf32> -> vector<64x8xf32>
    %48 = arith.addf %23, %47 : vector<64x8xf32>
    %c0_15 = arith.constant 0 : index
    %c0_16 = arith.constant 0 : index
    %c0_17 = arith.constant 0 : index
    %c0_18 = arith.constant 0 : index
    %c0_19 = arith.constant 0 : index
    %49 = vector.load %arg4[%c0_15, %c0_16, %c0_17, %c0_18, %c0_19] : memref<1x1x10x10x128xbf16, #tpu.memory_space<vmem>>, vector<1x1x10x10x128xbf16>
    %50 = vector.shape_cast %49 : vector<1x1x10x10x128xbf16> to vector<10x10x128xbf16>
    %51 = vector.extract_strided_slice %50 {offsets = [0, 0, 0], sizes = [8, 8, 128], strides = [1, 1, 1]} : vector<10x10x128xbf16> to vector<8x8x128xbf16>
    %52 = vector.shape_cast %51 : vector<8x8x128xbf16> to vector<64x128xbf16>
    %53 = vector.extract_strided_slice %50 {offsets = [0, 1, 0], sizes = [8, 8, 128], strides = [1, 1, 1]} : vector<10x10x128xbf16> to vector<8x8x128xbf16>
    %54 = vector.shape_cast %53 : vector<8x8x128xbf16> to vector<64x128xbf16>
    %55 = vector.extract_strided_slice %50 {offsets = [0, 2, 0], sizes = [8, 8, 128], strides = [1, 1, 1]} : vector<10x10x128xbf16> to vector<8x8x128xbf16>
    %56 = vector.shape_cast %55 : vector<8x8x128xbf16> to vector<64x128xbf16>
    %57 = vector.extract_strided_slice %50 {offsets = [1, 0, 0], sizes = [8, 8, 128], strides = [1, 1, 1]} : vector<10x10x128xbf16> to vector<8x8x128xbf16>
    %58 = vector.shape_cast %57 : vector<8x8x128xbf16> to vector<64x128xbf16>
    %59 = vector.extract_strided_slice %50 {offsets = [1, 1, 0], sizes = [8, 8, 128], strides = [1, 1, 1]} : vector<10x10x128xbf16> to vector<8x8x128xbf16>
    %60 = vector.shape_cast %59 : vector<8x8x128xbf16> to vector<64x128xbf16>
    %61 = vector.extract_strided_slice %50 {offsets = [1, 2, 0], sizes = [8, 8, 128], strides = [1, 1, 1]} : vector<10x10x128xbf16> to vector<8x8x128xbf16>
    %62 = vector.shape_cast %61 : vector<8x8x128xbf16> to vector<64x128xbf16>
    %63 = vector.extract_strided_slice %50 {offsets = [2, 0, 0], sizes = [8, 8, 128], strides = [1, 1, 1]} : vector<10x10x128xbf16> to vector<8x8x128xbf16>
    %64 = vector.shape_cast %63 : vector<8x8x128xbf16> to vector<64x128xbf16>
    %65 = vector.extract_strided_slice %50 {offsets = [2, 1, 0], sizes = [8, 8, 128], strides = [1, 1, 1]} : vector<10x10x128xbf16> to vector<8x8x128xbf16>
    %66 = vector.shape_cast %65 : vector<8x8x128xbf16> to vector<64x128xbf16>
    %67 = vector.extract_strided_slice %50 {offsets = [2, 2, 0], sizes = [8, 8, 128], strides = [1, 1, 1]} : vector<10x10x128xbf16> to vector<8x8x128xbf16>
    %68 = vector.shape_cast %67 : vector<8x8x128xbf16> to vector<64x128xbf16>
    %69 = tpu.concatenate %52, %54, %56, %58, %60, %62, %64, %66, %68 in 1 : vector<64x128xbf16>, vector<64x128xbf16>, vector<64x128xbf16>, vector<64x128xbf16>, vector<64x128xbf16>, vector<64x128xbf16>, vector<64x128xbf16>, vector<64x128xbf16>, vector<64x128xbf16> -> vector<64x1152xbf16>
    %c2 = arith.constant 2 : index
    %c0_20 = arith.constant 0 : index
    %c0_21 = arith.constant 0 : index
    %70 = vector.load %arg5[%c2, %c0_20, %c0_21] : memref<3x1152x8xbf16, #tpu.memory_space<vmem>>, vector<1x1152x8xbf16>
    %71 = vector.shape_cast %70 : vector<1x1152x8xbf16> to vector<1152x8xbf16>
    %cst_22 = arith.constant dense<0.000000e+00> : vector<64x8xf32>
    %72 = tpu.matmul %69, %71, %cst_22 {dimension_numbers = #tpu.dot_dimension_numbers<[1], [0], [0], [1], [0, 0, 1, 1], [], []>} : vector<64x1152xbf16>, vector<1152x8xbf16>, vector<64x8xf32> -> vector<64x8xf32>
    %73 = arith.addf %48, %72 : vector<64x8xf32>
    %c0_23 = arith.constant 0 : index
    %c0_24 = arith.constant 0 : index
    %74 = vector.load %arg6[%c0_23, %c0_24] : memref<1x8xf32, #tpu.memory_space<vmem>>, vector<1x8xf32>
    %75 = vector.broadcast %74 : vector<1x8xf32> to vector<64x8xf32>
    %76 = arith.addf %73, %75 : vector<64x8xf32>
    %cst_25 = arith.constant 0.000000e+00 : f32
    %77 = vector.broadcast %cst_25 : f32 to vector<64x8xf32>
    %78 = arith.maximumf %76, %77 : vector<64x8xf32>
    %79 = vector.shape_cast %78 : vector<64x8xf32> to vector<8x8x8xf32>
    %c0_26 = arith.constant 0 : index
    %c0_27 = arith.constant 0 : index
    %c0_28 = arith.constant 0 : index
    %c0_29 = arith.constant 0 : index
    %c0_30 = arith.constant 0 : index
    %80 = vector.load %arg7[%c0_26, %c0_27, %c0_28, %c0_29, %c0_30] : memref<1x1x8x8x8xf32, #tpu.memory_space<vmem>>, vector<1x1x8x8x8xf32>
    %81 = vector.shape_cast %80 : vector<1x1x8x8x8xf32> to vector<8x8x8xf32>
    %82 = vector.shape_cast %79 : vector<8x8x8xf32> to vector<1x1x8x8x8xf32>
    tpu.vector_store %arg7[%c0_26, %c0_27, %c0_28, %c0_29, %c0_30], %82 {strides = array<i32>} : memref<1x1x8x8x8xf32, #tpu.memory_space<vmem>>, vector<1x1x8x8x8xf32>,
    return
  }
  func.func @transform_0(%arg0: i32, %arg1: i32) -> (i32, i32, i32, i32, i32) {
    %c0_i32 = arith.constant 0 : i32
    %0 = arith.addi %arg1, %c0_i32 : i32
    %c0_i32_0 = arith.constant 0 : i32
    %c0_i32_1 = arith.constant 0 : i32
    %c0_i32_2 = arith.constant 0 : i32
    %c0_i32_3 = arith.constant 0 : i32
    return %arg0, %0, %c0_i32_0, %c0_i32_1, %c0_i32_2 : i32, i32, i32, i32, i32
  }
  func.func @transform_1(%arg0: i32, %arg1: i32) -> (i32, i32, i32, i32, i32) {
    %c1_i32 = arith.constant 1 : i32
    %0 = arith.addi %arg1, %c1_i32 : i32
    %c0_i32 = arith.constant 0 : i32
    %c0_i32_0 = arith.constant 0 : i32
    %c0_i32_1 = arith.constant 0 : i32
    %c0_i32_2 = arith.constant 0 : i32
    return %arg0, %0, %c0_i32, %c0_i32_0, %c0_i32_1 : i32, i32, i32, i32, i32
  }
  func.func @transform_2(%arg0: i32, %arg1: i32) -> (i32, i32, i32, i32, i32) {
    %c2_i32 = arith.constant 2 : i32
    %0 = arith.addi %arg1, %c2_i32 : i32
    %c0_i32 = arith.constant 0 : i32
    %c0_i32_0 = arith.constant 0 : i32
    %c0_i32_1 = arith.constant 0 : i32
    %c0_i32_2 = arith.constant 0 : i32
    return %arg0, %0, %c0_i32, %c0_i32_0, %c0_i32_1 : i32, i32, i32, i32, i32
  }
  func.func @transform_3(%arg0: i32, %arg1: i32) -> (i32, i32, i32) {
    %c0_i32 = arith.constant 0 : i32
    %c0_i32_0 = arith.constant 0 : i32
    %c0_i32_1 = arith.constant 0 : i32
    %c0_i32_2 = arith.constant 0 : i32
    return %c0_i32, %c0_i32_0, %c0_i32_1 : i32, i32, i32
  }
  func.func @transform_4(%arg0: i32, %arg1: i32) -> (i32, i32) {
    %c0_i32 = arith.constant 0 : i32
    %c0_i32_0 = arith.constant 0 : i32
    %c0_i32_1 = arith.constant 0 : i32
    return %c0_i32, %c0_i32_0 : i32, i32
  }
  func.func @transform_5(%arg0: i32, %arg1: i32) -> (i32, i32, i32, i32, i32) {
    %c0_i32 = arith.constant 0 : i32
    %c0_i32_0 = arith.constant 0 : i32
    %c0_i32_1 = arith.constant 0 : i32
    %c0_i32_2 = arith.constant 0 : i32
    return %arg0, %arg1, %c0_i32, %c0_i32_0, %c0_i32_1 : i32, i32, i32, i32, i32
  }
}

module attributes {stable_mosaic.version = 11 : i64} {
  func.func @_pool_conv_kernel(%arg0: i32, %arg1: i32, %arg2: memref<1x1x10x10x8xbf16, #tpu.memory_space<vmem>>, %arg3: memref<1x1x10x10x8xbf16, #tpu.memory_space<vmem>>, %arg4: memref<1x1x10x10x8xbf16, #tpu.memory_space<vmem>>, %arg5: memref<8x4xbf16, #tpu.memory_space<vmem>>, %arg6: memref<1x4xf32, #tpu.memory_space<vmem>>, %arg7: memref<1x1x8x8x4xf32, #tpu.memory_space<vmem>>) attributes {dimension_semantics = [#tpu.dimension_semantics<parallel>, #tpu.dimension_semantics<parallel>], iteration_bounds = array<i64: 2, 4>, scalar_prefetch = 0 : i64, scratch_operands = 0 : i64, tpu.core_type = #tpu.core_type<tc>, window_params = [{transform_indices = @transform_0, window_bounds = array<i64: 1, 1, 10, 10, 8>}, {transform_indices = @transform_1, window_bounds = array<i64: 1, 1, 10, 10, 8>}, {transform_indices = @transform_2, window_bounds = array<i64: 1, 1, 10, 10, 8>}, {pipeline_mode = #tpu.pipeline_mode<synchronous>, transform_indices = @transform_3, window_bounds = array<i64: 8, 4>}, {pipeline_mode = #tpu.pipeline_mode<synchronous>, transform_indices = @transform_4, window_bounds = array<i64: 1, 4>}, {transform_indices = @transform_5, window_bounds = array<i64: 1, 1, 8, 8, 4>}]} {
    %c0 = arith.constant 0 : index
    %c0_0 = arith.constant 0 : index
    %c0_1 = arith.constant 0 : index
    %c0_2 = arith.constant 0 : index
    %c0_3 = arith.constant 0 : index
    %0 = vector.load %arg2[%c0, %c0_0, %c0_1, %c0_2, %c0_3] : memref<1x1x10x10x8xbf16, #tpu.memory_space<vmem>>, vector<1x1x10x10x8xbf16>
    %1 = vector.shape_cast %0 : vector<1x1x10x10x8xbf16> to vector<10x10x8xbf16>
    %2 = vector.extract_strided_slice %1 {offsets = [0, 0, 0], sizes = [8, 8, 8], strides = [1, 1, 1]} : vector<10x10x8xbf16> to vector<8x8x8xbf16>
    %3 = vector.extract_strided_slice %1 {offsets = [0, 1, 0], sizes = [8, 8, 8], strides = [1, 1, 1]} : vector<10x10x8xbf16> to vector<8x8x8xbf16>
    %4 = arith.maximumf %2, %3 : vector<8x8x8xbf16>
    %5 = vector.extract_strided_slice %1 {offsets = [0, 2, 0], sizes = [8, 8, 8], strides = [1, 1, 1]} : vector<10x10x8xbf16> to vector<8x8x8xbf16>
    %6 = arith.maximumf %4, %5 : vector<8x8x8xbf16>
    %7 = vector.extract_strided_slice %1 {offsets = [1, 0, 0], sizes = [8, 8, 8], strides = [1, 1, 1]} : vector<10x10x8xbf16> to vector<8x8x8xbf16>
    %8 = arith.maximumf %6, %7 : vector<8x8x8xbf16>
    %9 = vector.extract_strided_slice %1 {offsets = [1, 1, 0], sizes = [8, 8, 8], strides = [1, 1, 1]} : vector<10x10x8xbf16> to vector<8x8x8xbf16>
    %10 = arith.maximumf %8, %9 : vector<8x8x8xbf16>
    %11 = vector.extract_strided_slice %1 {offsets = [1, 2, 0], sizes = [8, 8, 8], strides = [1, 1, 1]} : vector<10x10x8xbf16> to vector<8x8x8xbf16>
    %12 = arith.maximumf %10, %11 : vector<8x8x8xbf16>
    %13 = vector.extract_strided_slice %1 {offsets = [2, 0, 0], sizes = [8, 8, 8], strides = [1, 1, 1]} : vector<10x10x8xbf16> to vector<8x8x8xbf16>
    %14 = arith.maximumf %12, %13 : vector<8x8x8xbf16>
    %15 = vector.extract_strided_slice %1 {offsets = [2, 1, 0], sizes = [8, 8, 8], strides = [1, 1, 1]} : vector<10x10x8xbf16> to vector<8x8x8xbf16>
    %16 = arith.maximumf %14, %15 : vector<8x8x8xbf16>
    %17 = vector.extract_strided_slice %1 {offsets = [2, 2, 0], sizes = [8, 8, 8], strides = [1, 1, 1]} : vector<10x10x8xbf16> to vector<8x8x8xbf16>
    %18 = arith.maximumf %16, %17 : vector<8x8x8xbf16>
    %c0_4 = arith.constant 0 : index
    %c0_5 = arith.constant 0 : index
    %c0_6 = arith.constant 0 : index
    %c0_7 = arith.constant 0 : index
    %c0_8 = arith.constant 0 : index
    %19 = vector.load %arg3[%c0_4, %c0_5, %c0_6, %c0_7, %c0_8] : memref<1x1x10x10x8xbf16, #tpu.memory_space<vmem>>, vector<1x1x10x10x8xbf16>
    %20 = vector.shape_cast %19 : vector<1x1x10x10x8xbf16> to vector<10x10x8xbf16>
    %21 = vector.extract_strided_slice %20 {offsets = [0, 0, 0], sizes = [8, 8, 8], strides = [1, 1, 1]} : vector<10x10x8xbf16> to vector<8x8x8xbf16>
    %22 = arith.maximumf %18, %21 : vector<8x8x8xbf16>
    %23 = vector.extract_strided_slice %20 {offsets = [0, 1, 0], sizes = [8, 8, 8], strides = [1, 1, 1]} : vector<10x10x8xbf16> to vector<8x8x8xbf16>
    %24 = arith.maximumf %22, %23 : vector<8x8x8xbf16>
    %25 = vector.extract_strided_slice %20 {offsets = [0, 2, 0], sizes = [8, 8, 8], strides = [1, 1, 1]} : vector<10x10x8xbf16> to vector<8x8x8xbf16>
    %26 = arith.maximumf %24, %25 : vector<8x8x8xbf16>
    %27 = vector.extract_strided_slice %20 {offsets = [1, 0, 0], sizes = [8, 8, 8], strides = [1, 1, 1]} : vector<10x10x8xbf16> to vector<8x8x8xbf16>
    %28 = arith.maximumf %26, %27 : vector<8x8x8xbf16>
    %29 = vector.extract_strided_slice %20 {offsets = [1, 1, 0], sizes = [8, 8, 8], strides = [1, 1, 1]} : vector<10x10x8xbf16> to vector<8x8x8xbf16>
    %30 = arith.maximumf %28, %29 : vector<8x8x8xbf16>
    %31 = vector.extract_strided_slice %20 {offsets = [1, 2, 0], sizes = [8, 8, 8], strides = [1, 1, 1]} : vector<10x10x8xbf16> to vector<8x8x8xbf16>
    %32 = arith.maximumf %30, %31 : vector<8x8x8xbf16>
    %33 = vector.extract_strided_slice %20 {offsets = [2, 0, 0], sizes = [8, 8, 8], strides = [1, 1, 1]} : vector<10x10x8xbf16> to vector<8x8x8xbf16>
    %34 = arith.maximumf %32, %33 : vector<8x8x8xbf16>
    %35 = vector.extract_strided_slice %20 {offsets = [2, 1, 0], sizes = [8, 8, 8], strides = [1, 1, 1]} : vector<10x10x8xbf16> to vector<8x8x8xbf16>
    %36 = arith.maximumf %34, %35 : vector<8x8x8xbf16>
    %37 = vector.extract_strided_slice %20 {offsets = [2, 2, 0], sizes = [8, 8, 8], strides = [1, 1, 1]} : vector<10x10x8xbf16> to vector<8x8x8xbf16>
    %38 = arith.maximumf %36, %37 : vector<8x8x8xbf16>
    %c0_9 = arith.constant 0 : index
    %c0_10 = arith.constant 0 : index
    %c0_11 = arith.constant 0 : index
    %c0_12 = arith.constant 0 : index
    %c0_13 = arith.constant 0 : index
    %39 = vector.load %arg4[%c0_9, %c0_10, %c0_11, %c0_12, %c0_13] : memref<1x1x10x10x8xbf16, #tpu.memory_space<vmem>>, vector<1x1x10x10x8xbf16>
    %40 = vector.shape_cast %39 : vector<1x1x10x10x8xbf16> to vector<10x10x8xbf16>
    %41 = vector.extract_strided_slice %40 {offsets = [0, 0, 0], sizes = [8, 8, 8], strides = [1, 1, 1]} : vector<10x10x8xbf16> to vector<8x8x8xbf16>
    %42 = arith.maximumf %38, %41 : vector<8x8x8xbf16>
    %43 = vector.extract_strided_slice %40 {offsets = [0, 1, 0], sizes = [8, 8, 8], strides = [1, 1, 1]} : vector<10x10x8xbf16> to vector<8x8x8xbf16>
    %44 = arith.maximumf %42, %43 : vector<8x8x8xbf16>
    %45 = vector.extract_strided_slice %40 {offsets = [0, 2, 0], sizes = [8, 8, 8], strides = [1, 1, 1]} : vector<10x10x8xbf16> to vector<8x8x8xbf16>
    %46 = arith.maximumf %44, %45 : vector<8x8x8xbf16>
    %47 = vector.extract_strided_slice %40 {offsets = [1, 0, 0], sizes = [8, 8, 8], strides = [1, 1, 1]} : vector<10x10x8xbf16> to vector<8x8x8xbf16>
    %48 = arith.maximumf %46, %47 : vector<8x8x8xbf16>
    %49 = vector.extract_strided_slice %40 {offsets = [1, 1, 0], sizes = [8, 8, 8], strides = [1, 1, 1]} : vector<10x10x8xbf16> to vector<8x8x8xbf16>
    %50 = arith.maximumf %48, %49 : vector<8x8x8xbf16>
    %51 = vector.extract_strided_slice %40 {offsets = [1, 2, 0], sizes = [8, 8, 8], strides = [1, 1, 1]} : vector<10x10x8xbf16> to vector<8x8x8xbf16>
    %52 = arith.maximumf %50, %51 : vector<8x8x8xbf16>
    %53 = vector.extract_strided_slice %40 {offsets = [2, 0, 0], sizes = [8, 8, 8], strides = [1, 1, 1]} : vector<10x10x8xbf16> to vector<8x8x8xbf16>
    %54 = arith.maximumf %52, %53 : vector<8x8x8xbf16>
    %55 = vector.extract_strided_slice %40 {offsets = [2, 1, 0], sizes = [8, 8, 8], strides = [1, 1, 1]} : vector<10x10x8xbf16> to vector<8x8x8xbf16>
    %56 = arith.maximumf %54, %55 : vector<8x8x8xbf16>
    %57 = vector.extract_strided_slice %40 {offsets = [2, 2, 0], sizes = [8, 8, 8], strides = [1, 1, 1]} : vector<10x10x8xbf16> to vector<8x8x8xbf16>
    %58 = arith.maximumf %56, %57 : vector<8x8x8xbf16>
    %59 = vector.shape_cast %58 : vector<8x8x8xbf16> to vector<64x8xbf16>
    %c0_14 = arith.constant 0 : index
    %c0_15 = arith.constant 0 : index
    %60 = vector.load %arg5[%c0_14, %c0_15] : memref<8x4xbf16, #tpu.memory_space<vmem>>, vector<8x4xbf16>
    %cst = arith.constant dense<0.000000e+00> : vector<64x4xf32>
    %61 = tpu.matmul %59, %60, %cst {dimension_numbers = #tpu.dot_dimension_numbers<[1], [0], [0], [1], [0, 0, 1, 1], [], []>} : vector<64x8xbf16>, vector<8x4xbf16>, vector<64x4xf32> -> vector<64x4xf32>
    %c0_16 = arith.constant 0 : index
    %c0_17 = arith.constant 0 : index
    %62 = vector.load %arg6[%c0_16, %c0_17] : memref<1x4xf32, #tpu.memory_space<vmem>>, vector<1x4xf32>
    %63 = vector.broadcast %62 : vector<1x4xf32> to vector<64x4xf32>
    %64 = arith.addf %61, %63 : vector<64x4xf32>
    %cst_18 = arith.constant 0.000000e+00 : f32
    %65 = vector.broadcast %cst_18 : f32 to vector<64x4xf32>
    %66 = arith.maximumf %64, %65 : vector<64x4xf32>
    %67 = vector.shape_cast %66 : vector<64x4xf32> to vector<8x8x4xf32>
    %c0_19 = arith.constant 0 : index
    %c0_20 = arith.constant 0 : index
    %c0_21 = arith.constant 0 : index
    %c0_22 = arith.constant 0 : index
    %c0_23 = arith.constant 0 : index
    %68 = vector.load %arg7[%c0_19, %c0_20, %c0_21, %c0_22, %c0_23] : memref<1x1x8x8x4xf32, #tpu.memory_space<vmem>>, vector<1x1x8x8x4xf32>
    %69 = vector.shape_cast %68 : vector<1x1x8x8x4xf32> to vector<8x8x4xf32>
    %70 = vector.shape_cast %67 : vector<8x8x4xf32> to vector<1x1x8x8x4xf32>
    tpu.vector_store %arg7[%c0_19, %c0_20, %c0_21, %c0_22, %c0_23], %70 {strides = array<i32>} : memref<1x1x8x8x4xf32, #tpu.memory_space<vmem>>, vector<1x1x8x8x4xf32>,
    return
  }
  func.func @transform_0(%arg0: i32, %arg1: i32) -> (i32, i32, i32, i32, i32) {
    %c0_i32 = arith.constant 0 : i32
    %0 = arith.addi %arg1, %c0_i32 : i32
    %c0_i32_0 = arith.constant 0 : i32
    %c0_i32_1 = arith.constant 0 : i32
    %c0_i32_2 = arith.constant 0 : i32
    %c0_i32_3 = arith.constant 0 : i32
    return %arg0, %0, %c0_i32_0, %c0_i32_1, %c0_i32_2 : i32, i32, i32, i32, i32
  }
  func.func @transform_1(%arg0: i32, %arg1: i32) -> (i32, i32, i32, i32, i32) {
    %c1_i32 = arith.constant 1 : i32
    %0 = arith.addi %arg1, %c1_i32 : i32
    %c0_i32 = arith.constant 0 : i32
    %c0_i32_0 = arith.constant 0 : i32
    %c0_i32_1 = arith.constant 0 : i32
    %c0_i32_2 = arith.constant 0 : i32
    return %arg0, %0, %c0_i32, %c0_i32_0, %c0_i32_1 : i32, i32, i32, i32, i32
  }
  func.func @transform_2(%arg0: i32, %arg1: i32) -> (i32, i32, i32, i32, i32) {
    %c2_i32 = arith.constant 2 : i32
    %0 = arith.addi %arg1, %c2_i32 : i32
    %c0_i32 = arith.constant 0 : i32
    %c0_i32_0 = arith.constant 0 : i32
    %c0_i32_1 = arith.constant 0 : i32
    %c0_i32_2 = arith.constant 0 : i32
    return %arg0, %0, %c0_i32, %c0_i32_0, %c0_i32_1 : i32, i32, i32, i32, i32
  }
  func.func @transform_3(%arg0: i32, %arg1: i32) -> (i32, i32) {
    %c0_i32 = arith.constant 0 : i32
    %c0_i32_0 = arith.constant 0 : i32
    %c0_i32_1 = arith.constant 0 : i32
    return %c0_i32, %c0_i32_0 : i32, i32
  }
  func.func @transform_4(%arg0: i32, %arg1: i32) -> (i32, i32) {
    %c0_i32 = arith.constant 0 : i32
    %c0_i32_0 = arith.constant 0 : i32
    %c0_i32_1 = arith.constant 0 : i32
    return %c0_i32, %c0_i32_0 : i32, i32
  }
  func.func @transform_5(%arg0: i32, %arg1: i32) -> (i32, i32, i32, i32, i32) {
    %c0_i32 = arith.constant 0 : i32
    %c0_i32_0 = arith.constant 0 : i32
    %c0_i32_1 = arith.constant 0 : i32
    %c0_i32_2 = arith.constant 0 : i32
    return %arg0, %arg1, %c0_i32, %c0_i32_0, %c0_i32_1 : i32, i32, i32, i32, i32
  }
}

</mosaic_0001>

<bundles_post_ra>
// kernel: mixed_forward.4
= control target key start
LH: loop header
LB: loop body
LE: loop exit
PB: predicated region body
PF: predicated region fallthrough
CT: control target
= control target key end

     0   :  { %s1791_s18 = smov 0   ;;  %s2144_s0 = inlined_call_operand.vmem [shape: f32[512,8], index: 0, kind: input, shape index: {}]   ;;  %s2145_s1 = inlined_call_operand.vmem [shape: bf16[8,260], index: 1, kind: input, shape index: {}]   ;;  %s2146_s2 = inlined_call_operand.vmem [shape: f32[1,260], index: 2, kind: input, shape index: {}]   ;;  %s2147_s3 = inlined_call_operand.vmem [shape: bf16[512,128], index: 3, kind: output, shape index: {0}]   ;;  %s2148_s4 = inlined_call_operand.vmem [shape: bf16[512,128], index: 4, kind: output, shape index: {1}]   ;;  %s2149_s5 = inlined_call_operand.vmem [shape: f32[512,4], index: 5, kind: output, shape index: {2}]  }
   0x1 LB: > { %s1317_s19 = sadd.s32 4294967295, %s1758_s18   ;;  %p1321_p0 = scmp.ge.s32.totalorder %s1758_s18, 1  ;;  %s1758_s18 = sphi %s1791_s18, %s16_s18  }
   0x2   : > { %p193_p1 = scmp.lt.s32.totalorder %s1758_s18, 3 }
   0x4   : > { %p194_p2 = pnand %p1321_p0, %p193_p1 }
   0x5   : > { %v304_v0 = vld [vmem:[%s2145_s1] sm:$0xff] (!%p194_p2)  ;;  %vm380_vm0 = vcmask (!%p194_p2), 1043456   ;;  %s1322_s22 = sshll.u32 (!%p194_p2), %s1317_s19, 5  ;;  %v1760_v3 = vmov (!%p194_p2), 0   ;;  %v1751_v4 = vld [vmem:[%s2145_s1 + $0x8] ss:$0 sps:$4 sm:$0xff] (!%p194_p2)   ;;  %v308_v55 = vlaneseq (!%p194_p2) }
   0x6   : > { %197 = sbr.rel (%p194_p2) target bundleno = 329 (0x149), region = 32  ;;  %v1331_v1 = vcombine.high (!%p194_p2), %v304_v0, %v304_v0  ;;  %v1330_v2 = vcombine.low (!%p194_p2), %v304_v0, %v304_v0  ;;  %422 = vmatprep.mubr.bf16.mxu0 (!%p194_p2), %v1760_v3  ;;  %542 = vmatprep.mubr.bf16.mxu1 (!%p194_p2), %v1760_v3  ;;  %p232_p3 = scmp.lt.s32.totalorder (!%p194_p2), %s1322_s22, 63  ;;  %vm331_vm1 = vcmask (!%p194_p2), 64512   ;;  %v388_v12 = vsel (!%p194_p2), %vm380_vm0, %v1751_v4, 0  ;;  %v1918_v58 = vld [vmem:[%s2146_s2] sm:$0x7] (!%p194_p2) }
   0x7   : > { %v1912_v56 = vshrl.u32 (!%p194_p2), %v308_v55, 7  ;;  %vm1160_vm2 = vcmask (!%p194_p2), 31744  }
   0x8   : > { %1333 = vmatprep.subr.msk.bf16.mxu0 (!%p194_p2), %vm380_vm0, %v1331_v1  ;;  %1737 = vmatprep.subr.msk.bf16.mxu1 (!%p194_p2), %vm380_vm0, %v1331_v1  ;;  %v382_v5 = vsel (!%p194_p2), %vm380_vm0, %v1330_v2, 0 }
   0x9   : > { %391 = vmatpush1.bf16.msra.mxu0 (!%p194_p2), %v382_v5  ;;  %1738 = vmatpush1.bf16.msra.mxu1 (!%p194_p2), %v382_v5  ;;  %v310_v57 = vsub.s32 (!%p194_p2), 0, %v1912_v56  ;;  %v314_v59 = vsub.s32 (!%p194_p2), 1, %v1912_v56 }
   0xa   : > { %1739 = vmatprep.subr.msk.bf16.mxu1 (!%p194_p2), %vm380_vm0, %v1751_v4 }
   0xb   : > { %v1922_v60 = vrot.slane (!%p194_p2), %v1918_v58, %v310_v57  ;;  %v1925_v61 = vrot.slane (!%p194_p2), %v1918_v58, %v314_v59 }
   0xd   : > { %s2151_s22 = smov (!%p232_p3, %s1322_s22), 63 }
   0xe   : > { %s1323_s25 = sshll.u32 %s2151_s22, 3  ;;  %s1325_s6 = sshll.u32 %s2151_s22, 2 }
   0xf   : > { %s1819_s28 = scalar_lea.vmem %s2144_s0, %s1323_s25  ;;  %s1939_s9 = scalar_lea.vmem %s2147_s3, %s1325_s6 }
  0x10   : > { %v256_v6 = vld [vmem:[%s1819_s28] sm:$0xff]  ;;  %v257_v7 = vld [vmem:[%s1819_s28 + $0x8] sm:$0xff]  ;;  %v258_v13 = vld [vmem:[%s1819_s28 + $0x10] sm:$0xff]  ;;  %s1944_s12 = scalar_lea.vmem %s2148_s4, %s1325_s6  ;;  %s1998_s15 = scalar_lea.vmem %s2149_s5, %s1323_s25 }
  0x11   : > { %v280_v8 = vld [vmem:[%s1819_s28 + $0xc0] sm:$0xff]  ;;  %v288_v9 = vpack.c.bf16 %v257_v7, %v256_v6  ;;  %v281_v10 = vld [vmem:[%s1819_s28 + $0xc8] sm:$0xff]  ;;  %v259_v14 = vld [vmem:[%s1819_s28 + $0x18] sm:$0xff] }
  0x12   : > { %v1825_v11 = vpack.c.bf16 %v281_v10, %v280_v8  ;;  %v282_v15 = vld [vmem:[%s1819_s28 + $0xd0] sm:$0xff]  ;;  %v283_v16 = vld [vmem:[%s1819_s28 + $0xd8] sm:$0xff]  ;;  %v289_v17 = vpack.c.bf16 %v259_v14, %v258_v13  ;;  %v260_v19 = vld [vmem:[%s1819_s28 + $0x20] sm:$0xff] }
  0x13   : > { %1334 = vmatmul.mubr.msk.bf16.vlgmr.msra.gmra.mrb[0].mxu0 %vm331_vm1, %v288_v9  ;;  %v1837_v18 = vpack.c.bf16 %v283_v16, %v282_v15  ;;  %v261_v20 = vld [vmem:[%s1819_s28 + $0x28] sm:$0xff]  ;;  %v284_v21 = vld [vmem:[%s1819_s28 + $0xe0] sm:$0xff]  ;;  %v262_v25 = vld [vmem:[%s1819_s28 + $0x30] sm:$0xff] }
  0x14   : > { %1346 = vmatmul.mubr.msk.bf16.vlgmr.msra.gmra.mrb[0].mxu1 %vm331_vm1, %v1825_v11  ;;  %432 = vmatprep.mubr.bf16.mxu0 %v1760_v3  ;;  %v285_v22 = vld [vmem:[%s1819_s28 + $0xe8] sm:$0xff]  ;;  %v290_v23 = vpack.c.bf16 %v261_v20, %v260_v19  ;;  %v263_v26 = vld [vmem:[%s1819_s28 + $0x38] sm:$0xff]  ;;  %v286_v27 = vld [vmem:[%s1819_s28 + $0xf0] sm:$0xff] }
  0x15   : > { %1704 = vmatpush3.bf16.msra.mxu1 %v388_v12  ;;  %552 = vmatprep.mubr.bf16.mxu1 %v1760_v3  ;;  %v1848_v24 = vpack.c.bf16 %v285_v22, %v284_v21  ;;  %v287_v28 = vld [vmem:[%s1819_s28 + $0xf8] sm:$0xff]  ;;  %v291_v29 = vpack.c.bf16 %v263_v26, %v262_v25  ;;  %v264_v31 = vld [vmem:[%s1819_s28 + $0x40] sm:$0xff]  ;;  %v265_v32 = vld [vmem:[%s1819_s28 + $0x48] sm:$0xff] }
  0x16   : > { %v303_v30 = vpack.c.bf16 %v287_v28, %v286_v27  ;;  %v292_v33 = vpack.c.bf16 %v265_v32, %v264_v31  ;;  %v266_v34 = vld [vmem:[%s1819_s28 + $0x50] sm:$0xff]  ;;  %v267_v35 = vld [vmem:[%s1819_s28 + $0x58] sm:$0xff]  ;;  %v268_v37 = vld [vmem:[%s1819_s28 + $0x60] sm:$0xff] }
  0x17   : > { %v293_v36 = vpack.c.bf16 %v267_v35, %v266_v34  ;;  %v269_v38 = vld [vmem:[%s1819_s28 + $0x68] sm:$0xff]  ;;  %v270_v40 = vld [vmem:[%s1819_s28 + $0x70] sm:$0xff]  ;;  %v271_v41 = vld [vmem:[%s1819_s28 + $0x78] sm:$0xff] }
  0x18   : > { %v294_v39 = vpack.c.bf16 %v269_v38, %v268_v37  ;;  %v272_v42 = vld [vmem:[%s1819_s28 + $0x80] sm:$0xff]  ;;  %v273_v43 = vld [vmem:[%s1819_s28 + $0x88] sm:$0xff]  ;;  %v295_v44 = vpack.c.bf16 %v271_v41, %v270_v40  ;;  %v274_v46 = vld [vmem:[%s1819_s28 + $0x90] sm:$0xff] }
  0x19   : > { %v296_v45 = vpack.c.bf16 %v273_v43, %v272_v42  ;;  %v275_v47 = vld [vmem:[%s1819_s28 + $0x98] sm:$0xff]  ;;  %v276_v48 = vld [vmem:[%s1819_s28 + $0xa0] sm:$0xff]  ;;  %v277_v49 = vld [vmem:[%s1819_s28 + $0xa8] sm:$0xff] }
  0x1a   : > { %v297_v50 = vpack.c.bf16 %v275_v47, %v274_v46  ;;  %v298_v51 = vpack.c.bf16 %v277_v49, %v276_v48  ;;  %v278_v52 = vld [vmem:[%s1819_s28 + $0xb0] sm:$0xff]  ;;  %v279_v53 = vld [vmem:[%s1819_s28 + $0xb8] sm:$0xff] }
  0x1b   : > { %1335 = vmatmul.mubr.msk.bf16.gmra.mrb[4].mxu0 %vm331_vm1, %v289_v17  ;;  %v299_v54 = vpack.c.bf16 %v279_v53, %v278_v52 }
  0x1c   : > { %1347 = vmatmul.mubr.msk.bf16.gmra.mrb[4].mxu1 %vm331_vm1, %v1837_v18  ;;  %442 = vmatprep.mubr.bf16.mxu0 %v1760_v3 }
  0x1d   : > { %562 = vmatprep.mubr.bf16.mxu1 %v1760_v3 }
  0x23   : > { %1336 = vmatmul.mubr.msk.bf16.gmra.mrb[8].mxu0 %vm331_vm1, %v290_v23 }
  0x24   : > { %1348 = vmatmul.mubr.msk.bf16.gmra.mrb[8].mxu1 %vm331_vm1, %v1848_v24  ;;  %452 = vmatprep.mubr.bf16.mxu0 %v1760_v3 }
  0x25   : > { %572 = vmatprep.mubr.bf16.mxu1 %v1760_v3 }
  0x2b   : > { %1337 = vmatmul.mubr.msk.bf16.gmra.mrb[12].mxu0 %vm331_vm1, %v291_v29 }
  0x2c   : > { %1349 = vmatmul.mubr.msk.bf16.gmra.mrb[12].mxu1 %vm331_vm1, %v303_v30  ;;  %462 = vmatprep.mubr.bf16.mxu0 %v1760_v3 }
  0x2d   : > { %1705 = vmatprep.mubr.msk.bf16.mxu1 %vm331_vm1, %v288_v9 }
  0x33   : > { %1338 = vmatmul.mubr.msk.bf16.gmra.mrb[16].mxu0 %vm331_vm1, %v292_v33 }
  0x34   : > { %1706 = vmatmul.mubr.msk.bf16.vlgmr.msra.gmra.mrb[16].mxu1 %vm331_vm1, %v289_v17  ;;  %472 = vmatprep.mubr.bf16.mxu0 %v1760_v3 }
  0x35   : > { %1709 = vmatprep.mubr.msk.bf16.mxu1 %vm331_vm1, %v290_v23 }
  0x3b   : > { %1339 = vmatmul.mubr.msk.bf16.gmra.mrb[20].mxu0 %vm331_vm1, %v293_v36 }
  0x3c   : > { %1710 = vmatmul.mubr.msk.bf16.gmra.mrb[20].mxu1 %vm331_vm1, %v291_v29  ;;  %482 = vmatprep.mubr.bf16.mxu0 %v1760_v3 }
  0x3d   : > { %1713 = vmatprep.mubr.msk.bf16.mxu1 %vm331_vm1, %v292_v33 }
  0x43   : > { %1340 = vmatmul.mubr.msk.bf16.gmra.mrb[24].mxu0 %vm331_vm1, %v294_v39 }
  0x44   : > { %1714 = vmatmul.mubr.msk.bf16.gmra.mrb[24].mxu1 %vm331_vm1, %v293_v36  ;;  %492 = vmatprep.mubr.bf16.mxu0 %v1760_v3 }
  0x45   : > { %1717 = vmatprep.mubr.msk.bf16.mxu1 %vm331_vm1, %v294_v39 }
  0x4b   : > { %1341 = vmatmul.mubr.msk.bf16.gmra.mrb[28].mxu0 %vm331_vm1, %v295_v44 }
  0x4c   : > { %1718 = vmatmul.mubr.msk.bf16.gmra.mrb[28].mxu1 %vm331_vm1, %v295_v44  ;;  %502 = vmatprep.mubr.bf16.mxu0 %v1760_v3 }
  0x4d   : > { %1721 = vmatprep.mubr.msk.bf16.mxu1 %vm331_vm1, %v296_v45 }
  0x53   : > { %1342 = vmatmul.mubr.msk.bf16.gmra.mrb[32].mxu0 %vm331_vm1, %v296_v45 }
  0x54   : > { %1722 = vmatmul.mubr.msk.bf16.gmra.mrb[32].mxu1 %vm331_vm1, %v297_v50  ;;  %512 = vmatprep.mubr.bf16.mxu0 %v1760_v3 }
  0x55   : > { %1725 = vmatprep.mubr.msk.bf16.mxu1 %vm331_vm1, %v298_v51 }
  0x5b   : > { %1343 = vmatmul.mubr.msk.bf16.gmra.mrb[36].mxu0 %vm331_vm1, %v297_v50 }
  0x5c   : > { %1726 = vmatmul.mubr.msk.bf16.gmra.mrb[36].mxu1 %vm331_vm1, %v299_v54  ;;  %522 = vmatprep.mubr.bf16.mxu0 %v1760_v3 }
  0x5d   : > { %1729 = vmatprep.mubr.msk.bf16.mxu1 %vm331_vm1, %v1825_v11 }
  0x63   : > { %1344 = vmatmul.mubr.msk.bf16.gmra.mrb[40].mxu0 %vm331_vm1, %v298_v51 }
  0x64   : > { %1730 = vmatmul.mubr.msk.bf16.gmra.mrb[40].mxu1 %vm331_vm1, %v1837_v18  ;;  %532 = vmatprep.mubr.bf16.mxu0 %v1760_v3 }
  0x65   : > { %1733 = vmatprep.mubr.msk.bf16.mxu1 %vm331_vm1, %v1848_v24 }
  0x6b   : > { %1345 = vmatmul.mubr.msk.bf16.gmra.mrb[44].mxu0 %vm331_vm1, %v299_v54 }
  0x6c   : > { %1734 = vmatmul.mubr.msk.bf16.gmra.mrb[44].mxu1 %vm331_vm1, %v303_v30 }
  0xe6   : > { %v424_v62 = vpop.f32.mrb[0].mxu0 }
  0xe7   : > { %v425_v63 = vadd.f32 %v424_v62, %v1922_v60  ;;  %v544_v0 = vpop.f32.mrb[0].mxu1  ;;  %v426_v1 = vpop.f32.mrb[1].mxu0 }
  0xe8   : > { %v545_v2 = vadd.f32 %v544_v0, %v1922_v60  ;;  %v427_v3 = vadd.f32 %v426_v1, %v1925_v61  ;;  %v546_v4 = vpop.f32.mrb[1].mxu1  ;;  %v428_v5 = vpop.f32.mrb[2].mxu0 }
  0xe9   : > { %v547_v6 = vadd.f32 %v546_v4, %v1925_v61  ;;  %v429_v7 = vadd.f32 %v428_v5, %v1922_v60  ;;  %v548_v8 = vpop.f32.mrb[2].mxu1  ;;  %v430_v9 = vpop.f32.mrb[3].mxu0  ;;  %v744_v14 = vmax.f32 %v425_v63, 0.0 }
  0xea   : > { %v816_v10 = vmax.f32 %v545_v2, 0.0  ;;  %v549_v11 = vadd.f32 %v548_v8, %v1922_v60  ;;  %v431_v12 = vadd.f32 %v430_v9, %v1925_v61  ;;  %v550_v13 = vpop.f32.mrb[3].mxu1  ;;  %v745_v18 = vmax.f32 %v427_v3, 0.0 }
  0xeb   : > { %v817_v15 = vmax.f32 %v547_v6, 0.0  ;;  %v747_v16 = vmax.f32 %v429_v7, 0.0  ;;  %v551_v17 = vadd.f32 %v550_v13, %v1925_v61 }
  0xec   : > { %v819_v19 = vmax.f32 %v549_v11, 0.0  ;;  %v748_v20 = vmax.f32 %v431_v12, 0.0 }
  0xed   : > { %v1499_v21 = vpack.c.bf16 %v747_v16, %v744_v14  ;;  %v820_v22 = vmax.f32 %v551_v17, 0.0 }
  0xee   : > { %v1559_v23 = vpack.c.bf16 %v819_v19, %v816_v10  ;;  %v1579_v24 = vpack.c.bf16 %v748_v20, %v745_v18  ;;  %v434_v25 = vpop.f32.mrb[4].mxu0 }
  0xef   : > { %1500 = vst [vmem:[%s1939_s9] sm:$0xff] %v1499_v21   ;;  %v1639_v26 = vpack.c.bf16 %v820_v22, %v817_v15  ;;  %v435_v27 = vadd.f32 %v434_v25, %v1922_v60  ;;  %v554_v28 = vpop.f32.mrb[4].mxu1  ;;  %v436_v29 = vpop.f32.mrb[5].mxu0 }
  0xf0   : > { %1667 = vst [vmem:[%s1939_s9 + $0x60] sm:$0xff] %v1559_v23   ;;  %1580 = vst [vmem:[%s1944_s12] sm:$0xff] %v1579_v24   ;;  %v555_v30 = vadd.f32 %v554_v28, %v1922_v60  ;;  %v437_v31 = vadd.f32 %v436_v29, %v1925_v61  ;;  %v556_v32 = vpop.f32.mrb[5].mxu1  ;;  %v438_v33 = vpop.f32.mrb[6].mxu0 }
  0xf1   : > { %1682 = vst [vmem:[%s1944_s12 + $0x60] sm:$0xff] %v1639_v26   ;;  %v557_v34 = vadd.f32 %v556_v32, %v1925_v61  ;;  %v439_v35 = vadd.f32 %v438_v33, %v1922_v60  ;;  %v558_v36 = vpop.f32.mrb[6].mxu1  ;;  %v440_v37 = vpop.f32.mrb[7].mxu0  ;;  %v750_v42 = vmax.f32 %v435_v27, 0.0 }
  0xf2   : > { %v822_v38 = vmax.f32 %v555_v30, 0.0  ;;  %v559_v39 = vadd.f32 %v558_v36, %v1922_v60  ;;  %v441_v40 = vadd.f32 %v440_v37, %v1925_v61  ;;  %v560_v41 = vpop.f32.mrb[7].mxu1  ;;  %v751_v46 = vmax.f32 %v437_v31, 0.0 }
  0xf3   : > { %v823_v43 = vmax.f32 %v557_v34, 0.0  ;;  %v753_v44 = vmax.f32 %v439_v35, 0.0  ;;  %v561_v45 = vadd.f32 %v560_v41, %v1925_v61  ;;  %v318_v30 = vsub.s32 2, %v1912_v56 }
  0xf4   : > { %v825_v47 = vmax.f32 %v559_v39, 0.0  ;;  %v754_v48 = vmax.f32 %v441_v40, 0.0 }
  0xf5   : > { %v1504_v49 = vpack.c.bf16 %v753_v44, %v750_v42  ;;  %v826_v50 = vmax.f32 %v561_v45, 0.0  ;;  %v1984_v45 = vrot.slane %v1918_v58, %v318_v30 }
  0xf6   : > { %v1564_v51 = vpack.c.bf16 %v825_v47, %v822_v38  ;;  %v1584_v52 = vpack.c.bf16 %v754_v48, %v751_v46  ;;  %v444_v53 = vpop.f32.mrb[8].mxu0 }
  0xf7   : > { %1656 = vst [vmem:[%s1939_s9 + $0x8] sm:$0xff] %v1504_v49   ;;  %v1644_v54 = vpack.c.bf16 %v826_v50, %v823_v43  ;;  %v445_v55 = vadd.f32 %v444_v53, %v1922_v60  ;;  %v564_v57 = vpop.f32.mrb[8].mxu1  ;;  %v446_v59 = vpop.f32.mrb[9].mxu0 }
  0xf8   : > { %1668 = vst [vmem:[%s1939_s9 + $0x68] sm:$0xff] %v1564_v51   ;;  %1671 = vst [vmem:[%s1944_s12 + $0x8] sm:$0xff] %v1584_v52   ;;  %v565_v62 = vadd.f32 %v564_v57, %v1922_v60  ;;  %v447_v63 = vadd.f32 %v446_v59, %v1925_v61  ;;  %v566_v0 = vpop.f32.mrb[9].mxu1  ;;  %v448_v1 = vpop.f32.mrb[10].mxu0 }
  0xf9   : > { %1683 = vst [vmem:[%s1944_s12 + $0x68] sm:$0xff] %v1644_v54   ;;  %v567_v2 = vadd.f32 %v566_v0, %v1925_v61  ;;  %v449_v3 = vadd.f32 %v448_v1, %v1922_v60  ;;  %v568_v4 = vpop.f32.mrb[10].mxu1  ;;  %v450_v5 = vpop.f32.mrb[11].mxu0  ;;  %v756_v10 = vmax.f32 %v445_v55, 0.0 }
  0xfa   : > { %v828_v6 = vmax.f32 %v565_v62, 0.0  ;;  %v569_v7 = vadd.f32 %v568_v4, %v1922_v60  ;;  %v451_v8 = vadd.f32 %v450_v5, %v1925_v61  ;;  %v570_v9 = vpop.f32.mrb[11].mxu1  ;;  %v757_v14 = vmax.f32 %v447_v63, 0.0 }
  0xfb   : > { %v829_v11 = vmax.f32 %v567_v2, 0.0  ;;  %v759_v12 = vmax.f32 %v449_v3, 0.0  ;;  %v571_v13 = vadd.f32 %v570_v9, %v1925_v61 }
  0xfc   : > { %v831_v15 = vmax.f32 %v569_v7, 0.0  ;;  %v760_v16 = vmax.f32 %v451_v8, 0.0 }
  0xfd   : > { %v1509_v17 = vpack.c.bf16 %v759_v12, %v756_v10  ;;  %v832_v18 = vmax.f32 %v571_v13, 0.0 }
  0xfe   : > { %v1569_v19 = vpack.c.bf16 %v831_v15, %v828_v6  ;;  %v1589_v20 = vpack.c.bf16 %v760_v16, %v757_v14  ;;  %v454_v21 = vpop.f32.mrb[12].mxu0 }
  0xff   : > { %1657 = vst [vmem:[%s1939_s9 + $0x10] sm:$0xff] %v1509_v17   ;;  %v1649_v22 = vpack.c.bf16 %v832_v18, %v829_v11  ;;  %v455_v23 = vadd.f32 %v454_v21, %v1922_v60  ;;  %v574_v24 = vpop.f32.mrb[12].mxu1  ;;  %v456_v25 = vpop.f32.mrb[13].mxu0 }
 0x100   : > { %1669 = vst [vmem:[%s1939_s9 + $0x70] sm:$0xff] %v1569_v19   ;;  %1672 = vst [vmem:[%s1944_s12 + $0x10] sm:$0xff] %v1589_v20   ;;  %v575_v26 = vadd.f32 %v574_v24, %v1922_v60  ;;  %v457_v27 = vadd.f32 %v456_v25, %v1925_v61  ;;  %v576_v28 = vpop.f32.mrb[13].mxu1  ;;  %v458_v29 = vpop.f32.mrb[14].mxu0 }
 0x101   : > { %1684 = vst [vmem:[%s1944_s12 + $0x70] sm:$0xff] %v1649_v22   ;;  %v577_v31 = vadd.f32 %v576_v28, %v1925_v61  ;;  %v459_v32 = vadd.f32 %v458_v29, %v1922_v60  ;;  %v578_v33 = vpop.f32.mrb[14].mxu1  ;;  %v460_v34 = vpop.f32.mrb[15].mxu0  ;;  %v762_v39 = vmax.f32 %v455_v23, 0.0 }
 0x102   : > { %v834_v35 = vmax.f32 %v575_v26, 0.0  ;;  %v579_v36 = vadd.f32 %v578_v33, %v1922_v60  ;;  %v461_v37 = vadd.f32 %v460_v34, %v1925_v61  ;;  %v580_v38 = vpop.f32.mrb[15].mxu1  ;;  %v763_v42 = vmax.f32 %v457_v27, 0.0 }
 0x103   : > { %v835_v40 = vmax.f32 %v577_v31, 0.0  ;;  %v765_v41 = vmax.f32 %v459_v32, 0.0  ;;  %v581_v56 = vadd.f32 %v580_v38, %v1925_v61 }
 0x104   : > { %v837_v43 = vmax.f32 %v579_v36, 0.0  ;;  %v766_v44 = vmax.f32 %v461_v37, 0.0 }
 0x105   : > { %v1514_v46 = vpack.c.bf16 %v765_v41, %v762_v39  ;;  %v838_v47 = vmax.f32 %v581_v56, 0.0 }
 0x106   : > { %v1574_v48 = vpack.c.bf16 %v837_v43, %v834_v35  ;;  %v1594_v49 = vpack.c.bf16 %v766_v44, %v763_v42  ;;  %v464_v50 = vpop.f32.mrb[16].mxu0 }
 0x107   : > { %1658 = vst [vmem:[%s1939_s9 + $0x18] sm:$0xff] %v1514_v46   ;;  %v1654_v51 = vpack.c.bf16 %v838_v47, %v835_v40  ;;  %v465_v52 = vadd.f32 %v464_v50, %v1922_v60  ;;  %v1707_v53 = vpop.f32.mrb[16].mxu1  ;;  %v466_v54 = vpop.f32.mrb[17].mxu0 }
 0x108   : > { %1670 = vst [vmem:[%s1939_s9 + $0x78] sm:$0xff] %v1574_v48   ;;  %1673 = vst [vmem:[%s1944_s12 + $0x18] sm:$0xff] %v1594_v49   ;;  %v626_v55 = vadd.f32 %v1707_v53, %v1984_v45  ;;  %v467_v58 = vadd.f32 %v466_v54, %v1925_v61  ;;  %v617_v57 = vpop.f32.mrb[17].mxu1  ;;  %v468_v59 = vpop.f32.mrb[18].mxu0 }
 0x109   : > { %1685 = vst [vmem:[%s1944_s12 + $0x78] sm:$0xff] %v1654_v51   ;;  %v618_v62 = vadd.f32 %v617_v57, %v1984_v45  ;;  %v469_v63 = vadd.f32 %v468_v59, %v1922_v60  ;;  %v1708_v0 = vpop.f32.mrb[18].mxu1  ;;  %v470_v1 = vpop.f32.mrb[19].mxu0  ;;  %v768_v6 = vmax.f32 %v465_v52, 0.0 }
 0x10a   : > { %v752_v2 = vmax.f32 %v626_v55, 0.0  ;;  %v629_v3 = vadd.f32 %v1708_v0, %v1984_v45  ;;  %v471_v4 = vadd.f32 %v470_v1, %v1925_v61  ;;  %v620_v5 = vpop.f32.mrb[19].mxu1  ;;  %v769_v10 = vmax.f32 %v467_v58, 0.0 }
 0x10b   : > { %v746_v7 = vmax.f32 %v618_v62, 0.0  ;;  %v771_v8 = vmax.f32 %v469_v63, 0.0  ;;  %v621_v9 = vadd.f32 %v620_v5, %v1984_v45 }
 0x10c   : > { %1163 = vst.msk [vmem:[%s1998_s15 + $0x10] sm:$0xff] %vm1160_vm2, %v752_v2  ;;  %v755_v11 = vmax.f32 %v629_v3, 0.0  ;;  %v772_v12 = vmax.f32 %v471_v4, 0.0 }
 0x10d   : > { %1161 = vst.msk [vmem:[%s1998_s15] sm:$0xff] %vm1160_vm2, %v746_v7  ;;  %v1519_v13 = vpack.c.bf16 %v771_v8, %v768_v6  ;;  %v749_v14 = vmax.f32 %v621_v9, 0.0 }
 0x10e   : > { %1164 = vst.msk [vmem:[%s1998_s15 + $0x18] sm:$0xff] %vm1160_vm2, %v755_v11  ;;  %v1599_v15 = vpack.c.bf16 %v772_v12, %v769_v10  ;;  %v474_v16 = vpop.f32.mrb[20].mxu0 }
 0x10f   : > { %1659 = vst [vmem:[%s1939_s9 + $0x20] sm:$0xff] %v1519_v13   ;;  %1162 = vst.msk [vmem:[%s1998_s15 + $0x8] sm:$0xff] %vm1160_vm2, %v749_v14  ;;  %v475_v17 = vadd.f32 %v474_v16, %v1922_v60  ;;  %v1711_v18 = vpop.f32.mrb[20].mxu1  ;;  %v476_v19 = vpop.f32.mrb[21].mxu0 }
 0x110   : > { %1674 = vst [vmem:[%s1944_s12 + $0x20] sm:$0xff] %v1599_v15   ;;  %v642_v20 = vadd.f32 %v1711_v18, %v1984_v45  ;;  %v477_v21 = vadd.f32 %v476_v19, %v1925_v61  ;;  %v633_v22 = vpop.f32.mrb[21].mxu1  ;;  %v478_v23 = vpop.f32.mrb[22].mxu0 }
 0x111   : > { %v634_v24 = vadd.f32 %v633_v22, %v1984_v45  ;;  %v479_v25 = vadd.f32 %v478_v23, %v1922_v60  ;;  %v1712_v26 = vpop.f32.mrb[22].mxu1  ;;  %v480_v27 = vpop.f32.mrb[23].mxu0  ;;  %v774_v32 = vmax.f32 %v475_v17, 0.0 }
 0x112   : > { %v764_v28 = vmax.f32 %v642_v20, 0.0  ;;  %v645_v29 = vadd.f32 %v1712_v26, %v1984_v45  ;;  %v481_v30 = vadd.f32 %v480_v27, %v1925_v61  ;;  %v636_v31 = vpop.f32.mrb[23].mxu1  ;;  %v775_v36 = vmax.f32 %v477_v21, 0.0 }
 0x113   : > { %v758_v33 = vmax.f32 %v634_v24, 0.0  ;;  %v777_v34 = vmax.f32 %v479_v25, 0.0  ;;  %v637_v35 = vadd.f32 %v636_v31, %v1984_v45 }
 0x114   : > { %1167 = vst.msk [vmem:[%s1998_s15 + $0x30] sm:$0xff] %vm1160_vm2, %v764_v28  ;;  %v767_v37 = vmax.f32 %v645_v29, 0.0  ;;  %v778_v38 = vmax.f32 %v481_v30, 0.0 }
 0x115   : > { %1165 = vst.msk [vmem:[%s1998_s15 + $0x20] sm:$0xff] %vm1160_vm2, %v758_v33  ;;  %v1524_v39 = vpack.c.bf16 %v777_v34, %v774_v32  ;;  %v761_v40 = vmax.f32 %v637_v35, 0.0 }
 0x116   : > { %1168 = vst.msk [vmem:[%s1998_s15 + $0x38] sm:$0xff] %vm1160_vm2, %v767_v37  ;;  %v1604_v41 = vpack.c.bf16 %v778_v38, %v775_v36  ;;  %v484_v56 = vpop.f32.mrb[24].mxu0 }
 0x117   : > { %1660 = vst [vmem:[%s1939_s9 + $0x28] sm:$0xff] %v1524_v39   ;;  %1166 = vst.msk [vmem:[%s1998_s15 + $0x28] sm:$0xff] %vm1160_vm2, %v761_v40  ;;  %v485_v42 = vadd.f32 %v484_v56, %v1922_v60  ;;  %v1715_v43 = vpop.f32.mrb[24].mxu1  ;;  %v486_v44 = vpop.f32.mrb[25].mxu0 }
 0x118   : > { %1675 = vst [vmem:[%s1944_s12 + $0x28] sm:$0xff] %v1604_v41   ;;  %v658_v46 = vadd.f32 %v1715_v43, %v1984_v45  ;;  %v487_v47 = vadd.f32 %v486_v44, %v1925_v61  ;;  %v649_v48 = vpop.f32.mrb[25].mxu1  ;;  %v488_v49 = vpop.f32.mrb[26].mxu0 }
 0x119   : > { %v650_v50 = vadd.f32 %v649_v48, %v1984_v45  ;;  %v489_v51 = vadd.f32 %v488_v49, %v1922_v60  ;;  %v1716_v52 = vpop.f32.mrb[26].mxu1  ;;  %v490_v53 = vpop.f32.mrb[27].mxu0  ;;  %v780_v59 = vmax.f32 %v485_v42, 0.0 }
 0x11a   : > { %v776_v54 = vmax.f32 %v658_v46, 0.0  ;;  %v661_v55 = vadd.f32 %v1716_v52, %v1984_v45  ;;  %v491_v58 = vadd.f32 %v490_v53, %v1925_v61  ;;  %v652_v57 = vpop.f32.mrb[27].mxu1  ;;  %v781_v1 = vmax.f32 %v487_v47, 0.0 }
 0x11b   : > { %v770_v62 = vmax.f32 %v650_v50, 0.0  ;;  %v783_v63 = vmax.f32 %v489_v51, 0.0  ;;  %v653_v0 = vadd.f32 %v652_v57, %v1984_v45 }
 0x11c   : > { %1171 = vst.msk [vmem:[%s1998_s15 + $0x50] sm:$0xff] %vm1160_vm2, %v776_v54  ;;  %v779_v2 = vmax.f32 %v661_v55, 0.0  ;;  %v784_v3 = vmax.f32 %v491_v58, 0.0 }
 0x11d   : > { %1169 = vst.msk [vmem:[%s1998_s15 + $0x40] sm:$0xff] %vm1160_vm2, %v770_v62  ;;  %v1529_v4 = vpack.c.bf16 %v783_v63, %v780_v59  ;;  %v773_v5 = vmax.f32 %v653_v0, 0.0 }
 0x11e   : > { %1172 = vst.msk [vmem:[%s1998_s15 + $0x58] sm:$0xff] %vm1160_vm2, %v779_v2  ;;  %v1609_v6 = vpack.c.bf16 %v784_v3, %v781_v1  ;;  %v494_v7 = vpop.f32.mrb[28].mxu0 }
 0x11f   : > { %1661 = vst [vmem:[%s1939_s9 + $0x30] sm:$0xff] %v1529_v4   ;;  %1170 = vst.msk [vmem:[%s1998_s15 + $0x48] sm:$0xff] %vm1160_vm2, %v773_v5  ;;  %v495_v8 = vadd.f32 %v494_v7, %v1922_v60  ;;  %v1719_v9 = vpop.f32.mrb[28].mxu1  ;;  %v496_v10 = vpop.f32.mrb[29].mxu0 }
 0x120   : > { %1676 = vst [vmem:[%s1944_s12 + $0x30] sm:$0xff] %v1609_v6   ;;  %v674_v11 = vadd.f32 %v1719_v9, %v1984_v45  ;;  %v497_v12 = vadd.f32 %v496_v10, %v1925_v61  ;;  %v665_v13 = vpop.f32.mrb[29].mxu1  ;;  %v498_v14 = vpop.f32.mrb[30].mxu0 }
 0x121   : > { %v666_v15 = vadd.f32 %v665_v13, %v1984_v45  ;;  %v499_v16 = vadd.f32 %v498_v14, %v1922_v60  ;;  %v1720_v17 = vpop.f32.mrb[30].mxu1  ;;  %v500_v18 = vpop.f32.mrb[31].mxu0  ;;  %v786_v23 = vmax.f32 %v495_v8, 0.0 }
 0x122   : > { %v788_v19 = vmax.f32 %v674_v11, 0.0  ;;  %v677_v20 = vadd.f32 %v1720_v17, %v1984_v45  ;;  %v501_v21 = vadd.f32 %v500_v18, %v1925_v61  ;;  %v668_v22 = vpop.f32.mrb[31].mxu1  ;;  %v787_v27 = vmax.f32 %v497_v12, 0.0 }
 0x123   : > { %v782_v24 = vmax.f32 %v666_v15, 0.0  ;;  %v789_v25 = vmax.f32 %v499_v16, 0.0  ;;  %v669_v26 = vadd.f32 %v668_v22, %v1984_v45 }
 0x124   : > { %1175 = vst.msk [vmem:[%s1998_s15 + $0x70] sm:$0xff] %vm1160_vm2, %v788_v19  ;;  %v791_v28 = vmax.f32 %v677_v20, 0.0  ;;  %v790_v29 = vmax.f32 %v501_v21, 0.0 }
 0x125   : > { %1173 = vst.msk [vmem:[%s1998_s15 + $0x60] sm:$0xff] %vm1160_vm2, %v782_v24  ;;  %v1534_v30 = vpack.c.bf16 %v789_v25, %v786_v23  ;;  %v785_v31 = vmax.f32 %v669_v26, 0.0 }
 0x126   : > { %1176 = vst.msk [vmem:[%s1998_s15 + $0x78] sm:$0xff] %vm1160_vm2, %v791_v28  ;;  %v1614_v32 = vpack.c.bf16 %v790_v29, %v787_v27  ;;  %v504_v33 = vpop.f32.mrb[32].mxu0 }
 0x127   : > { %1662 = vst [vmem:[%s1939_s9 + $0x38] sm:$0xff] %v1534_v30   ;;  %1174 = vst.msk [vmem:[%s1998_s15 + $0x68] sm:$0xff] %vm1160_vm2, %v785_v31  ;;  %v505_v34 = vadd.f32 %v504_v33, %v1922_v60  ;;  %v1723_v35 = vpop.f32.mrb[32].mxu1  ;;  %v506_v36 = vpop.f32.mrb[33].mxu0 }
 0x128   : > { %1677 = vst [vmem:[%s1944_s12 + $0x38] sm:$0xff] %v1614_v32   ;;  %v690_v37 = vadd.f32 %v1723_v35, %v1984_v45  ;;  %v507_v38 = vadd.f32 %v506_v36, %v1925_v61  ;;  %v681_v39 = vpop.f32.mrb[33].mxu1  ;;  %v508_v40 = vpop.f32.mrb[34].mxu0 }
 0x129   : > { %v682_v41 = vadd.f32 %v681_v39, %v1984_v45  ;;  %v509_v56 = vadd.f32 %v508_v40, %v1922_v60  ;;  %v1724_v42 = vpop.f32.mrb[34].mxu1  ;;  %v510_v43 = vpop.f32.mrb[35].mxu0  ;;  %v792_v49 = vmax.f32 %v505_v34, 0.0 }
 0x12a   : > { %v800_v44 = vmax.f32 %v690_v37, 0.0  ;;  %v693_v46 = vadd.f32 %v1724_v42, %v1984_v45  ;;  %v511_v47 = vadd.f32 %v510_v43, %v1925_v61  ;;  %v684_v48 = vpop.f32.mrb[35].mxu1  ;;  %v793_v53 = vmax.f32 %v507_v38, 0.0 }
 0x12b   : > { %v794_v50 = vmax.f32 %v682_v41, 0.0  ;;  %v795_v51 = vmax.f32 %v509_v56, 0.0  ;;  %v685_v52 = vadd.f32 %v684_v48, %v1984_v45 }
 0x12c   : > { %1179 = vst.msk [vmem:[%s1998_s15 + $0x90] sm:$0xff] %vm1160_vm2, %v800_v44  ;;  %v803_v54 = vmax.f32 %v693_v46, 0.0  ;;  %v796_v55 = vmax.f32 %v511_v47, 0.0 }
 0x12d   : > { %1177 = vst.msk [vmem:[%s1998_s15 + $0x80] sm:$0xff] %vm1160_vm2, %v794_v50  ;;  %v1539_v58 = vpack.c.bf16 %v795_v51, %v792_v49  ;;  %v797_v57 = vmax.f32 %v685_v52, 0.0 }
 0x12e   : > { %1180 = vst.msk [vmem:[%s1998_s15 + $0x98] sm:$0xff] %vm1160_vm2, %v803_v54  ;;  %v1619_v59 = vpack.c.bf16 %v796_v55, %v793_v53  ;;  %v514_v62 = vpop.f32.mrb[36].mxu0 }
 0x12f   : > { %1663 = vst [vmem:[%s1939_s9 + $0x40] sm:$0xff] %v1539_v58   ;;  %1178 = vst.msk [vmem:[%s1998_s15 + $0x88] sm:$0xff] %vm1160_vm2, %v797_v57  ;;  %v515_v63 = vadd.f32 %v514_v62, %v1922_v60  ;;  %v1727_v0 = vpop.f32.mrb[36].mxu1  ;;  %v516_v1 = vpop.f32.mrb[37].mxu0 }
 0x130   : > { %1678 = vst [vmem:[%s1944_s12 + $0x40] sm:$0xff] %v1619_v59   ;;  %v706_v2 = vadd.f32 %v1727_v0, %v1984_v45  ;;  %v517_v3 = vadd.f32 %v516_v1, %v1925_v61  ;;  %v697_v4 = vpop.f32.mrb[37].mxu1  ;;  %v518_v5 = vpop.f32.mrb[38].mxu0 }
 0x131   : > { %v698_v6 = vadd.f32 %v697_v4, %v1984_v45  ;;  %v519_v7 = vadd.f32 %v518_v5, %v1922_v60  ;;  %v1728_v8 = vpop.f32.mrb[38].mxu1  ;;  %v520_v9 = vpop.f32.mrb[39].mxu0  ;;  %v798_v14 = vmax.f32 %v515_v63, 0.0 }
 0x132   : > { %v812_v10 = vmax.f32 %v706_v2, 0.0  ;;  %v709_v11 = vadd.f32 %v1728_v8, %v1984_v45  ;;  %v521_v12 = vadd.f32 %v520_v9, %v1925_v61  ;;  %v700_v13 = vpop.f32.mrb[39].mxu1  ;;  %v799_v18 = vmax.f32 %v517_v3, 0.0 }
 0x133   : > { %v806_v15 = vmax.f32 %v698_v6, 0.0  ;;  %v801_v16 = vmax.f32 %v519_v7, 0.0  ;;  %v701_v17 = vadd.f32 %v700_v13, %v1984_v45 }
 0x134   : > { %1183 = vst.msk [vmem:[%s1998_s15 + $0xb0] sm:$0xff] %vm1160_vm2, %v812_v10  ;;  %v815_v19 = vmax.f32 %v709_v11, 0.0  ;;  %v802_v20 = vmax.f32 %v521_v12, 0.0 }
 0x135   : > { %1181 = vst.msk [vmem:[%s1998_s15 + $0xa0] sm:$0xff] %vm1160_vm2, %v806_v15  ;;  %v1544_v21 = vpack.c.bf16 %v801_v16, %v798_v14  ;;  %v809_v22 = vmax.f32 %v701_v17, 0.0 }
 0x136   : > { %1184 = vst.msk [vmem:[%s1998_s15 + $0xb8] sm:$0xff] %vm1160_vm2, %v815_v19  ;;  %v1624_v23 = vpack.c.bf16 %v802_v20, %v799_v18  ;;  %v524_v24 = vpop.f32.mrb[40].mxu0 }
 0x137   : > { %1664 = vst [vmem:[%s1939_s9 + $0x48] sm:$0xff] %v1544_v21   ;;  %1182 = vst.msk [vmem:[%s1998_s15 + $0xa8] sm:$0xff] %vm1160_vm2, %v809_v22  ;;  %v525_v25 = vadd.f32 %v524_v24, %v1922_v60  ;;  %v1731_v26 = vpop.f32.mrb[40].mxu1  ;;  %v526_v27 = vpop.f32.mrb[41].mxu0 }
 0x138   : > { %1679 = vst [vmem:[%s1944_s12 + $0x48] sm:$0xff] %v1624_v23   ;;  %v722_v28 = vadd.f32 %v1731_v26, %v1984_v45  ;;  %v527_v29 = vadd.f32 %v526_v27, %v1925_v61  ;;  %v713_v30 = vpop.f32.mrb[41].mxu1  ;;  %v528_v31 = vpop.f32.mrb[42].mxu0 }
 0x139   : > { %v714_v32 = vadd.f32 %v713_v30, %v1984_v45  ;;  %v529_v33 = vadd.f32 %v528_v31, %v1922_v60  ;;  %v1732_v34 = vpop.f32.mrb[42].mxu1  ;;  %v530_v35 = vpop.f32.mrb[43].mxu0  ;;  %v804_v40 = vmax.f32 %v525_v25, 0.0 }
 0x13a   : > { %v824_v36 = vmax.f32 %v722_v28, 0.0  ;;  %v725_v37 = vadd.f32 %v1732_v34, %v1984_v45  ;;  %v531_v38 = vadd.f32 %v530_v35, %v1925_v61  ;;  %v716_v39 = vpop.f32.mrb[43].mxu1  ;;  %v805_v43 = vmax.f32 %v527_v29, 0.0 }
 0x13b   : > { %v818_v41 = vmax.f32 %v714_v32, 0.0  ;;  %v807_v56 = vmax.f32 %v529_v33, 0.0  ;;  %v717_v42 = vadd.f32 %v716_v39, %v1984_v45 }
 0x13c   : > { %1187 = vst.msk [vmem:[%s1998_s15 + $0xd0] sm:$0xff] %vm1160_vm2, %v824_v36  ;;  %v827_v44 = vmax.f32 %v725_v37, 0.0  ;;  %v808_v46 = vmax.f32 %v531_v38, 0.0 }
 0x13d   : > { %1185 = vst.msk [vmem:[%s1998_s15 + $0xc0] sm:$0xff] %vm1160_vm2, %v818_v41  ;;  %v1549_v47 = vpack.c.bf16 %v807_v56, %v804_v40  ;;  %v821_v48 = vmax.f32 %v717_v42, 0.0 }
 0x13e   : > { %1188 = vst.msk [vmem:[%s1998_s15 + $0xd8] sm:$0xff] %vm1160_vm2, %v827_v44  ;;  %v1629_v49 = vpack.c.bf16 %v808_v46, %v805_v43  ;;  %v534_v50 = vpop.f32.mrb[44].mxu0 }
 0x13f   : > { %1665 = vst [vmem:[%s1939_s9 + $0x50] sm:$0xff] %v1549_v47   ;;  %1186 = vst.msk [vmem:[%s1998_s15 + $0xc8] sm:$0xff] %vm1160_vm2, %v821_v48  ;;  %v535_v51 = vadd.f32 %v534_v50, %v1922_v60  ;;  %v1735_v52 = vpop.f32.mrb[44].mxu1  ;;  %v536_v53 = vpop.f32.mrb[45].mxu0 }
 0x140   : > { %1680 = vst [vmem:[%s1944_s12 + $0x50] sm:$0xff] %v1629_v49   ;;  %v738_v54 = vadd.f32 %v1735_v52, %v1984_v45  ;;  %v537_v55 = vadd.f32 %v536_v53, %v1925_v61  ;;  %v729_v58 = vpop.f32.mrb[45].mxu1  ;;  %v538_v57 = vpop.f32.mrb[46].mxu0 }
 0x141   : > { %v730_v59 = vadd.f32 %v729_v58, %v1984_v45  ;;  %v539_v62 = vadd.f32 %v538_v57, %v1922_v60  ;;  %v1736_v63 = vpop.f32.mrb[46].mxu1  ;;  %v540_v0 = vpop.f32.mrb[47].mxu0  ;;  %v810_v5 = vmax.f32 %v535_v51, 0.0 }
 0x142   : > { %v836_v1 = vmax.f32 %v738_v54, 0.0  ;;  %v741_v2 = vadd.f32 %v1736_v63, %v1984_v45  ;;  %v541_v3 = vadd.f32 %v540_v0, %v1925_v61  ;;  %v732_v4 = vpop.f32.mrb[47].mxu1  ;;  %v811_v60 = vmax.f32 %v537_v55, 0.0 }
 0x143   : > { %v830_v6 = vmax.f32 %v730_v59, 0.0  ;;  %v813_v7 = vmax.f32 %v539_v62, 0.0  ;;  %v733_v8 = vadd.f32 %v732_v4, %v1984_v45 }
 0x144   : > { %1191 = vst.msk [vmem:[%s1998_s15 + $0xf0] sm:$0xff] %vm1160_vm2, %v836_v1  ;;  %v839_v9 = vmax.f32 %v741_v2, 0.0  ;;  %v814_v10 = vmax.f32 %v541_v3, 0.0 }
 0x145   : > { %1189 = vst.msk [vmem:[%s1998_s15 + $0xe0] sm:$0xff] %vm1160_vm2, %v830_v6  ;;  %v1554_v11 = vpack.c.bf16 %v813_v7, %v810_v5  ;;  %v833_v12 = vmax.f32 %v733_v8, 0.0 }
 0x146   : > { %1192 = vst.msk [vmem:[%s1998_s15 + $0xf8] sm:$0xff] %vm1160_vm2, %v839_v9  ;;  %v1634_v61 = vpack.c.bf16 %v814_v10, %v811_v60 }
 0x147   : > { %1666 = vst [vmem:[%s1939_s9 + $0x58] sm:$0xff] %v1554_v11   ;;  %1190 = vst.msk [vmem:[%s1998_s15 + $0xe8] sm:$0xff] %vm1160_vm2, %v833_v12 }
 0x148   : > { %1681 = vst [vmem:[%s1944_s12 + $0x58] sm:$0xff] %v1634_v61  }
 0x149 PF: > { %s16_s18 = sadd.s32 1, %s1758_s18  }
 0x14a   : > { %p13_p4 = scmp.ge.s32.totalorder %s16_s18, 4  }
 0x14c   :  { %15 = sbr.rel (!%p13_p4) target bundleno = 1 (0x1), region = 86 }

// kernel: mixed_forward.7
= control target key start
LH: loop header
LB: loop body
LE: loop exit
PB: predicated region body
PF: predicated region fallthrough
CT: control target
= control target key end

     0   :  { %s1727_s18 = smov 0   ;;  %s1729_s19 = smov 0   ;;  %s2473_s0 = inlined_call_operand.vmem [shape: bf16[2,6,10,10,8], index: 0, kind: input, shape index: {}, may-alias: {0,1,2}]   ;;  %s2474_s1 = inlined_call_operand.vmem [shape: bf16[2,6,10,10,8], index: 1, kind: input, shape index: {}, may-alias: {0,1,2}]   ;;  %s2475_s2 = inlined_call_operand.vmem [shape: bf16[2,6,10,10,8], index: 2, kind: input, shape index: {}, may-alias: {0,1,2}]   ;;  %s2476_s3 = inlined_call_operand.vmem [shape: bf16[8,4], index: 3, kind: input, shape index: {}]   ;;  %s2477_s4 = inlined_call_operand.vmem [shape: f32[1,4], index: 4, kind: input, shape index: {}]   ;;  %s2478_s5 = inlined_call_operand.vmem [shape: f32[2,4,8,8,4], index: 5, kind: output, shape index: {}]  }
   0x1   :  { %s1731_s20 = smov 0   ;;  %s1733_s21 = smov 0  }
   0x2   :  { %s1735_s22 = smov 0  }
   0x3 LB: > { %s24_s23 = sadd.s32 1, %s1687_s20  ;;  %s27_s24 = sadd.s32 1, %s1691_s21  ;;  %s1695_s22 = sphi %s1735_s22, %s15_s22   ;;  %s1691_s21 = sphi %s1733_s21, %s2488_s21   ;;  %s1687_s20 = sphi %s1731_s20, %s2487_s20   ;;  %s1683_s19 = sphi %s1729_s19, %s2486_s19   ;;  %s1679_s18 = sphi %s1727_s18, %s2485_s18  }
   0x4   : > { %p25_p0 = scmp.ge.s32.totalorder %s24_s23, 4  ;;  %p1546_p1 = scmp.ge.s32.totalorder %s1695_s22, 1 }
   0x5   : > { %p247_p2 = scmp.lt.s32.totalorder %s1695_s22, 9 }
   0x6   : > { %s2490_s23 = smov (%p25_p0, %s24_s23), 0  ;;  %s2492_s24 = smov (!%p25_p0, %s27_s24), %s1691_s21 }
   0x7   : > { %p248_p3 = pnand %p1546_p1, %p247_p2  ;;  %p29_p4 = scmp.ge.s32.totalorder %s2492_s24, 2 }
   0x8   : > { %v1278_v0 = vld [vmem:[%s2476_s3] sm:$0xf] (!%p248_p3)  ;;  %vm1319_vm0 = vcmask (!%p248_p3), 1043456   ;;  %p303_p5 = scmp.lt.s32.totalorder (!%p248_p3), %s1683_s19, 1  ;;  %p305_p6 = scmp.lt.s32.totalorder (!%p248_p3), %s1679_s18, 5  ;;  %vm511_vm4 = vcmask (!%p248_p3), 1042432  }
   0x9   : > { %s2494_s24 = smov (%p29_p4, %s2492_s24), 0  ;;  %251 = sbr.rel (%p248_p3) target bundleno = 397 (0x18d), region = 40 }
   0xa   : > { %1611 = vmatprep.subr.msk.bf16.mxu0 (!%p248_p3), %vm1319_vm0, %v1278_v0  ;;  %1612 = vmatprep.subr.msk.bf16.mxu1 (!%p248_p3), %vm1319_vm0, %v1278_v0  ;;  %v1321_v1 = vsel (!%p248_p3), %vm1319_vm0, %v1278_v0, 0  ;;  %vm364_vm1 = vsmask.f32 (!%p248_p3), 3328  ;;  %vm365_vm2 = vsmask.f32 (!%p248_p3), 7440  ;;  %vm512_vm5 = vcmask (!%p248_p3), 1046532  }
   0xb   : > { %1600 = vmatpush3.bf16.msra.mxu0 (!%p248_p3), %v1321_v1  ;;  %1610 = vmatpush3.bf16.msra.mxu1 (!%p248_p3), %v1321_v1  ;;  %vm1833_vm3 = vmor (!%p248_p3), %vm364_vm1, %vm365_vm2  ;;  %s312_s10 = sadd.s32 (!%p248_p3), 1, %s1679_s18  ;;  %s323_s25 = sadd.s32 (!%p248_p3), 2, %s1679_s18  ;;  %vm1306_vm7 = vcmask (!%p248_p3), 64512   ;;  %v1583_v40 = vld [vmem:[%s2477_s4] ss:$0 sm:$0xff] (!%p248_p3)  ;;  %vm1396_vm8 = vcmask (!%p248_p3), 31744  }
   0xc   : > { %p1899_p7 = scmp.lt.s32.totalorder (!%p248_p3), %s312_s10, 5  ;;  %vm1944_vm6 = vmor (!%p248_p3), %vm511_vm4, %vm512_vm5  ;;  %p2095_p8 = scmp.lt.s32.totalorder (!%p248_p3), %s323_s25, 5 }
   0xd   : > { %p336_p9 = scmp.lt.s32.totalorder (!%p248_p3), %s1679_s18, 3 }
  0x10   : > { %s2496_s19 = smov (!%p303_p5, %s1683_s19), 1  ;;  %s2498_s10 = smov (!%p1899_p7, %s312_s10), 5 }
  0x11   : > { %s306_s27 = scalar_select %p305_p6, %s1679_s18, 5 }
  0x12   : > { %s1767_s28 = smul.u32 120, %s2496_s19  ;;  %s2500_s25 = smov (!%p2095_p8, %s323_s25), 5 }
  0x13   : > { %s1613_s29 = smul.u32 20, %s306_s27  ;;  %s2502_s18 = smov (!%p336_p9, %s1679_s18), 3 }
  0x14   : > { %s1615_s12 = smul.u32 20, %s2498_s10  ;;  %s1550_s8 = sshll.u32 %s2502_s18, 3 }
  0x15   : > { %s309_s30 = sadd.s32 %s1767_s28, %s1613_s29  ;;  %s1616_s27 = smul.u32 20, %s2500_s25 }
  0x16   : > { %s1547_s6 = sshll.u32 %s309_s30, 2  ;;  %s1974_s13 = sadd.s32 %s1615_s12, %s1767_s28 }
  0x17   : > { %s1773_s9 = scalar_lea.vmem %s2473_s0, %s1547_s6  ;;  %s1548_s14 = sshll.u32 %s1974_s13, 2 }
  0x18   : > { %v1776_v2 = vld [vmem:[%s1773_s9] sm:$0xf]  ;;  %v1780_v4 = vld [vmem:[%s1773_s9 + $0x4] sm:$0x1]  ;;  %v1783_v5 = vld [vmem:[%s1773_s9 + $0x8] sm:$0xf]  ;;  %s1993_s17 = scalar_lea.vmem %s2474_s1, %s1548_s14  ;;  %s330_s29 = sadd.s32 %s1616_s27, %s1767_s28 }
  0x19   : > { %v368_v3 = vshrl.u32 %v1776_v2, 16  ;;  %v1786_v6 = vld [vmem:[%s1773_s9 + $0xc] sm:$0x1]  ;;  %v1789_v7 = vld [vmem:[%s1773_s9 + $0x10] sm:$0xf]  ;;  %v371_v13 = vshll.u32 %v1776_v2, 16 }
  0x1a   : > { %v1792_v8 = vld [vmem:[%s1773_s9 + $0x14] sm:$0x1]  ;;  %v1795_v9 = vld [vmem:[%s1773_s9 + $0x18] sm:$0xf]  ;;  %v1798_v10 = vld [vmem:[%s1773_s9 + $0x20] sm:$0xf]  ;;  %v562_v14 = vmax.bf16 %v1789_v7, %v1783_v5 }
  0x1b   : > { %v1801_v11 = vld [vmem:[%s1773_s9 + $0x28] sm:$0xf]  ;;  %v370_v12 = vrot.slane %v368_v3, 4  ;;  %v563_v15 = vmax.bf16 %v1795_v9, %v1789_v7  ;;  %v564_v16 = vmax.bf16 %v1798_v10, %v1795_v9  ;;  %v373_v18 = vrot.slane %v371_v13, 5  ;;  %v1820_v26 = vld [vmem:[%s1773_s9 + $0x1c] sm:$0x1] }
  0x1c   : > { %v565_v17 = vmax.bf16 %v1801_v11, %v1798_v10  ;;  %v377_v19 = vshll.u32 %v1780_v4, 16  ;;  %v382_v20 = vshrl.u32 %v1783_v5, 16  ;;  %v385_v21 = vshll.u32 %v1783_v5, 16  ;;  %v1829_v39 = vld [vmem:[%s1773_s9 + $0x24] sm:$0x1]  ;;  %s1549_s28 = sshll.u32 %s330_s29, 2 }
  0x1d   : > { %v391_v22 = vshll.u32 %v1786_v6, 16  ;;  %v396_v23 = vshrl.u32 %v1789_v7, 16  ;;  %v399_v24 = vshll.u32 %v1789_v7, 16  ;;  %v405_v25 = vshll.u32 %v1792_v8, 16  ;;  %v1845_v53 = vld [vmem:[%s1773_s9 + $0x2c] sm:$0x1]  ;;  %s2176_s7 = scalar_lea.vmem %s2475_s2, %s1549_s28 }
  0x1e   : > { %v374_v27 = vor.u32 %v373_v18, %v370_v12  ;;  %v1822_v28 = vrot.slane %v377_v19, 5  ;;  %v384_v29 = vrot.slane %v382_v20, 4  ;;  %v387_v30 = vrot.slane %v385_v21, 5  ;;  %v1854_v58 = vld [vmem:[%s1773_s9 + $0x30] sm:$0xf] }
  0x1f   : > { %v393_v31 = vrot.slane %v391_v22, 5  ;;  %v398_v32 = vrot.slane %v396_v23, 4  ;;  %v401_v33 = vrot.slane %v399_v24, 5  ;;  %v407_v34 = vrot.slane %v405_v25, 5  ;;  %v1857_v59 = vld [vmem:[%s1773_s9 + $0x34] sm:$0x1] }
  0x20   : > { %v1824_v35 = vrot.slane %v374_v27, 4  ;;  %v388_v36 = vor.u32 %v387_v30, %v384_v29  ;;  %v410_v37 = vshrl.u32 %v1795_v9, 16  ;;  %v413_v38 = vshll.u32 %v1795_v9, 16  ;;  %v1875_v20 = vld [vmem:[%s1773_s9 + $0x38] sm:$0xf] }
  0x21   : > { %v402_v41 = vor.u32 %v401_v33, %v398_v32  ;;  %v419_v42 = vshll.u32 %v1820_v26, 16  ;;  %v424_v43 = vshrl.u32 %v1798_v10, 16  ;;  %v427_v44 = vshll.u32 %v1798_v10, 16  ;;  %v1885_v24 = vld [vmem:[%s1773_s9 + $0x3c] sm:$0x1] }
  0x22   : > { %v380_v45 = vsel %vm1833_vm3, %v1824_v35, %v1822_v28  ;;  %v389_v46 = vrot.slane %v388_v36, 4  ;;  %v412_v47 = vrot.slane %v410_v37, 4  ;;  %v415_v48 = vrot.slane %v413_v38, 5 }
  0x23   : > { %v403_v49 = vrot.slane %v402_v41, 4  ;;  %v421_v50 = vrot.slane %v419_v42, 5  ;;  %v426_v51 = vrot.slane %v424_v43, 4  ;;  %v429_v52 = vrot.slane %v427_v44, 5 }
  0x24   : > { %v1849_v54 = vsel %vm1833_vm3, %v389_v46, %v393_v31  ;;  %v416_v55 = vor.u32 %v415_v48, %v412_v47  ;;  %v433_v56 = vshll.u32 %v1829_v39, 16  ;;  %v438_v57 = vshrl.u32 %v1801_v11, 16 }
  0x25   : > { %v1860_v60 = vmax.bf16 %v562_v14, %v1849_v54  ;;  %v1864_v61 = vsel %vm1833_vm3, %v403_v49, %v407_v34  ;;  %v430_v62 = vor.u32 %v429_v52, %v426_v51  ;;  %v441_v63 = vshll.u32 %v1801_v11, 16 }
  0x26   : > { %v1868_v0 = vmax.bf16 %v563_v15, %v1864_v61  ;;  %v417_v1 = vrot.slane %v416_v55, 4  ;;  %v435_v3 = vrot.slane %v433_v56, 5  ;;  %v440_v12 = vrot.slane %v438_v57, 4 }
  0x27   : > { %v600_v13 = vmax.bf16 %v1860_v60, %v1864_v61  ;;  %v431_v14 = vrot.slane %v430_v62, 4  ;;  %v443_v18 = vrot.slane %v441_v63, 5  ;;  %v447_v19 = vshll.u32 %v1845_v53, 16 }
  0x28   : > { %v1879_v15 = vsel %vm1833_vm3, %v417_v1, %v421_v50  ;;  %v452_v21 = vshrl.u32 %v1854_v58, 16  ;;  %v455_v22 = vshll.u32 %v1854_v58, 16  ;;  %v461_v23 = vshll.u32 %v1857_v59, 16 }
  0x29   : > { %v587_v25 = vmax.bf16 %v564_v16, %v1879_v15  ;;  %v601_v27 = vmax.bf16 %v1868_v0, %v1879_v15  ;;  %v1895_v28 = vsel %vm1833_vm3, %v431_v14, %v435_v3  ;;  %v444_v29 = vor.u32 %v443_v18, %v440_v12 }
  0x2a   : > { %v588_v30 = vmax.bf16 %v565_v17, %v1895_v28  ;;  %v449_v16 = vrot.slane %v447_v19, 5  ;;  %v454_v31 = vrot.slane %v452_v21, 4  ;;  %v457_v32 = vrot.slane %v455_v22, 5 }
  0x2b   : > { %v602_v33 = vmax.bf16 %v587_v25, %v1895_v28  ;;  %v445_v34 = vrot.slane %v444_v29, 4  ;;  %v463_v35 = vrot.slane %v461_v23, 5  ;;  %v466_v36 = vshrl.u32 %v1875_v20, 16 }
  0x2c   : > { %v458_v37 = vor.u32 %v457_v32, %v454_v31  ;;  %v469_v38 = vshll.u32 %v1875_v20, 16  ;;  %v475_v41 = vshll.u32 %v1885_v24, 16  ;;  %v487_v42 = vmax.bf16 %v380_v45, %v1776_v2 }
  0x2d   : > { %v1914_v17 = vsel %vm1833_vm3, %v445_v34, %v449_v16  ;;  %v468_v43 = vrot.slane %v466_v36, 4  ;;  %v488_v44 = vmax.bf16 %v1849_v54, %v1783_v5  ;;  %v489_v46 = vmax.bf16 %v1864_v61, %v1789_v7 }
  0x2e   : > { %v603_v47 = vmax.bf16 %v588_v30, %v1914_v17  ;;  %v459_v48 = vrot.slane %v458_v37, 4  ;;  %v471_v45 = vrot.slane %v469_v38, 5  ;;  %v477_v49 = vrot.slane %v475_v41, 5  ;;  %v361_v37 = vld [vmem:[%s1773_s9 + $0x44] sm:$0x1] }
  0x2f   : > { %v490_v50 = vmax.bf16 %v1879_v15, %v1795_v9  ;;  %v491_v51 = vmax.bf16 %v1895_v28, %v1798_v10  ;;  %v492_v52 = vmax.bf16 %v1914_v17, %v1801_v11  ;;  %v1553_v54 = vrot.slane %v1776_v2, 9 }
  0x30   : > { %v1936_v55 = vsel %vm1833_vm3, %v459_v48, %v463_v35  ;;  %v472_v56 = vor.u32 %v471_v45, %v468_v43  ;;  %v516_v57 = vrot.slane %v1780_v4, 5  ;;  %v1554_v60 = vrot.slane %v1783_v5, 9 }
  0x31   : > { %v493_v61 = vmax.bf16 %v1936_v55, %v1854_v58  ;;  %v520_v2 = vrot.slane %v1786_v6, 5  ;;  %v1555_v63 = vrot.slane %v1789_v7, 9  ;;  %v524_v0 = vrot.slane %v1792_v8, 5 }
  0x32   : > { %v473_v1 = vrot.slane %v472_v56, 4  ;;  %v517_v4 = vsel %vm1944_vm6, %v1553_v54, %v516_v57  ;;  %v1556_v5 = vrot.slane %v1795_v9, 9  ;;  %v528_v3 = vrot.slane %v1820_v26, 5 }
  0x33   : > { %v521_v12 = vsel %vm1944_vm6, %v1554_v60, %v520_v2  ;;  %v525_v6 = vsel %vm1944_vm6, %v1555_v63, %v524_v0  ;;  %v1557_v7 = vrot.slane %v1798_v10, 9  ;;  %v532_v8 = vrot.slane %v1829_v39, 5 }
  0x34   : > { %v1964_v14 = vsel %vm1833_vm3, %v473_v1, %v477_v49  ;;  %v608_v18 = vmax.bf16 %v600_v13, %v521_v12  ;;  %v609_v19 = vmax.bf16 %v601_v27, %v525_v6  ;;  %v529_v9 = vsel %vm1944_vm6, %v1556_v5, %v528_v3  ;;  %v2002_v1 = vld [vmem:[%s1993_s17] sm:$0xf] }
  0x35   : > { %v494_v26 = vmax.bf16 %v1964_v14, %v1875_v20  ;;  %v610_v15 = vmax.bf16 %v602_v33, %v529_v9  ;;  %v533_v21 = vsel %vm1944_vm6, %v1557_v7, %v532_v8  ;;  %v1558_v10 = vrot.slane %v1801_v11, 9  ;;  %v360_v33 = vld [vmem:[%s1773_s9 + $0x40] sm:$0xf]  ;;  %v2010_v7 = vld [vmem:[%s1993_s17 + $0x10] sm:$0xf] }
  0x36   : > { %v631_v39 = vmax.bf16 %v608_v18, %v525_v6  ;;  %v632_v22 = vmax.bf16 %v609_v19, %v529_v9  ;;  %v611_v13 = vmax.bf16 %v603_v47, %v533_v21  ;;  %v536_v23 = vrot.slane %v1845_v53, 5 }
  0x37   : > { %v633_v25 = vmax.bf16 %v610_v15, %v533_v21  ;;  %v1559_v27 = vrot.slane %v1854_v58, 9  ;;  %v540_v28 = vrot.slane %v1857_v59, 5  ;;  %v1560_v29 = vrot.slane %v1875_v20, 9 }
  0x38   : > { %v537_v30 = vsel %vm1944_vm6, %v1558_v10, %v536_v23  ;;  %v544_v16 = vrot.slane %v1885_v24, 5  ;;  %v554_v31 = vmax.bf16 %v517_v4, %v487_v42  ;;  %v555_v32 = vmax.bf16 %v521_v12, %v488_v44  ;;  %v2005_v4 = vld [vmem:[%s1993_s17 + $0x8] sm:$0xf]  ;;  %v2023_v10 = vld [vmem:[%s1993_s17 + $0x18] sm:$0xf] }
  0x39   : > { %v634_v34 = vmax.bf16 %v611_v13, %v537_v30  ;;  %v541_v53 = vsel %vm1944_vm6, %v1559_v27, %v540_v28  ;;  %v556_v35 = vmax.bf16 %v525_v6, %v489_v46  ;;  %v557_v36 = vmax.bf16 %v529_v9, %v490_v50 }
  0x3a   : > { %v545_v59 = vsel %vm1944_vm6, %v1560_v29, %v544_v16  ;;  %v646_v38 = vmax.bf16 %v631_v39, %v554_v31  ;;  %v647_v41 = vmax.bf16 %v632_v22, %v555_v32  ;;  %v558_v43 = vmax.bf16 %v533_v21, %v491_v51  ;;  %v2043_v31 = vld [vmem:[%s1993_s17 + $0x4] sm:$0x1] }
  0x3b   : > { %v648_v47 = vmax.bf16 %v633_v25, %v556_v35  ;;  %v649_v48 = vmax.bf16 %v634_v34, %v557_v36  ;;  %v559_v24 = vmax.bf16 %v537_v30, %v492_v52  ;;  %v560_v42 = vmax.bf16 %v541_v53, %v493_v61  ;;  %v2053_v34 = vld [vmem:[%s1993_s17 + $0x28] sm:$0xf] }
  0x3c   : > { %v561_v44 = vmax.bf16 %v545_v59, %v494_v26  ;;  %v566_v46 = vmax.bf16 %v558_v43, %v1801_v11  ;;  %v571_v45 = vshrl.u32 %v360_v33, 16  ;;  %v574_v49 = vshll.u32 %v360_v33, 16 }
  0x3d   : > { %v567_v50 = vmax.bf16 %v559_v24, %v1854_v58  ;;  %v568_v51 = vmax.bf16 %v560_v42, %v1875_v20  ;;  %v580_v54 = vshll.u32 %v361_v37, 16  ;;  %v1561_v52 = vrot.slane %v360_v33, 9 }
  0x3e   : > { %v569_v56 = vmax.bf16 %v561_v44, %v360_v33  ;;  %v573_v57 = vrot.slane %v571_v45, 4  ;;  %v576_v60 = vrot.slane %v574_v49, 5  ;;  %v589_v61 = vmax.bf16 %v566_v46, %v1914_v17 }
  0x3f   : > { %v582_v2 = vrot.slane %v580_v54, 5  ;;  %v590_v63 = vmax.bf16 %v567_v50, %v1936_v55  ;;  %v591_v11 = vmax.bf16 %v568_v51, %v1964_v14  ;;  %v597_v0 = vrot.slane %v361_v37, 5 }
  0x40   : > { %v577_v5 = vor.u32 %v576_v60, %v573_v57  ;;  %v604_v3 = vmax.bf16 %v589_v61, %v537_v30  ;;  %v674_v12 = vmax.bf16 %v2002_v1, %v646_v38  ;;  %v675_v6 = vmax.bf16 %v2005_v4, %v647_v41  ;;  %v2068_v41 = vld [vmem:[%s1993_s17 + $0x14] sm:$0x1] }
  0x41   : > { %v2014_v17 = vsel %vm1944_vm6, %v1561_v52, %v597_v0  ;;  %v605_v8 = vmax.bf16 %v590_v63, %v541_v53  ;;  %v606_v18 = vmax.bf16 %v591_v11, %v545_v59  ;;  %v676_v19 = vmax.bf16 %v2010_v7, %v648_v47  ;;  %v2073_v47 = vld [vmem:[%s1993_s17 + $0x30] sm:$0xf] }
  0x42   : > { %v578_v9 = vrot.slane %v577_v5, 4  ;;  %v612_v26 = vmax.bf16 %v604_v3, %v1854_v58  ;;  %v802_v15 = vmax.bf16 %v674_v12, %v2005_v4  ;;  %v2020_v21 = vmax.bf16 %v675_v6, %v2010_v7  ;;  %v2100_v3 = vld [vmem:[%s1993_s17 + $0x24] sm:$0x1] }
  0x43   : > { %v613_v39 = vmax.bf16 %v605_v8, %v1875_v20  ;;  %v614_v22 = vmax.bf16 %v606_v18, %v360_v33  ;;  %v677_v13 = vmax.bf16 %v2023_v10, %v649_v48  ;;  %v2028_v23 = vmax.bf16 %v676_v19, %v2023_v10  ;;  %v2037_v20 = vld [vmem:[%s1993_s17 + $0x20] sm:$0xf] }
  0x44   : > { %v583_v58 = vsel %vm1833_vm3, %v578_v9, %v582_v2  ;;  %v635_v25 = vmax.bf16 %v612_v26, %v1936_v55  ;;  %v866_v27 = vmax.bf16 %v802_v15, %v2010_v7  ;;  %v867_v28 = vmax.bf16 %v2020_v21, %v2023_v10  ;;  %v2132_v21 = vld [vmem:[%s1993_s17 + $0x34] sm:$0x1] }
  0x45   : > { %v2039_v29 = vmax.bf16 %v583_v58, %v569_v56  ;;  %v636_v30 = vmax.bf16 %v613_v39, %v1964_v14  ;;  %v637_v16 = vmax.bf16 %v614_v22, %v583_v58  ;;  %v2046_v32 = vmax.bf16 %v677_v13, %v2037_v20  ;;  %v2088_v56 = vld [vmem:[%s1993_s17 + $0x1c] sm:$0x1] }
  0x46   : > { %v2048_v55 = vmax.bf16 %v635_v25, %v541_v53  ;;  %v868_v33 = vmax.bf16 %v2028_v23, %v2037_v20  ;;  %v683_v35 = vshrl.u32 %v2002_v1, 16  ;;  %v686_v36 = vshll.u32 %v2002_v1, 16  ;;  %v2065_v53 = vld [vmem:[%s1993_s17 + $0xc] sm:$0x1] }
  0x47   : > { %v607_v14 = vmax.bf16 %v2014_v17, %v2039_v29  ;;  %v2059_v37 = vmax.bf16 %v636_v30, %v545_v59  ;;  %v2062_v38 = vmax.bf16 %v637_v16, %v2014_v17  ;;  %v869_v43 = vmax.bf16 %v2046_v32, %v2053_v34 }
  0x48   : > { %v678_v48 = vmax.bf16 %v2037_v20, %v2048_v55  ;;  %v685_v24 = vrot.slane %v683_v35, 4  ;;  %v688_v42 = vrot.slane %v686_v36, 5  ;;  %v692_v59 = vshll.u32 %v2043_v31, 16 }
  0x49   : > { %v679_v44 = vmax.bf16 %v2053_v34, %v2059_v37  ;;  %v680_v46 = vmax.bf16 %v2073_v47, %v2062_v38  ;;  %v697_v45 = vshrl.u32 %v2005_v4, 16  ;;  %v700_v49 = vshll.u32 %v2005_v4, 16 }
  0x4a   : > { %v689_v50 = vor.u32 %v688_v42, %v685_v24  ;;  %v694_v51 = vrot.slane %v692_v59, 5  ;;  %v706_v54 = vshll.u32 %v2065_v53, 16  ;;  %v711_v52 = vshrl.u32 %v2010_v7, 16  ;;  %v2119_v59 = vld [vmem:[%s1993_s17 + $0x2c] sm:$0x1] }
  0x4b   : > { %v699_v57 = vrot.slane %v697_v45, 4  ;;  %v702_v60 = vrot.slane %v700_v49, 5  ;;  %v714_v61 = vshll.u32 %v2010_v7, 16  ;;  %v720_v2 = vshll.u32 %v2068_v41, 16 }
  0x4c   : > { %v690_v63 = vrot.slane %v689_v50, 4  ;;  %v708_v11 = vrot.slane %v706_v54, 5  ;;  %v713_v0 = vrot.slane %v711_v52, 4  ;;  %v725_v5 = vshrl.u32 %v2023_v10, 16 }
  0x4d   : > { %v703_v12 = vor.u32 %v702_v60, %v699_v57  ;;  %v716_v6 = vrot.slane %v714_v61, 5  ;;  %v722_v8 = vrot.slane %v720_v2, 5  ;;  %v728_v18 = vshll.u32 %v2023_v10, 16 }
  0x4e   : > { %v695_v19 = vsel %vm1833_vm3, %v690_v63, %v694_v51  ;;  %v727_v9 = vrot.slane %v725_v5, 4  ;;  %v734_v26 = vshll.u32 %v2088_v56, 16  ;;  %v739_v15 = vshrl.u32 %v2037_v20, 16 }
  0x4f   : > { %v874_v39 = vmax.bf16 %v866_v27, %v695_v19  ;;  %v704_v22 = vrot.slane %v703_v12, 4  ;;  %v717_v13 = vor.u32 %v716_v6, %v713_v0  ;;  %v730_v58 = vrot.slane %v728_v18, 5 }
  0x50   : > { %v736_v25 = vrot.slane %v734_v26, 5  ;;  %v741_v30 = vrot.slane %v739_v15, 4  ;;  %v742_v16 = vshll.u32 %v2037_v20, 16  ;;  %v748_v35 = vshll.u32 %v2100_v3, 16 }
  0x51   : > { %v709_v36 = vsel %vm1833_vm3, %v704_v22, %v708_v11  ;;  %v718_v24 = vrot.slane %v717_v13, 4  ;;  %v731_v42 = vor.u32 %v730_v58, %v727_v9  ;;  %v753_v27 = vshrl.u32 %v2053_v34, 16 }
  0x52   : > { %v875_v45 = vmax.bf16 %v867_v28, %v709_v36  ;;  %v897_v49 = vmax.bf16 %v874_v39, %v709_v36  ;;  %v744_v50 = vrot.slane %v742_v16, 5  ;;  %v750_v51 = vrot.slane %v748_v35, 5 }
  0x53   : > { %v723_v54 = vsel %vm1833_vm3, %v718_v24, %v722_v8  ;;  %v732_v52 = vrot.slane %v731_v42, 4  ;;  %v755_v57 = vrot.slane %v753_v27, 4  ;;  %v756_v60 = vshll.u32 %v2053_v34, 16 }
  0x54   : > { %v876_v61 = vmax.bf16 %v868_v33, %v723_v54  ;;  %v898_v2 = vmax.bf16 %v875_v45, %v723_v54  ;;  %v912_v63 = vmax.bf16 %v897_v49, %v723_v54  ;;  %v745_v11 = vor.u32 %v744_v50, %v741_v30 }
  0x55   : > { %v737_v28 = vsel %vm1833_vm3, %v732_v52, %v736_v25  ;;  %v758_v0 = vrot.slane %v756_v60, 5  ;;  %v762_v5 = vshll.u32 %v2119_v59, 16  ;;  %v767_v12 = vshrl.u32 %v2073_v47, 16 }
  0x56   : > { %v877_v23 = vmax.bf16 %v869_v43, %v737_v28  ;;  %v899_v33 = vmax.bf16 %v876_v61, %v737_v28  ;;  %v913_v6 = vmax.bf16 %v898_v2, %v737_v28  ;;  %v746_v8 = vrot.slane %v745_v11, 4 }
  0x57   : > { %v759_v18 = vor.u32 %v758_v0, %v755_v57  ;;  %v764_v19 = vrot.slane %v762_v5, 5  ;;  %v769_v9 = vrot.slane %v767_v12, 4  ;;  %v770_v26 = vshll.u32 %v2073_v47, 16  ;;  %v2198_v0 = vld [vmem:[%s2176_s7] sm:$0xf] }
  0x58   : > { %v751_v15 = vsel %vm1833_vm3, %v746_v8, %v750_v51  ;;  %v776_v39 = vshll.u32 %v2132_v21, 16  ;;  %v1563_v22 = vrot.slane %v2002_v1, 9  ;;  %v828_v13 = vrot.slane %v2043_v31, 5 }
  0x59   : > { %v900_v32 = vmax.bf16 %v877_v23, %v751_v15  ;;  %v914_v43 = vmax.bf16 %v899_v33, %v751_v15  ;;  %v760_v58 = vrot.slane %v759_v18, 4  ;;  %v772_v25 = vrot.slane %v770_v26, 5 }
  0x5a   : > { %v778_v30 = vrot.slane %v776_v39, 5  ;;  %v806_v16 = vmax.bf16 %v751_v15, %v678_v48  ;;  %v829_v35 = vsel %vm1944_vm6, %v1563_v22, %v828_v13  ;;  %v1564_v36 = vrot.slane %v2005_v4, 9  ;;  %v2220_v22 = vld [vmem:[%s2176_s7 + $0x18] sm:$0xf] }
  0x5b   : > { %v2156_v1 = vsel %vm1833_vm3, %v760_v58, %v764_v19  ;;  %v773_v31 = vor.u32 %v772_v25, %v769_v9  ;;  %v920_v24 = vmax.bf16 %v912_v63, %v829_v35  ;;  %v832_v42 = vrot.slane %v2065_v53, 5  ;;  %v2212_v19 = vld [vmem:[%s2176_s7 + $0x10] sm:$0xf] }
  0x5c   : > { %v915_v27 = vmax.bf16 %v900_v32, %v2156_v1  ;;  %v807_v55 = vmax.bf16 %v2156_v1, %v679_v44  ;;  %v1565_v48 = vrot.slane %v2010_v7, 9  ;;  %v836_v4 = vrot.slane %v2068_v41, 5  ;;  %v2224_v32 = vld [vmem:[%s2176_s7 + $0x4] sm:$0x1] }
  0x5d   : > { %v774_v45 = vrot.slane %v773_v31, 4  ;;  %v833_v49 = vsel %vm1944_vm6, %v1564_v36, %v832_v42  ;;  %v1566_v50 = vrot.slane %v2023_v10, 9  ;;  %v840_v53 = vrot.slane %v2088_v56, 5  ;;  %v2238_v36 = vld [vmem:[%s2176_s7 + $0x20] sm:$0xf] }
  0x5e   : > { %v921_v51 = vmax.bf16 %v913_v6, %v833_v49  ;;  %v943_v54 = vmax.bf16 %v920_v24, %v833_v49  ;;  %v837_v52 = vsel %vm1944_vm6, %v1565_v48, %v836_v4  ;;  %v1567_v37 = vrot.slane %v2037_v20, 9  ;;  %v2204_v6 = vld [vmem:[%s2176_s7 + $0x8] sm:$0xf] }
  0x5f   : > { %v2180_v7 = vsel %vm1833_vm3, %v774_v45, %v778_v30  ;;  %v922_v10 = vmax.bf16 %v914_v43, %v837_v52  ;;  %v841_v41 = vsel %vm1944_vm6, %v1566_v50, %v840_v53  ;;  %v844_v44 = vrot.slane %v2100_v3, 5  ;;  %v2233_v30 = vld [vmem:[%s2176_s7 + $0xc] sm:$0x1]  ;;  %v2253_v50 = vld [vmem:[%s2176_s7 + $0x14] sm:$0x1] }
  0x60   : > { %v2189_v20 = vmax.bf16 %v2180_v7, %v680_v46  ;;  %v944_v56 = vmax.bf16 %v921_v51, %v837_v52  ;;  %v958_v57 = vmax.bf16 %v943_v54, %v837_v52  ;;  %v923_v60 = vmax.bf16 %v915_v27, %v841_v41 }
  0x61   : > { %v945_v61 = vmax.bf16 %v922_v10, %v841_v41  ;;  %v845_v2 = vsel %vm1944_vm6, %v1567_v37, %v844_v44  ;;  %v1568_v63 = vrot.slane %v2053_v34, 9  ;;  %v848_v11 = vrot.slane %v2119_v59, 5  ;;  %v2261_v44 = vld [vmem:[%s2176_s7 + $0x1c] sm:$0x1] }
  0x62   : > { %v959_v3 = vmax.bf16 %v944_v56, %v841_v41  ;;  %v946_v28 = vmax.bf16 %v923_v60, %v845_v2  ;;  %v1569_v38 = vrot.slane %v2073_v47, 9  ;;  %v852_v46 = vrot.slane %v2132_v21, 5 }
  0x63   : > { %v960_v5 = vmax.bf16 %v945_v61, %v845_v2  ;;  %v849_v12 = vsel %vm1944_vm6, %v1568_v63, %v848_v11  ;;  %v870_v23 = vmax.bf16 %v845_v2, %v806_v16  ;;  %v986_v33 = vmax.bf16 %v2198_v0, %v958_v57 }
  0x64   : > { %v961_v59 = vmax.bf16 %v946_v28, %v849_v12  ;;  %v2208_v8 = vsel %vm1944_vm6, %v1569_v38, %v852_v46  ;;  %v871_v21 = vmax.bf16 %v849_v12, %v807_v55  ;;  %v987_v18 = vmax.bf16 %v2204_v6, %v959_v3 }
  0x65   : > { %v872_v9 = vmax.bf16 %v2208_v8, %v2189_v20  ;;  %v878_v26 = vmax.bf16 %v870_v23, %v2053_v34  ;;  %v1114_v15 = vmax.bf16 %v986_v33, %v2204_v6  ;;  %v988_v39 = vmax.bf16 %v2212_v19, %v960_v5  ;;  %v673_v20 = vld [vmem:[%s1993_s17 + $0x4c] sm:$0x1] }
  0x66   : > { %v879_v13 = vmax.bf16 %v871_v21, %v2073_v47  ;;  %v1115_v43 = vmax.bf16 %v987_v18, %v2212_v19  ;;  %v2228_v58 = vmax.bf16 %v2220_v22, %v961_v59  ;;  %v995_v25 = vshrl.u32 %v2198_v0, 16 }
  0x67   : > { %v901_v34 = vmax.bf16 %v878_v26, %v2156_v1  ;;  %v1178_v16 = vmax.bf16 %v1114_v15, %v2212_v19  ;;  %v1116_v35 = vmax.bf16 %v988_v39, %v2220_v22  ;;  %v998_v31 = vshll.u32 %v2198_v0, 16 }
  0x68   : > { %v902_v24 = vmax.bf16 %v879_v13, %v2180_v7  ;;  %v1179_v42 = vmax.bf16 %v1115_v43, %v2220_v22  ;;  %v1117_v27 = vmax.bf16 %v2228_v58, %v2238_v36  ;;  %v997_v55 = vrot.slane %v995_v25, 4 }
  0x69   : > { %v916_v1 = vmax.bf16 %v901_v34, %v849_v12  ;;  %v2246_v48 = vmax.bf16 %v1116_v35, %v2238_v36  ;;  %v1000_v4 = vrot.slane %v998_v31, 5  ;;  %v1004_v45 = vshll.u32 %v2224_v32, 16  ;;  %v2270_v12 = vld [vmem:[%s2176_s7 + $0x24] sm:$0x1] }
  0x6a   : > { %v2250_v49 = vmax.bf16 %v902_v24, %v2208_v8  ;;  %v1009_v53 = vshrl.u32 %v2204_v6, 16  ;;  %v1012_v51 = vshll.u32 %v2204_v6, 16  ;;  %v1018_v54 = vshll.u32 %v2233_v30, 16 }
  0x6b   : > { %v924_v52 = vmax.bf16 %v916_v1, %v2073_v47  ;;  %v1001_v37 = vor.u32 %v1000_v4, %v997_v55  ;;  %v1006_v10 = vrot.slane %v1004_v45, 5  ;;  %v1023_v41 = vshrl.u32 %v2212_v19, 16 }
  0x6c   : > { %v1011_v56 = vrot.slane %v1009_v53, 4  ;;  %v1014_v57 = vrot.slane %v1012_v51, 5  ;;  %v1020_v60 = vrot.slane %v1018_v54, 5  ;;  %v1026_v61 = vshll.u32 %v2212_v19, 16 }
  0x6d   : > { %v947_v2 = vmax.bf16 %v924_v52, %v2180_v7  ;;  %v1002_v63 = vrot.slane %v1001_v37, 4  ;;  %v1025_v11 = vrot.slane %v1023_v41, 4  ;;  %v1032_v3 = vshll.u32 %v2253_v50, 16 }
  0x6e   : > { %v1015_v28 = vor.u32 %v1014_v57, %v1011_v56  ;;  %v1028_v47 = vrot.slane %v1026_v61, 5  ;;  %v1037_v38 = vshrl.u32 %v2220_v22, 16  ;;  %v1040_v46 = vshll.u32 %v2220_v22, 16 }
  0x6f   : > { %v962_v5 = vmax.bf16 %v947_v2, %v2208_v8  ;;  %v1007_v23 = vsel %vm1833_vm3, %v1002_v63, %v1006_v10  ;;  %v1034_v33 = vrot.slane %v1032_v3, 5  ;;  %v1046_v7 = vshll.u32 %v2261_v44, 16 }
  0x70   : > { %v1186_v59 = vmax.bf16 %v1178_v16, %v1007_v23  ;;  %v1016_v21 = vrot.slane %v1015_v28, 4  ;;  %v1029_v18 = vor.u32 %v1028_v47, %v1025_v11  ;;  %v1039_v26 = vrot.slane %v1037_v38, 4  ;;  %v362_v28 = vld [vmem:[%s1773_s9 + $0x48] sm:$0xf] }
  0x71   : > { %v2276_v15 = vmax.bf16 %v2238_v36, %v962_v5  ;;  %v1042_v39 = vrot.slane %v1040_v46, 5  ;;  %v1048_v13 = vrot.slane %v1046_v7, 5  ;;  %v1051_v43 = vshrl.u32 %v2238_v36, 16  ;;  %v363_v5 = vld [vmem:[%s1773_s9 + $0x4c] sm:$0x1]  ;;  %s1551_s9 = sshll.u32 %s2496_s19, 5 }
  0x72   : > { %v1021_v25 = vsel %vm1833_vm3, %v1016_v21, %v1020_v60  ;;  %v1030_v34 = vrot.slane %v1029_v18, 4  ;;  %v1054_v35 = vshll.u32 %v2238_v36, 16  ;;  %v1060_v31 = vshll.u32 %v2270_v12, 16  ;;  %s340_s10 = sadd.s32 %s1551_s9, %s1550_s8 }
  0x73   : > { %v1187_v24 = vmax.bf16 %v1179_v42, %v1021_v25  ;;  %v1209_v16 = vmax.bf16 %v1186_v59, %v1021_v25  ;;  %v1043_v55 = vor.u32 %v1042_v39, %v1039_v26  ;;  %v1053_v1 = vrot.slane %v1051_v43, 4  ;;  %s1552_s13 = sshll.u32 %s340_s10, 3 }
  0x74   : > { %v1035_v4 = vsel %vm1833_vm3, %v1030_v34, %v1034_v33  ;;  %v1056_v45 = vrot.slane %v1054_v35, 5  ;;  %v1062_v53 = vrot.slane %v1060_v31, 5  ;;  %v1573_v51 = vrot.slane %v2198_v0, 9  ;;  %v668_v34 = vld [vmem:[%s1993_s17 + $0x38] sm:$0xf]  ;;  %s342_s16 = scalar_lea.vmem %s2478_s5, %s1552_s13 }
  0x75   : > { %v1188_v54 = vmax.bf16 %v2246_v48, %v1035_v4  ;;  %v1210_v52 = vmax.bf16 %v1187_v24, %v1035_v4  ;;  %v1224_v37 = vmax.bf16 %v1209_v16, %v1035_v4  ;;  %v1044_v10 = vrot.slane %v1043_v55, 4 }
  0x76   : > { %v1057_v41 = vor.u32 %v1056_v45, %v1053_v1  ;;  %v1140_v56 = vrot.slane %v2224_v32, 5  ;;  %v1574_v42 = vrot.slane %v2204_v6, 9  ;;  %v1144_v57 = vrot.slane %v2233_v30, 5  ;;  %v2336_v45 = vld [vmem:[%s1993_s17 + $0x40] sm:$0xf] }
  0x77   : > { %v1049_v60 = vsel %vm1833_vm3, %v1044_v10, %v1048_v13  ;;  %v1575_v61 = vrot.slane %v2212_v19, 9  ;;  %v1148_v0 = vrot.slane %v2253_v50, 5  ;;  %v1576_v48 = vrot.slane %v2220_v22, 9 }
  0x78   : > { %v1181_v2 = vmax.bf16 %v1117_v27, %v1049_v60  ;;  %v1211_v32 = vmax.bf16 %v1188_v54, %v1049_v60  ;;  %v1225_v6 = vmax.bf16 %v1210_v52, %v1049_v60  ;;  %v1058_v63 = vrot.slane %v1057_v41, 4  ;;  %v671_v52 = vld [vmem:[%s1993_s17 + $0x44] sm:$0x1] }
  0x79   : > { %v1141_v30 = vsel %vm1944_vm6, %v1573_v51, %v1140_v56  ;;  %v1145_v19 = vsel %vm1944_vm6, %v1574_v42, %v1144_v57  ;;  %v1149_v50 = vsel %vm1944_vm6, %v1575_v61, %v1148_v0  ;;  %v1152_v22 = vrot.slane %v2261_v44, 5  ;;  %v2346_v61 = vld [vmem:[%s1993_s17 + $0x48] sm:$0xf] }
  0x7a   : > { %v2307_v11 = vsel %vm1833_vm3, %v1058_v63, %v1062_v53  ;;  %v1232_v58 = vmax.bf16 %v1224_v37, %v1141_v30  ;;  %v1233_v27 = vmax.bf16 %v1225_v6, %v1145_v19  ;;  %v1577_v3 = vrot.slane %v2238_v36, 9 }
  0x7b   : > { %v1189_v47 = vmax.bf16 %v1181_v2, %v2307_v11  ;;  %v1226_v38 = vmax.bf16 %v1211_v32, %v2307_v11  ;;  %v1118_v46 = vmax.bf16 %v2307_v11, %v2276_v15  ;;  %v1153_v44 = vsel %vm1944_vm6, %v1576_v48, %v1152_v22 }
  0x7c   : > { %v1255_v23 = vmax.bf16 %v1232_v58, %v1145_v19  ;;  %v1256_v33 = vmax.bf16 %v1233_v27, %v1149_v50  ;;  %v1156_v7 = vrot.slane %v2270_v12, 5  ;;  %v615_v36 = vmax.bf16 %v607_v14, %v362_v28  ;;  %v669_v12 = vld [vmem:[%s1993_s17 + $0x3c] sm:$0x1] }
  0x7d   : > { %v1234_v59 = vmax.bf16 %v1226_v38, %v1149_v50  ;;  %v2322_v21 = vmax.bf16 %v1189_v47, %v1153_v44  ;;  %v617_v18 = vshrl.u32 %v362_v28, 16  ;;  %v620_v26 = vshll.u32 %v362_v28, 16 }
  0x7e   : > { %v1270_v39 = vmax.bf16 %v1255_v23, %v1149_v50  ;;  %v1271_v13 = vmax.bf16 %v1256_v33, %v1153_v44  ;;  %v2326_v43 = vsel %vm1944_vm6, %v1577_v3, %v1156_v7  ;;  %v626_v25 = vshll.u32 %v363_v5, 16 }
  0x7f   : > { %v1257_v35 = vmax.bf16 %v1234_v59, %v1153_v44  ;;  %v1227_v17 = vmax.bf16 %v2322_v21, %v2326_v43  ;;  %v619_v29 = vrot.slane %v617_v18, 4  ;;  %v622_v14 = vrot.slane %v620_v26, 5  ;;  %v2365_v26 = vld [vmem:[%s2176_s7 + $0x28] sm:$0xf] }
  0x80   : > { %v1584_v31 = vcombine.low %v1270_v39, %v1271_v13  ;;  %v628_v24 = vrot.slane %v626_v25, 5  ;;  %v1562_v16 = vrot.slane %v362_v28, 9  ;;  %v643_v55 = vrot.slane %v363_v5, 5 }
  0x81   : > { %v2333_v1 = vmax.bf16 %v1257_v35, %v2326_v43  ;;  %v623_v4 = vor.u32 %v622_v14, %v619_v29  ;;  %v781_v53 = vshrl.u32 %v668_v34, 16  ;;  %v784_v51 = vshll.u32 %v668_v34, 16  ;;  %v977_v29 = vld [vmem:[%s2176_s7 + $0x2c] sm:$0x1] }
  0x82   : > { %1601 = vmatprep.mubr.msk.bf16.mxu0 %vm1306_vm7, %v1584_v31  ;;  %v644_v54 = vsel %vm1944_vm6, %v1562_v16, %v643_v55  ;;  %v790_v37 = vshll.u32 %v669_v12, 16  ;;  %v1570_v10 = vrot.slane %v668_v34, 9  ;;  %v856_v41 = vrot.slane %v669_v12, 5 }
  0x83   : > { %v624_v56 = vrot.slane %v623_v4, 4  ;;  %v783_v42 = vrot.slane %v781_v53, 4  ;;  %v786_v57 = vrot.slane %v784_v51, 5  ;;  %v880_v60 = vmax.bf16 %v872_v9, %v668_v34 }
  0x84   : > { %v792_v0 = vrot.slane %v790_v37, 5  ;;  %v857_v48 = vsel %vm1944_vm6, %v1570_v10, %v856_v41  ;;  %v883_v2 = vshrl.u32 %v2336_v45, 16  ;;  %v886_v32 = vshll.u32 %v2336_v45, 16  ;;  %v2385_v10 = vld [vmem:[%s2176_s7 + $0x38] sm:$0xf] }
  0x85   : > { %v629_v6 = vsel %vm1833_vm3, %v624_v56, %v628_v24  ;;  %v787_v63 = vor.u32 %v786_v57, %v783_v42  ;;  %v892_v30 = vshll.u32 %v671_v52, 16  ;;  %v1571_v19 = vrot.slane %v2336_v45, 9  ;;  %v2374_v24 = vld [vmem:[%s2176_s7 + $0x30] sm:$0xf] }
  0x86   : > { %v638_v50 = vmax.bf16 %v629_v6, %v615_v36  ;;  %v885_v8 = vrot.slane %v883_v2, 4  ;;  %v888_v9 = vrot.slane %v886_v32, 5  ;;  %v909_v22 = vrot.slane %v671_v52, 5  ;;  %v979_v52 = vld [vmem:[%s2176_s7 + $0x34] sm:$0x1] }
  0x87   : > { %v788_v58 = vrot.slane %v787_v63, 4  ;;  %v894_v27 = vrot.slane %v892_v30, 5  ;;  %v925_v3 = vmax.bf16 %v2250_v49, %v668_v34  ;;  %v929_v28 = vshrl.u32 %v2346_v61, 16 }
  0x88   : > { %v653_v47 = vmax.bf16 %v644_v54, %v638_v50  ;;  %v889_v38 = vor.u32 %v888_v9, %v885_v8  ;;  %v910_v44 = vsel %vm1944_vm6, %v1571_v19, %v909_v22  ;;  %v932_v5 = vshll.u32 %v2346_v61, 16 }
  0x89   : > { %v793_v23 = vsel %vm1833_vm3, %v788_v58, %v792_v0  ;;  %v931_v33 = vrot.slane %v929_v28, 4  ;;  %v938_v7 = vshll.u32 %v673_v20, 16  ;;  %v1572_v36 = vrot.slane %v2346_v61, 9 }
  0x8a   : > { %v681_v59 = vmax.bf16 %v668_v34, %v653_v47  ;;  %v890_v49 = vrot.slane %v889_v38, 4  ;;  %v903_v21 = vmax.bf16 %v880_v60, %v793_v23  ;;  %v934_v18 = vrot.slane %v932_v5, 5 }
  0x8b   : > { %v940_v39 = vrot.slane %v938_v7, 5  ;;  %v948_v13 = vmax.bf16 %v925_v3, %v793_v23  ;;  %v955_v25 = vrot.slane %v673_v20, 5  ;;  %v2368_v35 = vmax.bf16 %v1227_v17, %v2365_v26 }
  0x8c   : > { %v809_v14 = vmax.bf16 %v793_v23, %v681_v59  ;;  %v895_v12 = vsel %vm1833_vm3, %v890_v49, %v894_v27  ;;  %v918_v31 = vmax.bf16 %v903_v21, %v857_v48  ;;  %v935_v34 = vor.u32 %v934_v18, %v931_v33 }
  0x8d   : > { %v2378_v16 = vsel %vm1944_vm6, %v1572_v36, %v955_v25  ;;  %v963_v55 = vmax.bf16 %v948_v13, %v857_v48  ;;  %v1065_v4 = vshrl.u32 %v2365_v26, 16  ;;  %v1068_v17 = vshll.u32 %v2365_v26, 16 }
  0x8e   : > { %v873_v53 = vmax.bf16 %v857_v48, %v809_v14  ;;  %v926_v51 = vmax.bf16 %v918_v31, %v2336_v45  ;;  %v936_v54 = vrot.slane %v935_v34, 4  ;;  %v1074_v37 = vshll.u32 %v977_v29, 16  ;;  %v981_v48 = vld [vmem:[%s2176_s7 + $0x3c] sm:$0x1]  ;;  %v982_v14 = vld [vmem:[%s2176_s7 + $0x40] sm:$0xf] }
  0x8f   : > { %v991_v41 = vmax.bf16 %v2365_v26, %v963_v55  ;;  %v1067_v56 = vrot.slane %v1065_v4, 4  ;;  %v1070_v42 = vrot.slane %v1068_v17, 5  ;;  %v1079_v57 = vshrl.u32 %v2374_v24, 16  ;;  %v983_v55 = vld [vmem:[%s2176_s7 + $0x44] sm:$0x1] }
  0x90   : > { %v881_v60 = vmax.bf16 %v873_v53, %v2336_v45  ;;  %v941_v0 = vsel %vm1833_vm3, %v936_v54, %v940_v39  ;;  %v949_v2 = vmax.bf16 %v926_v51, %v895_v12  ;;  %v1076_v32 = vrot.slane %v1074_v37, 5 }
  0x91   : > { %v1071_v6 = vor.u32 %v1070_v42, %v1067_v56  ;;  %v1081_v63 = vrot.slane %v1079_v57, 4  ;;  %v1082_v30 = vshll.u32 %v2374_v24, 16  ;;  %v1088_v19 = vshll.u32 %v979_v52, 16 }
  0x92   : > { %v904_v50 = vmax.bf16 %v895_v12, %v881_v60  ;;  %v964_v20 = vmax.bf16 %v949_v2, %v910_v44  ;;  %v1093_v8 = vshrl.u32 %v2385_v10, 16  ;;  %v1096_v9 = vshll.u32 %v2385_v10, 16 }
  0x93   : > { %v1072_v22 = vrot.slane %v1071_v6, 4  ;;  %v1084_v58 = vrot.slane %v1082_v30, 5  ;;  %v1090_v45 = vrot.slane %v1088_v19, 5  ;;  %v1102_v27 = vshll.u32 %v981_v48, 16 }
  0x94   : > { %v919_v3 = vmax.bf16 %v910_v44, %v904_v50  ;;  %v992_v28 = vmax.bf16 %v2374_v24, %v964_v20  ;;  %v1095_v47 = vrot.slane %v1093_v8, 4  ;;  %v1098_v38 = vrot.slane %v1096_v9, 5  ;;  %v985_v9 = vld [vmem:[%s2176_s7 + $0x4c] sm:$0x1] }
  0x95   : > { %v1077_v5 = vsel %vm1833_vm3, %v1072_v22, %v1076_v32  ;;  %v1085_v23 = vor.u32 %v1084_v58, %v1081_v63  ;;  %v1104_v33 = vrot.slane %v1102_v27, 5  ;;  %v1578_v7 = vrot.slane %v2365_v26, 9 }
  0x96   : > { %v927_v36 = vmax.bf16 %v919_v3, %v2346_v61  ;;  %v1258_v59 = vmax.bf16 %v2368_v35, %v1077_v5  ;;  %v1099_v49 = vor.u32 %v1098_v38, %v1095_v47  ;;  %v1119_v21 = vmax.bf16 %v1077_v5, %v991_v41 }
  0x97   : > { %v1086_v44 = vrot.slane %v1085_v23, 4  ;;  %v1160_v18 = vrot.slane %v977_v29, 5  ;;  %v1579_v39 = vrot.slane %v2374_v24, 9  ;;  %v1164_v13 = vrot.slane %v979_v52, 5 }
  0x98   : > { %v950_v25 = vmax.bf16 %v941_v0, %v927_v36  ;;  %v1100_v12 = vrot.slane %v1099_v49, 4  ;;  %v1580_v31 = vrot.slane %v2385_v10, 9  ;;  %v1168_v34 = vrot.slane %v981_v48, 5  ;;  %v984_v0 = vld [vmem:[%s2176_s7 + $0x48] sm:$0xf] }
  0x99   : > { %v1091_v4 = vsel %vm1833_vm3, %v1086_v44, %v1090_v45  ;;  %v1161_v61 = vsel %vm1944_vm6, %v1578_v7, %v1160_v18  ;;  %v1165_v35 = vsel %vm1944_vm6, %v1579_v39, %v1164_v13  ;;  %v1182_v29 = vmax.bf16 %v2326_v43, %v1118_v46 }
  0x9a   : > { %v965_v17 = vmax.bf16 %v2378_v16, %v950_v25  ;;  %v1105_v53 = vsel %vm1833_vm3, %v1100_v12, %v1104_v33  ;;  %v1120_v51 = vmax.bf16 %v1091_v4, %v992_v28  ;;  %v1273_v54 = vmax.bf16 %v1258_v59, %v1161_v61 }
  0x9b   : > { %v1169_v52 = vsel %vm1944_vm6, %v1580_v31, %v1168_v34  ;;  %v1183_v37 = vmax.bf16 %v1161_v61, %v1119_v21  ;;  %v1190_v41 = vmax.bf16 %v1182_v29, %v2365_v26  ;;  %v1195_v56 = vshrl.u32 %v982_v14, 16 }
  0x9c   : > { %v993_v42 = vmax.bf16 %v2385_v10, %v965_v17  ;;  %v1184_v15 = vmax.bf16 %v1165_v35, %v1120_v51  ;;  %v1198_v11 = vshll.u32 %v982_v14, 16  ;;  %v1204_v46 = vshll.u32 %v983_v55, 16 }
  0x9d   : > { %v1191_v43 = vmax.bf16 %v1183_v37, %v2374_v24  ;;  %v1197_v16 = vrot.slane %v1195_v56, 4  ;;  %v1213_v57 = vmax.bf16 %v1190_v41, %v1077_v5  ;;  %v1585_v60 = vcombine.low %v2333_v1, %v1273_v54 }
  0x9e   : > { %v1121_v2 = vmax.bf16 %v1105_v53, %v993_v42  ;;  %v1192_v48 = vmax.bf16 %v1184_v15, %v2385_v10  ;;  %v1200_v32 = vrot.slane %v1198_v11, 5  ;;  %v1206_v6 = vrot.slane %v1204_v46, 5 }
  0x9f   : > { %v1214_v26 = vmax.bf16 %v1191_v43, %v1091_v4  ;;  %v1228_v63 = vmax.bf16 %v1213_v57, %v1161_v61  ;;  %1602 = vmatmul.mubr.msk.bf16.vlgmr.msra.gmra.mrb[0].mxu0 %vm1306_vm7, %v1585_v60  ;;  %v1581_v30 = vrot.slane %v982_v14, 9  ;;  %v1221_v19 = vrot.slane %v983_v55, 5 }
  0xa0   : > { %v1185_v50 = vmax.bf16 %v1169_v52, %v1121_v2  ;;  %v1201_v20 = vor.u32 %v1200_v32, %v1197_v16  ;;  %v1215_v8 = vmax.bf16 %v1192_v48, %v1105_v53  ;;  %v1241_v22 = vshrl.u32 %v984_v0, 16 }
  0xa1   : > { %v1229_v58 = vmax.bf16 %v1214_v26, %v1165_v35  ;;  %v1236_v1 = vmax.bf16 %v1228_v63, %v2374_v24  ;;  %v1244_v45 = vshll.u32 %v984_v0, 16  ;;  %v1250_v33 = vshll.u32 %v985_v9, 16 }
  0xa2   : > { %v1193_v27 = vmax.bf16 %v1185_v50, %v982_v14  ;;  %v1202_v3 = vrot.slane %v1201_v20, 4  ;;  %v1230_v28 = vmax.bf16 %v1215_v8, %v1169_v52  ;;  %v1243_v47 = vrot.slane %v1241_v22, 4 }
  0xa3   : > { %v1237_v38 = vmax.bf16 %v1229_v58, %v2385_v10  ;;  %v1259_v5 = vmax.bf16 %v1236_v1, %v1091_v4  ;;  %v1246_v23 = vrot.slane %v1244_v45, 5  ;;  %v1222_v59 = vsel %vm1944_vm6, %v1581_v30, %v1221_v19 }
  0xa4   : > { %v1207_v7 = vsel %vm1833_vm3, %v1202_v3, %v1206_v6  ;;  %v1238_v36 = vmax.bf16 %v1230_v28, %v982_v14  ;;  %v1252_v18 = vrot.slane %v1250_v33, 5  ;;  %v1582_v39 = vrot.slane %v984_v0, 9 }
  0xa5   : > { %v1216_v49 = vmax.bf16 %v1207_v7, %v1193_v27  ;;  %v1260_v21 = vmax.bf16 %v1237_v38, %v1105_v53  ;;  %v1274_v24 = vmax.bf16 %v1259_v5, %v1165_v35  ;;  %v1247_v44 = vor.u32 %v1246_v23, %v1243_v47 }
  0xa6   : > { %v1267_v13 = vrot.slane %v985_v9, 5  ;;  %v1261_v31 = vmax.bf16 %v1238_v36, %v1207_v7 }
  0xa7   : > { %v1275_v10 = vmax.bf16 %v1260_v21, %v1169_v52  ;;  %v1231_v25 = vmax.bf16 %v1222_v59, %v1216_v49  ;;  %v1248_v12 = vrot.slane %v1247_v44, 4 }
  0xa8   : > { %v1268_v4 = vsel %vm1944_vm6, %v1582_v39, %v1267_v13  ;;  %v1276_v35 = vmax.bf16 %v1261_v31, %v1222_v59 }
  0xa9   : > { %v1586_v34 = vcombine.low %v1274_v24, %v1275_v10  ;;  %v1239_v55 = vmax.bf16 %v1231_v25, %v984_v0  ;;  %v1253_v14 = vsel %vm1833_vm3, %v1248_v12, %v1252_v18 }
  0xab   : > { %1605 = vmatprep.mubr.msk.bf16.mxu1 %vm1306_vm7, %v1586_v34  ;;  %v1262_v61 = vmax.bf16 %v1253_v14, %v1239_v55 }
  0xad   : > { %v1277_v29 = vmax.bf16 %v1268_v4, %v1262_v61 }
  0xaf   : > { %v1587_v17 = vcombine.low %v1276_v35, %v1277_v29 }
  0xb1   : > { %1606 = vmatmul.mubr.msk.bf16.vlgmr.msra.gmra.mrb[0].mxu1 %vm1306_vm7, %v1587_v17 }
 0x172   : > { %v1603_v62 = vpop.f32.mrb[0].mxu0 }
 0x173   : > { %v1366_v53 = vadd.f32 %v1603_v62, %v1583_v40  ;;  %v1357_v51 = vpop.f32.mrb[1].mxu0 }
 0x174   : > { %v1358_v54 = vadd.f32 %v1583_v40, %v1357_v51  ;;  %v1604_v52 = vpop.f32.mrb[2].mxu0 }
 0x175   : > { %v1390_v37 = vmax.f32 %v1366_v53, 0.0  ;;  %v1369_v41 = vadd.f32 %v1604_v52, %v1583_v40  ;;  %v1360_v56 = vpop.f32.mrb[3].mxu0 }
 0x176   : > { %v1388_v42 = vmax.f32 %v1358_v54, 0.0  ;;  %v1361_v15 = vadd.f32 %v1583_v40, %v1360_v56 }
 0x177   : > { %1399 = vst.msk [vmem:[%s342_s16 + $0x10] sm:$0xff] %vm1396_vm8, %v1390_v37  ;;  %v1391_v11 = vmax.f32 %v1369_v41, 0.0 }
 0x178   : > { %1397 = vst.msk [vmem:[%s342_s16] sm:$0xff] %vm1396_vm8, %v1388_v42  ;;  %v1389_v46 = vmax.f32 %v1361_v15, 0.0 }
 0x179   : > { %1400 = vst.msk [vmem:[%s342_s16 + $0x18] sm:$0xff] %vm1396_vm8, %v1391_v11 }
 0x17a   : > { %1398 = vst.msk [vmem:[%s342_s16 + $0x8] sm:$0xff] %vm1396_vm8, %v1389_v46 }
 0x184   : > { %v1607_v43 = vpop.f32.mrb[0].mxu1 }
 0x185   : > { %v1382_v16 = vadd.f32 %v1607_v43, %v1583_v40  ;;  %v1373_v57 = vpop.f32.mrb[1].mxu1 }
 0x186   : > { %v1374_v60 = vadd.f32 %v1583_v40, %v1373_v57  ;;  %v1608_v0 = vpop.f32.mrb[2].mxu1 }
 0x187   : > { %v1394_v2 = vmax.f32 %v1382_v16, 0.0  ;;  %v1385_v48 = vadd.f32 %v1608_v0, %v1583_v40  ;;  %v1376_v32 = vpop.f32.mrb[3].mxu1 }
 0x188   : > { %v1392_v6 = vmax.f32 %v1374_v60, 0.0  ;;  %v1377_v26 = vadd.f32 %v1583_v40, %v1376_v32 }
 0x189   : > { %1403 = vst.msk [vmem:[%s342_s16 + $0x30] sm:$0xff] %vm1396_vm8, %v1394_v2  ;;  %v1395_v63 = vmax.f32 %v1385_v48, 0.0 }
 0x18a   : > { %1401 = vst.msk [vmem:[%s342_s16 + $0x20] sm:$0xff] %vm1396_vm8, %v1392_v6  ;;  %v1393_v30 = vmax.f32 %v1377_v26, 0.0 }
 0x18b   : > { %1404 = vst.msk [vmem:[%s342_s16 + $0x38] sm:$0xff] %vm1396_vm8, %v1395_v63 }
 0x18c   : > { %1402 = vst.msk [vmem:[%s342_s16 + $0x28] sm:$0xff] %vm1396_vm8, %v1393_v30 }
 0x18d PF: > { %s15_s22 = sadd.s32 1, %s1695_s22   ;;  %s2485_s18 = smov %s1687_s20 }
 0x18e   : > { %p12_p10 = scmp.ge.s32.totalorder %s15_s22, 10   ;;  %s2486_s19 = smov %s1691_s21 }
 0x18f   : > { %s2487_s20 = smov %s2490_s23  ;;  %s2488_s21 = smov %s2494_s24 }
 0x190   :  { %14 = sbr.rel (!%p12_p10) target bundleno = 3 (0x3), region = 76 }

// kernel: mixed_forward.5
= control target key start
LH: loop header
LB: loop body
LE: loop exit
PB: predicated region body
PF: predicated region fallthrough
CT: control target
= control target key end

     0   :  { %s5798_s18 = smov 0   ;;  %s5800_s19 = smov 0   ;;  %s7334_s0 = inlined_call_operand.vmem [shape: bf16[2,6,10,10,128], index: 0, kind: input, shape index: {}, may-alias: {0,1,2}]   ;;  %s7335_s1 = inlined_call_operand.vmem [shape: bf16[2,6,10,10,128], index: 1, kind: input, shape index: {}, may-alias: {0,1,2}]   ;;  %s7336_s2 = inlined_call_operand.vmem [shape: bf16[2,6,10,10,128], index: 2, kind: input, shape index: {}, may-alias: {0,1,2}]   ;;  %s7337_s3 = inlined_call_operand.vmem [shape: bf16[3,1152,8], index: 3, kind: input, shape index: {}]   ;;  %s7338_s4 = inlined_call_operand.vmem [shape: f32[1,8], index: 4, kind: input, shape index: {}]   ;;  %s7339_s5 = inlined_call_operand.vmem [shape: f32[2,4,8,8,8], index: 5, kind: output, shape index: {}]  }
   0x1   :  { %s5802_s20 = smov 0   ;;  %s5804_s21 = smov 0  }
   0x2   :  { %s5806_s22 = smov 0  }
   0x3 LB: > { %s24_s23 = sadd.s32 1, %s5758_s20  ;;  %s27_s24 = sadd.s32 1, %s5762_s21  ;;  %s5766_s22 = sphi %s5806_s22, %s15_s22   ;;  %s5762_s21 = sphi %s5804_s21, %s7348_s21   ;;  %s5758_s20 = sphi %s5802_s20, %s7347_s20   ;;  %s5754_s19 = sphi %s5800_s19, %s7346_s19   ;;  %s5750_s18 = sphi %s5798_s18, %s7345_s18  }
   0x4   : > { %p25_p0 = scmp.ge.s32.totalorder %s24_s23, 4  ;;  %p4148_p1 = scmp.ge.s32.totalorder %s5766_s22, 1 }
   0x5   : > { %p247_p2 = scmp.lt.s32.totalorder %s5766_s22, 9 }
   0x6   : > { %s7350_s23 = smov (%p25_p0, %s24_s23), 0  ;;  %s7352_s24 = smov (!%p25_p0, %s27_s24), %s5762_s21 }
   0x7   : > { %p248_p3 = pnand %p4148_p1, %p247_p2  ;;  %p29_p4 = scmp.ge.s32.totalorder %s7352_s24, 2 }
   0x8   : > { %v5485_v0 = vld [vmem:[%s7337_s3 + $0x280] sm:$0xff] (!%p248_p3)   ;;  %v5489_v4 = vld [vmem:[%s7337_s3 + $0x288] sm:$0xff] (!%p248_p3)   ;;  %v5493_v8 = vld [vmem:[%s7337_s3 + $0x290] sm:$0xff] (!%p248_p3)   ;;  %s312_s25 = sadd.s32 (!%p248_p3), 1, %s5750_s18  ;;  %p303_p5 = scmp.lt.s32.totalorder (!%p248_p3), %s5754_s19, 1  ;;  %vm495_vm0 = vcmask (!%p248_p3), 1042432  }
   0x9   : > { %s7354_s24 = smov (%p29_p4, %s7352_s24), 0  ;;  %251 = sbr.rel (%p248_p3) target bundleno = 498 (0x1f2), region = 40 }
   0xa   : > { %v5486_v1 = vld [vmem:[%s7337_s3 + $0x300] sm:$0xff] (!%p248_p3)   ;;  %4773 = vmatprep.subr.bf16.mxu0 (!%p248_p3), %v5485_v0  ;;  %v5490_v5 = vld [vmem:[%s7337_s3 + $0x308] sm:$0xff] (!%p248_p3)   ;;  %v5494_v9 = vld [vmem:[%s7337_s3 + $0x310] sm:$0xff] (!%p248_p3)   ;;  %p315_p6 = scmp.lt.s32.totalorder (!%p248_p3), %s312_s25, 5  ;;  %vm496_vm1 = vcmask (!%p248_p3), 1046532   ;;  %p305_p7 = scmp.lt.s32.totalorder (!%p248_p3), %s5750_s18, 5 }
   0xb   : > { %v5487_v2 = vld [vmem:[%s7337_s3 + $0x240] sm:$0xff] (!%p248_p3)   ;;  %4813 = vmatprep.subr.bf16.mxu1 (!%p248_p3), %v5486_v1  ;;  %v5491_v6 = vld [vmem:[%s7337_s3 + $0x248] sm:$0xff] (!%p248_p3)   ;;  %v5495_v10 = vld [vmem:[%s7337_s3 + $0x250] sm:$0xff] (!%p248_p3)   ;;  %vm364_vm2 = vsmask.f32 (!%p248_p3), 3328  ;;  %s323_s17 = sadd.s32 (!%p248_p3), 2, %s5750_s18 }
   0xc   : > { %v5488_v3 = vld [vmem:[%s7337_s3 + $0x2c0] sm:$0xff] (!%p248_p3)   ;;  %4774 = vmatpush3.bf16.msra.mxu0 (!%p248_p3), %v5487_v2  ;;  %v5492_v7 = vld [vmem:[%s7337_s3 + $0x2c8] sm:$0xff] (!%p248_p3)   ;;  %v5496_v11 = vld [vmem:[%s7337_s3 + $0x2d0] sm:$0xff] (!%p248_p3)   ;;  %vm365_vm3 = vsmask.f32 (!%p248_p3), 7440  ;;  %p6647_p8 = scmp.lt.s32.totalorder (!%p248_p3), %s323_s17, 5 }
   0xd   : > { %4814 = vmatpush3.bf16.msra.mxu1 (!%p248_p3), %v5488_v3  ;;  %4775 = vmatprep.subr.bf16.mxu0 (!%p248_p3), %v5489_v4  ;;  %v5497_v12 = vld [vmem:[%s7337_s3 + $0x298] sm:$0xff] (!%p248_p3)   ;;  %v5501_v16 = vld [vmem:[%s7337_s3 + $0x2a0] sm:$0xff] (!%p248_p3)   ;;  %v5505_v20 = vld [vmem:[%s7337_s3 + $0x2a8] sm:$0xff] (!%p248_p3)   ;;  %p336_p9 = scmp.lt.s32.totalorder (!%p248_p3), %s5750_s18, 3  ;;  %vm3998_vm6 = vcmask (!%p248_p3), 64512  }
   0xe   : > { %4815 = vmatprep.subr.bf16.mxu1 (!%p248_p3), %v5490_v5  ;;  %v5498_v13 = vld [vmem:[%s7337_s3 + $0x318] sm:$0xff] (!%p248_p3)   ;;  %v5502_v17 = vld [vmem:[%s7337_s3 + $0x320] sm:$0xff] (!%p248_p3)   ;;  %v5506_v21 = vld [vmem:[%s7337_s3 + $0x328] sm:$0xff] (!%p248_p3)  }
   0xf   : > { %v5499_v14 = vld [vmem:[%s7337_s3 + $0x258] sm:$0xff] (!%p248_p3)   ;;  %v5503_v18 = vld [vmem:[%s7337_s3 + $0x260] sm:$0xff] (!%p248_p3)   ;;  %v5507_v22 = vld [vmem:[%s7337_s3 + $0x268] sm:$0xff] (!%p248_p3)  }
  0x10   : > { %4776 = vmatpush3.bf16.msra.mxu0 %v5491_v6  ;;  %s7356_s19 = smov (!%p303_p5, %s5754_s19), 1  ;;  %v5500_v15 = vld [vmem:[%s7337_s3 + $0x2d8] sm:$0xff]   ;;  %s7358_s25 = smov (!%p315_p6, %s312_s25), 5  ;;  %v5504_v19 = vld [vmem:[%s7337_s3 + $0x2e0] sm:$0xff]   ;;  %v5508_v23 = vld [vmem:[%s7337_s3 + $0x2e8] sm:$0xff]  }
  0x11   : > { %4816 = vmatpush3.bf16.msra.mxu1 %v5492_v7  ;;  %4777 = vmatprep.subr.bf16.mxu0 %v5493_v8  ;;  %s5895_s29 = smul.u32 120, %s7356_s19  ;;  %v5509_v24 = vld [vmem:[%s7337_s3 + $0x2b0] sm:$0xff]   ;;  %v5513_v28 = vld [vmem:[%s7337_s3 + $0x2b8] sm:$0xff]   ;;  %v5519_v50 = vld [vmem:[%s7337_s3 + $0x380] sm:$0xff]   ;;  %s7360_s17 = smov (!%p6647_p8, %s323_s17), 5 }
  0x12   : > { %4817 = vmatprep.subr.bf16.mxu1 %v5494_v9  ;;  %s5443_s7 = smul.u32 20, %s7358_s25  ;;  %v5510_v25 = vld [vmem:[%s7337_s3 + $0x330] sm:$0xff]   ;;  %v5514_v29 = vld [vmem:[%s7337_s3 + $0x338] sm:$0xff]   ;;  %vm5967_vm4 = vmor %vm495_vm0, %vm496_vm1  ;;  %s4153_s12 = sshll.u32 %s7356_s19, 5 }
  0x13   : > { %v5511_v26 = vld [vmem:[%s7337_s3 + $0x270] sm:$0xff]   ;;  %v5515_v30 = vld [vmem:[%s7337_s3 + $0x278] sm:$0xff]   ;;  %vm5973_vm5 = vmor %vm364_vm2, %vm365_vm3  ;;  %s5444_s27 = smul.u32 20, %s7360_s17 }
  0x14   : > { %4778 = vmatpush3.bf16.msra.mxu0 %v5495_v10  ;;  %s319_s25 = sadd.s32 %s5443_s7, %s5895_s29  ;;  %v5512_v27 = vld [vmem:[%s7337_s3 + $0x2f0] sm:$0xff]   ;;  %v5516_v31 = vld [vmem:[%s7337_s3 + $0x2f8] sm:$0xff]   ;;  %v5520_v61 = vld [vmem:[%s7337_s3 + $0x400] sm:$0xff]  }
  0x15   : > { %4818 = vmatpush3.bf16.msra.mxu1 %v5496_v11  ;;  %4779 = vmatprep.subr.bf16.mxu0 %v5497_v12  ;;  %s4150_s6 = sshll.u32 %s319_s25, 2  ;;  %v5522_v7 = vld [vmem:[%s7337_s3 + $0x3c0] sm:$0xff]   ;;  %v5524_v12 = vld [vmem:[%s7337_s3 + $0x408] sm:$0xff]  }
  0x16   : > { %4819 = vmatprep.subr.bf16.mxu1 %v5498_v13  ;;  %s5934_s15 = scalar_lea.vmem %s7335_s1, %s4150_s6  ;;  %v5521_v11 = vld [vmem:[%s7337_s3 + $0x340] sm:$0xff]  }
  0x17   : > { %v5943_v32 = vld [vmem:[%s5934_s15] sm:$0xf]  ;;  %v799_v33 = vld [vmem:[%s5934_s15 + $0x4] sm:$0x1]  ;;  %v5947_v34 = vld [vmem:[%s5934_s15 + $0x8] sm:$0xf] }
  0x18   : > { %4780 = vmatpush3.bf16.msra.mxu0 %v5499_v14  ;;  %v819_v35 = vshrl.u32 %v5943_v32, 16  ;;  %v822_v36 = vshll.u32 %v5943_v32, 16  ;;  %v801_v37 = vld [vmem:[%s5934_s15 + $0xc] sm:$0x1]  ;;  %v5953_v38 = vld [vmem:[%s5934_s15 + $0x10] sm:$0xf]  ;;  %v4202_v9 = vcombine.low %v5943_v32, %v5947_v34 }
  0x19   : > { %4820 = vmatpush3.bf16.msra.mxu1 %v5500_v15  ;;  %4781 = vmatprep.subr.bf16.mxu0 %v5501_v16  ;;  %v5956_v39 = vld [vmem:[%s5934_s15 + $0x14] sm:$0x1]  ;;  %v828_v42 = vshll.u32 %v799_v33, 16  ;;  %v833_v43 = vshrl.u32 %v5947_v34, 16  ;;  %v836_v44 = vshll.u32 %v5947_v34, 16  ;;  %v842_v45 = vshll.u32 %v801_v37, 16 }
  0x1a   : > { %4821 = vmatprep.subr.bf16.mxu1 %v5502_v17  ;;  %v821_v40 = vrot.slane %v819_v35, 4  ;;  %v824_v41 = vrot.slane %v822_v36, 5  ;;  %v847_v46 = vshrl.u32 %v5953_v38, 16  ;;  %v850_v47 = vshll.u32 %v5953_v38, 16  ;;  %v5530_v35 = vld [vmem:[%s7337_s3 + $0x410] sm:$0xff]   ;;  %s306_s7 = scalar_select %p305_p7, %s5750_s18, 5 }
  0x1b   : > { %v835_v49 = vrot.slane %v833_v43, 4  ;;  %v830_v51 = vrot.slane %v828_v42, 5  ;;  %v838_v52 = vrot.slane %v836_v44, 5  ;;  %v856_v58 = vshll.u32 %v5956_v39, 16  ;;  %v5532_v42 = vld [vmem:[%s7337_s3 + $0x3d0] sm:$0xff]   ;;  %s7362_s18 = smov (!%p336_p9, %s5750_s18), 3 }
  0x1c   : > { %4782 = vmatpush3.bf16.msra.mxu0 %v5503_v18  ;;  %v825_v48 = vor.u32 %v824_v41, %v821_v40  ;;  %v849_v53 = vrot.slane %v847_v46, 4  ;;  %v852_v54 = vrot.slane %v850_v47, 5  ;;  %v948_v59 = vrot.slane %v799_v33, 5  ;;  %v5531_v44 = vld [vmem:[%s7337_s3 + $0x350] sm:$0xff]   ;;  %s5441_s14 = smul.u32 20, %s306_s7  ;;  %s4152_s10 = sshll.u32 %s7362_s18, 3 }
  0x1d   : > { %4822 = vmatpush3.bf16.msra.mxu1 %v5504_v19  ;;  %4783 = vmatprep.subr.bf16.mxu0 %v5505_v20  ;;  %v952_v60 = vrot.slane %v801_v37, 5  ;;  %v839_v62 = vor.u32 %v838_v52, %v835_v49  ;;  %v844_v63 = vrot.slane %v842_v45, 5  ;;  %v4214_v0 = vcombine.low %v5947_v34, %v5953_v38  ;;  %v5523_v19 = vld [vmem:[%s7337_s3 + $0x388] sm:$0xff]   ;;  %v804_v20 = vld [vmem:[%s5934_s15 + $0x18] sm:$0xf]  ;;  %s340_s13 = sadd.s32 %s4153_s12, %s4152_s10 }
  0x1e   : > { %4823 = vmatprep.subr.bf16.mxu1 %v5506_v21  ;;  %v826_v57 = vrot.slane %v825_v48, 4  ;;  %v4192_v1 = vrot.slane %v5943_v32, 9  ;;  %v853_v2 = vor.u32 %v852_v54, %v849_v53  ;;  %v4193_v3 = vrot.slane %v5947_v34, 9  ;;  %v805_v21 = vld [vmem:[%s5934_s15 + $0x1c] sm:$0x1]  ;;  %v5529_v34 = vld [vmem:[%s7337_s3 + $0x390] sm:$0xff]   ;;  %s6250_s7 = sadd.s32 %s5895_s29, %s5441_s14 }
  0x1f   : > { %v840_v5 = vrot.slane %v839_v62, 4  ;;  %1776 = vmatprep.mubr.bf16.mxu1 %v4214_v0  ;;  %v858_v8 = vrot.slane %v856_v58, 5  ;;  %v4194_v15 = vrot.slane %v5953_v38, 9  ;;  %v956_v16 = vrot.slane %v5956_v39, 5  ;;  %v5534_v48 = vld [vmem:[%s7337_s3 + $0x418] sm:$0xff]   ;;  %s4149_s14 = sshll.u32 %s6250_s7, 2  ;;  %s330_s7 = sadd.s32 %s5444_s27, %s5895_s29 }
  0x20   : > { %4784 = vmatpush3.bf16.msra.mxu0 %v5507_v22  ;;  %v831_v4 = vsel %vm5973_vm5, %v826_v57, %v830_v51  ;;  %v949_v6 = vsel %vm5967_vm4, %v4192_v1, %v948_v59  ;;  %v5996_v10 = vsel %vm5967_vm4, %v4193_v3, %v952_v60  ;;  %v854_v17 = vrot.slane %v853_v2, 4  ;;  %v6018_v22 = vld [vmem:[%s5934_s15 + $0x20] sm:$0xf]  ;;  %v5533_v49 = vld [vmem:[%s7337_s3 + $0x398] sm:$0xff]   ;;  %v807_v59 = vld [vmem:[%s5934_s15 + $0x24] sm:$0x1]  ;;  %s6302_s11 = scalar_lea.vmem %s7334_s0, %s4149_s14 }
  0x21   : > { %4824 = vmatpush3.bf16.msra.mxu1 %v5508_v23  ;;  %4785 = vmatprep.subr.bf16.mxu0 %v5509_v24  ;;  %v6006_v13 = vsel %vm5973_vm5, %v840_v5, %v844_v63  ;;  %v4210_v14 = vcombine.low %v949_v6, %v5996_v10  ;;  %v5525_v23 = vld [vmem:[%s7337_s3 + $0x348] sm:$0xff]   ;;  %v875_v39 = vshrl.u32 %v6018_v22, 16  ;;  %v878_v43 = vshll.u32 %v6018_v22, 16  ;;  %v5535_v53 = vld [vmem:[%s7337_s3 + $0x358] sm:$0xff]   ;;  %v6086_v2 = vld [vmem:[%s5934_s15 + $0x30] sm:$0xf] }
  0x22   : > { %4825 = vmatprep.subr.bf16.mxu1 %v5510_v25  ;;  %v4206_v18 = vcombine.low %v831_v4, %v6006_v13  ;;  %v5526_v24 = vld [vmem:[%s7337_s3 + $0x3c8] sm:$0xff]   ;;  %v861_v25 = vshrl.u32 %v804_v20, 16  ;;  %v6055_v46 = vsel %vm5973_vm5, %v854_v17, %v858_v8  ;;  %v6069_v52 = vcombine.low %v5953_v38, %v804_v20  ;;  %v5536_v54 = vld [vmem:[%s7337_s3 + $0x3d8] sm:$0xff]   ;;  %s4151_s29 = sshll.u32 %s330_s7, 2  ;;  %s4154_s18 = sshll.u32 %s340_s13, 3 }
  0x23   : > { %v877_v45 = vrot.slane %v875_v39, 4  ;;  %v4196_v57 = vrot.slane %v6018_v22, 9  ;;  %v808_v38 = vld [vmem:[%s5934_s15 + $0x28] sm:$0xf]  ;;  %v809_v60 = vld [vmem:[%s5934_s15 + $0x2c] sm:$0x1]  ;;  %s6746_s9 = scalar_lea.vmem %s7336_s2, %s4151_s29  ;;  %s7299_s29 = scalar_lea.vmem %s7339_s5, %s4154_s18 }
  0x24   : > { %4786 = vmatpush3.bf16.msra.mxu0 %v5511_v26  ;;  %1711 = vmatprep.mubr.bf16.mxu0 %v4206_v18  ;;  %v864_v26 = vshll.u32 %v804_v20, 16  ;;  %v863_v32 = vrot.slane %v861_v25, 4  ;;  %v884_v62 = vshll.u32 %v807_v59, 16  ;;  %v889_v63 = vshrl.u32 %v808_v38, 16  ;;  %v5541_v18 = vld [vmem:[%s7337_s3 + $0x360] sm:$0xff]  }
  0x25   : > { %4826 = vmatpush3.bf16.msra.mxu1 %v5512_v27  ;;  %4787 = vmatprep.subr.bf16.mxu0 %v5513_v28  ;;  %v870_v27 = vshll.u32 %v805_v21, 16  ;;  %v4215_v28 = vcombine.low %v804_v20, %v6018_v22  ;;  %v892_v0 = vshll.u32 %v808_v38, 16  ;;  %v898_v1 = vshll.u32 %v809_v60, 16  ;;  %v811_v39 = vld [vmem:[%s5934_s15 + $0x34] sm:$0x1] }
  0x26   : > { %4827 = vmatprep.subr.bf16.mxu1 %v5514_v29  ;;  %v6029_v29 = vsel %vm5967_vm4, %v4194_v15, %v956_v16  ;;  %v866_v33 = vrot.slane %v864_v26, 5  ;;  %v4216_v4 = vcombine.low %v808_v38, %v6086_v2  ;;  %v964_v5 = vrot.slane %v807_v59, 5 }
  0x27   : > { %v872_v36 = vrot.slane %v870_v27, 5  ;;  %v886_v6 = vrot.slane %v884_v62, 5  ;;  %v894_v8 = vrot.slane %v892_v0, 5  ;;  %v4197_v15 = vrot.slane %v808_v38, 9  ;;  %v5543_v27 = vld [vmem:[%s7337_s3 + $0x3a8] sm:$0xff]  }
  0x28   : > { %4788 = vmatpush3.bf16.msra.mxu0 %v5515_v30  ;;  %v4195_v30 = vrot.slane %v804_v20, 9  ;;  %v867_v40 = vor.u32 %v866_v33, %v863_v32  ;;  %v968_v16 = vrot.slane %v809_v60, 5  ;;  %v6132_v32 = vcombine.low %v6018_v22, %v808_v38  ;;  %v5545_v33 = vld [vmem:[%s7337_s3 + $0x368] sm:$0xff]   ;;  %v5549_v60 = vld [vmem:[%s7337_s3 + $0x3b0] sm:$0xff]  }
  0x29   : > { %4828 = vmatpush3.bf16.msra.mxu1 %v5516_v31  ;;  %4853 = vmatprep.subr.bf16.mxu0 %v5519_v50  ;;  %v960_v31 = vrot.slane %v805_v21, 5  ;;  %v880_v50 = vrot.slane %v878_v43, 5  ;;  %v5542_v21 = vld [vmem:[%s7337_s3 + $0x3e0] sm:$0xff]   ;;  %v5546_v22 = vld [vmem:[%s7337_s3 + $0x3e8] sm:$0xff]  }
  0x2a   : > { %4893 = vmatprep.subr.bf16.mxu1 %v5520_v61  ;;  %v868_v47 = vrot.slane %v867_v40, 4  ;;  %v6107_v20 = vsel %vm5967_vm4, %v4197_v15, %v968_v16  ;;  %v812_v40 = vld [vmem:[%s5934_s15 + $0x38] sm:$0xf] }
  0x2b   : > { %1712 = vmatmul.mubr.bf16.vlgmr.msra.gmra.mrb[0].mxu0 %v4202_v9  ;;  %v6039_v37 = vsel %vm5967_vm4, %v4195_v30, %v960_v31  ;;  %v881_v61 = vor.u32 %v880_v50, %v877_v45  ;;  %v900_v9 = vrot.slane %v898_v1, 5  ;;  %v917_v45 = vshrl.u32 %v812_v40, 16 }
  0x2c   : > { %1777 = vmatmul.mubr.bf16.vlgmr.msra.gmra.mrb[0].mxu1 %v4210_v14  ;;  %4854 = vmatpush3.bf16.msra.mxu0 %v5521_v11  ;;  %v6044_v41 = vcombine.low %v6029_v29, %v6039_v37  ;;  %v6066_v51 = vsel %vm5973_vm5, %v868_v47, %v872_v36  ;;  %v5539_v11 = vld [vmem:[%s7337_s3 + $0x3a0] sm:$0xff]   ;;  %v6099_v14 = vsel %vm5967_vm4, %v4196_v57, %v964_v5  ;;  %v4198_v36 = vrot.slane %v6086_v2, 9 }
  0x2d   : > { %4894 = vmatpush3.bf16.msra.mxu1 %v5522_v7  ;;  %1784 = vmatprep.mubr.bf16.mxu1 %v4215_v28  ;;  %v6080_v58 = vcombine.low %v6055_v46, %v6066_v51  ;;  %v882_v3 = vrot.slane %v881_v61, 4  ;;  %v891_v7 = vrot.slane %v889_v63, 4  ;;  %v6119_v26 = vcombine.low %v6099_v14, %v6107_v20  ;;  %v5544_v28 = vld [vmem:[%s7337_s3 + $0x428] sm:$0xff]   ;;  %v5550_v61 = vld [vmem:[%s7337_s3 + $0x430] sm:$0xff]  }
  0x2e   : > { %4895 = vmatprep.subr.bf16.mxu1 %v5524_v12  ;;  %4855 = vmatprep.subr.bf16.mxu0 %v5523_v19  ;;  %v5540_v12 = vld [vmem:[%s7337_s3 + $0x420] sm:$0xff]   ;;  %v903_v19 = vshrl.u32 %v6086_v2, 16  ;;  %v920_v47 = vshll.u32 %v812_v40, 16  ;;  %v919_v59 = vrot.slane %v917_v45, 4  ;;  %v4199_v63 = vrot.slane %v812_v40, 9 }
  0x2f   : > { %1719 = vmatprep.mubr.bf16.mxu0 %v6080_v58  ;;  %v895_v17 = vor.u32 %v894_v8, %v891_v7  ;;  %v6194_v16 = vcombine.low %v6086_v2, %v812_v40  ;;  %v6276_v45 = vld [vmem:[%s5934_s15 + $0x48] sm:$0xf] }
  0x30   : > { %4856 = vmatpush3.bf16.msra.mxu0 %v5525_v23  ;;  %v906_v23 = vshll.u32 %v6086_v2, 16  ;;  %v905_v30 = vrot.slane %v903_v19, 4  ;;  %v922_v38 = vrot.slane %v920_v47, 5  ;;  %v5556_v19 = vld [vmem:[%s7337_s3 + $0x3f8] sm:$0xff]   ;;  %v4222_v2 = vcombine.low %v5996_v10, %v6029_v29  ;;  %v5559_v10 = vld [vmem:[%s7337_s3] sm:$0xff]   ;;  %v5561_v29 = vld [vmem:[%s7337_s3 + $0x48] sm:$0xff]  }
  0x31   : > { %4896 = vmatpush3.bf16.msra.mxu1 %v5526_v24  ;;  %4857 = vmatprep.subr.bf16.mxu0 %v5529_v34  ;;  %v6115_v24 = vsel %vm5973_vm5, %v882_v3, %v886_v6  ;;  %v896_v25 = vrot.slane %v895_v17, 4  ;;  %v5552_v6 = vld [vmem:[%s7337_s3 + $0x3f0] sm:$0xff]   ;;  %v5555_v17 = vld [vmem:[%s7337_s3 + $0x378] sm:$0xff]  }
  0x32   : > { %4897 = vmatprep.subr.bf16.mxu1 %v5530_v35  ;;  %v908_v34 = vrot.slane %v906_v23, 5  ;;  %v923_v1 = vor.u32 %v922_v38, %v919_v59  ;;  %v5558_v23 = vld [vmem:[%s7337_s3 + $0x40] sm:$0xff]  }
  0x33   : > { %1720 = vmatmul.mubr.bf16.gmra.mrb[4].mxu0 %v6069_v52  ;;  %v6129_v31 = vsel %vm5973_vm5, %v896_v25, %v900_v9 }
  0x34   : > { %1785 = vmatmul.mubr.bf16.gmra.mrb[4].mxu1 %v6044_v41  ;;  %4858 = vmatpush3.bf16.msra.mxu0 %v5531_v44  ;;  %v6140_v35 = vcombine.low %v6115_v24, %v6129_v31  ;;  %v909_v43 = vor.u32 %v908_v34, %v905_v30  ;;  %v912_v44 = vshll.u32 %v811_v39, 16  ;;  %v924_v8 = vrot.slane %v923_v1, 4  ;;  %v5560_v30 = vld [vmem:[%s7337_s3 + $0x448] sm:$0xff]   ;;  %v5563_v34 = vld [vmem:[%s7337_s3 + $0x450] sm:$0xff]  }
  0x35   : > { %4898 = vmatpush3.bf16.msra.mxu1 %v5532_v42  ;;  %4859 = vmatprep.subr.bf16.mxu0 %v5533_v49  ;;  %v813_v42 = vld [vmem:[%s5934_s15 + $0x3c] sm:$0x1]  ;;  %v6151_v49 = vld [vmem:[%s5934_s15 + $0x40] sm:$0xf] }
  0x36   : > { %4899 = vmatprep.subr.bf16.mxu1 %v5534_v48  ;;  %1792 = vmatprep.mubr.bf16.mxu1 %v4216_v4  ;;  %v926_v48 = vshll.u32 %v813_v42, 16  ;;  %v4217_v50 = vcombine.low %v812_v40, %v6151_v49  ;;  %v914_v57 = vrot.slane %v912_v44, 5  ;;  %v976_v0 = vrot.slane %v813_v42, 5  ;;  %v5551_v4 = vld [vmem:[%s7337_s3 + $0x370] sm:$0xff]   ;;  %v5571_v40 = vld [vmem:[%s7337_s3 + $0x20] sm:$0xff]  }
  0x37   : > { %1727 = vmatprep.mubr.bf16.mxu0 %v6140_v35  ;;  %v982_v25 = vshll.u32 %v6151_v49, 16  ;;  %v815_v44 = vld [vmem:[%s5934_s15 + $0x44] sm:$0x1] }
  0x38   : > { %4860 = vmatpush3.bf16.msra.mxu0 %v5535_v53  ;;  %v972_v53 = vrot.slane %v811_v39, 5  ;;  %v928_v3 = vrot.slane %v926_v48, 5  ;;  %v6170_v5 = vsel %vm5967_vm4, %v4199_v63, %v976_v0  ;;  %v5568_v39 = vld [vmem:[%s7337_s3 + $0x18] sm:$0xff]   ;;  %v996_v47 = vrot.slane %v815_v44, 5  ;;  %v5574_v63 = vld [vmem:[%s7337_s3 + $0x28] sm:$0xff]  }
  0x39   : > { %4900 = vmatpush3.bf16.msra.mxu1 %v5536_v54  ;;  %4861 = vmatprep.subr.bf16.mxu0 %v5539_v11  ;;  %v910_v54 = vrot.slane %v909_v43, 4  ;;  %v5553_v11 = vld [vmem:[%s7337_s3 + $0x3b8] sm:$0xff]   ;;  %v5569_v43 = vld [vmem:[%s7337_s3 + $0x460] sm:$0xff]   ;;  %v988_v48 = vshll.u32 %v815_v44, 16 }
  0x3a   : > { %4901 = vmatprep.subr.bf16.mxu1 %v5540_v12  ;;  %v6163_v62 = vsel %vm5967_vm4, %v4198_v36, %v972_v53  ;;  %v5554_v12 = vld [vmem:[%s7337_s3 + $0x438] sm:$0xff]   ;;  %v6191_v15 = vsel %vm5973_vm5, %v924_v8, %v928_v3  ;;  %v1002_v53 = vshll.u32 %v6276_v45, 16  ;;  %v4226_v8 = vcombine.low %v6151_v49, %v6276_v45 }
  0x3b   : > { %1728 = vmatmul.mubr.bf16.gmra.mrb[8].mxu0 %v6132_v32  ;;  %v6177_v7 = vsel %vm5973_vm5, %v910_v54, %v914_v57  ;;  %v6181_v9 = vcombine.low %v6163_v62, %v6170_v5  ;;  %v5566_v36 = vld [vmem:[%s7337_s3 + $0x458] sm:$0xff]   ;;  %v5573_v54 = vld [vmem:[%s7337_s3 + $0x68] sm:$0xff]   ;;  %v990_v38 = vrot.slane %v988_v48, 5 }
  0x3c   : > { %1793 = vmatmul.mubr.bf16.gmra.mrb[8].mxu1 %v6119_v26  ;;  %4862 = vmatpush3.bf16.msra.mxu0 %v5541_v18  ;;  %v4209_v18 = vcombine.low %v6177_v7, %v6191_v15  ;;  %v6382_v48 = vld [vmem:[%s6302_s11 + $0x18] sm:$0xf] }
  0x3d   : > { %4902 = vmatpush3.bf16.msra.mxu1 %v5542_v21  ;;  %4863 = vmatprep.subr.bf16.mxu0 %v5543_v27  ;;  %v5557_v21 = vld [vmem:[%s7337_s3 + $0x440] sm:$0xff]   ;;  %v4218_v27 = vcombine.low %v6006_v13, %v6055_v46  ;;  %v5564_v46 = vld [vmem:[%s7337_s3 + $0x50] sm:$0xff]  }
  0x3e   : > { %4903 = vmatprep.subr.bf16.mxu1 %v5544_v28  ;;  %1800 = vmatprep.mubr.bf16.mxu1 %v4217_v50  ;;  %v5562_v28 = vld [vmem:[%s7337_s3 + $0x8] sm:$0xff]   ;;  %v999_v50 = vshrl.u32 %v6276_v45, 16 }
  0x3f   : > { %1735 = vmatprep.mubr.bf16.mxu0 %v4209_v18 }
  0x40   : > { %4864 = vmatpush3.bf16.msra.mxu0 %v5545_v33  ;;  %v4223_v33 = vcombine.low %v6039_v37, %v6099_v14  ;;  %v5567_v37 = vld [vmem:[%s7337_s3 + $0x58] sm:$0xff]  }
  0x41   : > { %4904 = vmatpush3.bf16.msra.mxu1 %v5546_v22  ;;  %4865 = vmatprep.subr.bf16.mxu0 %v5549_v60  ;;  %v4219_v22 = vcombine.low %v6066_v51, %v6115_v24  ;;  %v4224_v51 = vcombine.low %v6107_v20, %v6163_v62  ;;  %v5570_v24 = vld [vmem:[%s7337_s3 + $0x60] sm:$0xff]   ;;  %v6279_v20 = vld [vmem:[%s5934_s15 + $0x4c] sm:$0x1]  ;;  %v1001_v60 = vrot.slane %v999_v50, 4  ;;  %v4220_v62 = vcombine.low %v6129_v31, %v6177_v7  ;;  %v5577_v7 = vld [vmem:[%s7337_s3 + $0x70] sm:$0xff]  }
  0x42   : > { %4905 = vmatprep.subr.bf16.mxu1 %v5550_v61  ;;  %v1008_v57 = vshll.u32 %v6279_v20, 16  ;;  %v1004_v61 = vrot.slane %v1002_v53, 5  ;;  %v5572_v31 = vld [vmem:[%s7337_s3 + $0x468] sm:$0xff]   ;;  %v6385_v50 = vld [vmem:[%s6302_s11 + $0x1c] sm:$0x1] }
  0x43   : > { %1736 = vmatmul.mubr.bf16.gmra.mrb[12].mxu0 %v6194_v16 }
  0x44   : > { %4866 = vmatpush3.bf16.msra.mxu0 %v5551_v4  ;;  %1801 = vmatmul.mubr.bf16.gmra.mrb[12].mxu1 %v6181_v9  ;;  %v1005_v0 = vor.u32 %v1004_v61, %v1001_v60  ;;  %v1010_v1 = vrot.slane %v1008_v57, 5  ;;  %v413_v60 = vshll.u32 %v6382_v48, 16  ;;  %v419_v61 = vshll.u32 %v6385_v50, 16 }
  0x45   : > { %4906 = vmatpush3.bf16.msra.mxu1 %v5552_v6  ;;  %4867 = vmatprep.subr.bf16.mxu0 %v5553_v11  ;;  %v6317_v11 = vld [vmem:[%s6302_s11] sm:$0xf] }
  0x46   : > { %4907 = vmatprep.subr.bf16.mxu1 %v5554_v12  ;;  %1906 = vmatprep.mubr.bf16.mxu1 %v6080_v58  ;;  %v979_v58 = vshrl.u32 %v6151_v49, 16  ;;  %v1006_v6 = vrot.slane %v1005_v0, 4  ;;  %v6320_v12 = vld [vmem:[%s6302_s11 + $0x4] sm:$0x1] }
  0x47   : > { %1841 = vmatprep.mubr.bf16.mxu0 %v4222_v2  ;;  %v377_v2 = vshll.u32 %v6320_v12, 16 }
  0x48   : > { %4868 = vmatpush3.bf16.msra.mxu0 %v5555_v17  ;;  %v981_v13 = vrot.slane %v979_v58, 4  ;;  %v5576_v17 = vld [vmem:[%s7337_s3 + $0x470] sm:$0xff]  }
  0x49   : > { %4908 = vmatpush3.bf16.msra.mxu1 %v5556_v19  ;;  %5289 = vmatprep.subr.bf16.mxu0 %v5557_v21  ;;  %v368_v19 = vshrl.u32 %v6317_v11, 16 }
  0x4a   : > { %4945 = vmatprep.subr.bf16.mxu1 %v5558_v23  ;;  %v5578_v23 = vld [vmem:[%s7337_s3 + $0x30] sm:$0xff]  }
  0x4b   : > { %1842 = vmatmul.mubr.bf16.vlgmr.msra.gmra.mrb[16].mxu0 %v4218_v27  ;;  %v5580_v27 = vld [vmem:[%s7337_s3 + $0x78] sm:$0xff]  }
  0x4c   : > { %1907 = vmatmul.mubr.bf16.vlgmr.msra.gmra.mrb[16].mxu1 %v6069_v52  ;;  %v984_v52 = vrot.slane %v982_v25, 5  ;;  %5290 = vmatpush3.bf16.msra.mxu0 %v5557_v21 }
  0x4d   : > { %4946 = vmatpush3.bf16.msra.mxu1 %v5559_v10  ;;  %1914 = vmatprep.mubr.bf16.mxu1 %v6140_v35  ;;  %v5565_v35 = vld [vmem:[%s7337_s3 + $0x10] sm:$0xff]  }
  0x4e   : > { %4947 = vmatprep.subr.bf16.mxu1 %v5561_v29  ;;  %5291 = vmatprep.subr.bf16.mxu0 %v5560_v30  ;;  %v985_v14 = vor.u32 %v984_v52, %v981_v13  ;;  %v5581_v13 = vld [vmem:[%s7337_s3 + $0x38] sm:$0xff]  }
  0x4f   : > { %1849 = vmatprep.mubr.bf16.mxu0 %v4223_v33  ;;  %v5579_v33 = vld [vmem:[%s7337_s3 + $0x478] sm:$0xff]  }
  0x50   : > { %5292 = vmatpush3.bf16.msra.mxu0 %v5560_v30  ;;  %v986_v42 = vrot.slane %v985_v14, 4 }
  0x51   : > { %4948 = vmatpush3.bf16.msra.mxu1 %v5562_v28  ;;  %5293 = vmatprep.subr.bf16.mxu0 %v5563_v34  ;;  %v370_v28 = vrot.slane %v368_v19, 4 }
  0x52   : > { %4949 = vmatprep.subr.bf16.mxu1 %v5564_v46  ;;  %v991_v4 = vsel %vm5973_vm5, %v986_v42, %v990_v38  ;;  %v379_v46 = vrot.slane %v377_v2, 5  ;;  %v5588_v42 = vld [vmem:[%s7337_s3 + $0x148] sm:$0xff]   ;;  %v410_v38 = vshrl.u32 %v6382_v48, 16  ;;  %v5594_v2 = vld [vmem:[%s7337_s3 + $0x90] sm:$0xff]  }
  0x53   : > { %1850 = vmatmul.mubr.bf16.gmra.mrb[20].mxu0 %v4219_v22  ;;  %v4221_v25 = vcombine.low %v6191_v15, %v991_v4  ;;  %v5584_v22 = vld [vmem:[%s7337_s3 + $0x140] sm:$0xff]  }
  0x54   : > { %1915 = vmatmul.mubr.bf16.gmra.mrb[20].mxu1 %v6132_v32  ;;  %v4200_v32 = vrot.slane %v6151_v49, 9  ;;  %5294 = vmatpush3.bf16.msra.mxu0 %v5563_v34  ;;  %v371_v49 = vshll.u32 %v6317_v11, 16 }
  0x55   : > { %4950 = vmatpush3.bf16.msra.mxu1 %v5565_v35  ;;  %1922 = vmatprep.mubr.bf16.mxu1 %v4209_v18  ;;  %v6331_v18 = vld [vmem:[%s6302_s11 + $0xc] sm:$0x1] }
  0x56   : > { %4951 = vmatprep.subr.bf16.mxu1 %v5567_v37  ;;  %5295 = vmatprep.subr.bf16.mxu0 %v5566_v36  ;;  %v6289_v59 = vsel %vm5967_vm4, %v4200_v32, %v996_v47  ;;  %v391_v58 = vshll.u32 %v6331_v18, 16  ;;  %v373_v30 = vrot.slane %v371_v49, 5  ;;  %v6379_v47 = vld [vmem:[%s6302_s11 + $0x14] sm:$0x1] }
  0x57   : > { %1857 = vmatprep.mubr.bf16.mxu0 %v4224_v51  ;;  %v4225_v3 = vcombine.low %v6170_v5, %v6289_v59  ;;  %v1011_v5 = vsel %vm5973_vm5, %v1006_v6, %v1010_v1  ;;  %v405_v57 = vshll.u32 %v6379_v47, 16 }
  0x58   : > { %5296 = vmatpush3.bf16.msra.mxu0 %v5566_v36  ;;  %v4227_v21 = vcombine.low %v991_v4, %v1011_v5  ;;  %v393_v15 = vrot.slane %v391_v58, 5  ;;  %v374_v35 = vor.u32 %v373_v30, %v370_v28  ;;  %v415_v4 = vrot.slane %v413_v60, 5  ;;  %v6444_v28 = vld [vmem:[%s6302_s11 + $0x20] sm:$0xf] }
  0x59   : > { %4952 = vmatpush3.bf16.msra.mxu1 %v5568_v39  ;;  %5297 = vmatprep.subr.bf16.mxu0 %v5569_v43  ;;  %v5583_v39 = vld [vmem:[%s7337_s3 + $0xc0] sm:$0xff]   ;;  %v4155_v30 = vrot.slane %v6317_v11, 9 }
  0x5a   : > { %4953 = vmatprep.subr.bf16.mxu1 %v5570_v24  ;;  %v375_v14 = vrot.slane %v374_v35, 4  ;;  %v5586_v24 = vld [vmem:[%s7337_s3 + $0x100] sm:$0xff]   ;;  %v424_v35 = vshrl.u32 %v6444_v28, 16 }
  0x5b   : > { %1858 = vmatmul.mubr.bf16.gmra.mrb[24].mxu0 %v4220_v62  ;;  %v1016_v62 = vrot.slane %v6279_v20, 5  ;;  %v407_v20 = vrot.slane %v405_v57, 5 }
  0x5c   : > { %1923 = vmatmul.mubr.bf16.gmra.mrb[24].mxu1 %v6194_v16  ;;  %v6323_v16 = vld [vmem:[%s6302_s11 + $0x8] sm:$0xf]  ;;  %5298 = vmatpush3.bf16.msra.mxu0 %v5569_v43  ;;  %v380_v51 = vsel %vm5973_vm5, %v375_v14, %v379_v46  ;;  %v6374_v43 = vld [vmem:[%s6302_s11 + $0x10] sm:$0xf] }
  0x5d   : > { %4954 = vmatpush3.bf16.msra.mxu1 %v5571_v40  ;;  %5299 = vmatprep.subr.bf16.mxu0 %v5572_v31  ;;  %v382_v10 = vshrl.u32 %v6323_v16, 16  ;;  %v385_v29 = vshll.u32 %v6323_v16, 16  ;;  %v4165_v40 = vcombine.low %v6317_v11, %v6323_v16  ;;  %v396_v53 = vshrl.u32 %v6374_v43, 16  ;;  %v6455_v46 = vld [vmem:[%s6302_s11 + $0x28] sm:$0xf] }
  0x5e   : > { %4955 = vmatprep.subr.bf16.mxu1 %v5573_v54  ;;  %1865 = vmatprep.mubr.bf16.mxu0 %v4225_v3  ;;  %v399_v54 = vshll.u32 %v6374_v43, 16  ;;  %v5590_v3 = vld [vmem:[%s7337_s3 + $0x108] sm:$0xff]   ;;  %v4158_v11 = vrot.slane %v6382_v48, 9 }
  0x5f   : > { %1930 = vmatprep.mubr.bf16.mxu1 %v4227_v21  ;;  %v384_v52 = vrot.slane %v382_v10, 4  ;;  %v387_v34 = vrot.slane %v385_v29, 5  ;;  %v398_v0 = vrot.slane %v396_v53, 4  ;;  %v5595_v21 = vld [vmem:[%s7337_s3 + $0x110] sm:$0xff]   ;;  %v5596_v10 = vld [vmem:[%s7337_s3 + $0xd8] sm:$0xff]   ;;  %v5601_v53 = vld [vmem:[%s7337_s3 + $0xe0] sm:$0xff]  }
  0x60   : > { %5300 = vmatpush3.bf16.msra.mxu0 %v5572_v31  ;;  %v401_v1 = vrot.slane %v399_v54, 5  ;;  %v412_v31 = vrot.slane %v410_v38, 4  ;;  %v5597_v29 = vld [vmem:[%s7337_s3 + $0x158] sm:$0xff]   ;;  %v5603_v38 = vld [vmem:[%s7337_s3 + $0xa0] sm:$0xff]  }
  0x61   : > { %4956 = vmatpush3.bf16.msra.mxu1 %v5574_v63  ;;  %5301 = vmatprep.subr.bf16.mxu0 %v5576_v17  ;;  %v388_v37 = vor.u32 %v387_v34, %v384_v52  ;;  %v5587_v63 = vld [vmem:[%s7337_s3 + $0xc8] sm:$0xff]  }
  0x62   : > { %4957 = vmatprep.subr.bf16.mxu1 %v5577_v7  ;;  %v402_v6 = vor.u32 %v401_v1, %v398_v0  ;;  %v5593_v7 = vld [vmem:[%s7337_s3 + $0x150] sm:$0xff]   ;;  %v416_v5 = vor.u32 %v415_v4, %v412_v31  ;;  %v6458_v52 = vld [vmem:[%s6302_s11 + $0x2c] sm:$0x1]  ;;  %v4156_v4 = vrot.slane %v6323_v16, 9 }
  0x63   : > { %1866 = vmatmul.mubr.bf16.gmra.mrb[28].mxu0 %v4221_v25  ;;  %v389_v36 = vrot.slane %v388_v37, 4  ;;  %v6438_v25 = vcombine.low %v6374_v43, %v6382_v48  ;;  %v427_v37 = vshll.u32 %v6444_v28, 16  ;;  %v5606_v1 = vld [vmem:[%s7337_s3 + $0x168] sm:$0xff]  }
  0x64   : > { %1931 = vmatmul.mubr.bf16.gmra.mrb[28].mxu1 %v4226_v8  ;;  %5302 = vmatpush3.bf16.msra.mxu0 %v5576_v17  ;;  %v5589_v8 = vld [vmem:[%s7337_s3 + $0x88] sm:$0xff]   ;;  %v421_v17 = vrot.slane %v419_v61, 5  ;;  %v403_v19 = vrot.slane %v402_v6, 4  ;;  %v417_v49 = vrot.slane %v416_v5, 4  ;;  %v5604_v61 = vld [vmem:[%s7337_s3 + $0x120] sm:$0xff]   ;;  %v504_v5 = vrot.slane %v6331_v18, 5 }
  0x65   : > { %4958 = vmatpush3.bf16.msra.mxu1 %v5578_v23  ;;  %5305 = vmatprep.mubr.bf16.mxu0 %v6044_v41  ;;  %v6366_v32 = vsel %vm5973_vm5, %v389_v36, %v393_v15  ;;  %v4201_v41 = vrot.slane %v6276_v45, 9  ;;  %v5585_v45 = vld [vmem:[%s7337_s3 + $0x80] sm:$0xff]   ;;  %v4177_v15 = vcombine.low %v6323_v16, %v6374_v43  ;;  %v441_v36 = vshll.u32 %v6455_v46, 16 }
  0x66   : > { %4959 = vmatprep.subr.bf16.mxu1 %v5580_v27  ;;  %5303 = vmatprep.subr.bf16.mxu0 %v5579_v33  ;;  %v4169_v44 = vcombine.low %v380_v51, %v6366_v32  ;;  %v6424_v23 = vsel %vm5973_vm5, %v403_v19, %v407_v20  ;;  %v6434_v58 = vsel %vm5973_vm5, %v417_v49, %v421_v17  ;;  %v5599_v27 = vld [vmem:[%s7337_s3 + $0x118] sm:$0xff]   ;;  %v500_v51 = vrot.slane %v6320_v12, 5  ;;  %v6521_v17 = vld [vmem:[%s6302_s11 + $0x34] sm:$0x1] }
  0x67   : > { %v6507_v20 = vcombine.low %v6444_v28, %v6455_v46  ;;  %v6524_v19 = vld [vmem:[%s6302_s11 + $0x38] sm:$0xf] }
  0x68   : > { %5304 = vmatpush3.bf16.msra.mxu0 %v5579_v33  ;;  %2468 = vmatprep.mubr.bf16.mxu1 %v4169_v44  ;;  %v6449_v33 = vcombine.low %v6424_v23, %v6434_v58  ;;  %v443_v44 = vrot.slane %v441_v36, 5  ;;  %v466_v18 = vshrl.u32 %v6524_v19, 16  ;;  %v5616_v12 = vld [vmem:[%s7337_s3 + $0xb8] sm:$0xff]  }
  0x69   : > { %4960 = vmatpush3.bf16.msra.mxu1 %v5581_v13  ;;  %4985 = vmatprep.subr.bf16.mxu0 %v5583_v39  ;;  %v6452_v13 = vld [vmem:[%s6302_s11 + $0x24] sm:$0x1]  ;;  %v447_v39 = vshll.u32 %v6458_v52, 16 }
  0x6a   : > { %5025 = vmatprep.subr.bf16.mxu1 %v5584_v22  ;;  %v433_v14 = vshll.u32 %v6452_v13, 16  ;;  %v438_v22 = vshrl.u32 %v6455_v46, 16 }
  0x6b   : > { %5306 = vmatmul.mubr.bf16.vlgmr.msra.gmra.mrb[32].mxu0 %v6119_v26  ;;  %v5592_v26 = vld [vmem:[%s7337_s3 + $0xd0] sm:$0xff]   ;;  %v449_v60 = vrot.slane %v447_v39, 5 }
  0x6c   : > { %2469 = vmatmul.mubr.bf16.vlgmr.msra.gmra.mrb[32].mxu1 %v4165_v40  ;;  %4986 = vmatpush3.bf16.msra.mxu0 %v5585_v45  ;;  %v426_v40 = vrot.slane %v424_v35, 4  ;;  %v435_v57 = vrot.slane %v433_v14, 5  ;;  %v468_v35 = vrot.slane %v466_v18, 4  ;;  %v520_v18 = vrot.slane %v6458_v52, 5  ;;  %v5630_v52 = vld [vmem:[%s7337_s3 + $0x190] sm:$0xff]  }
  0x6d   : > { %5026 = vmatpush3.bf16.msra.mxu1 %v5586_v24  ;;  %5309 = vmatprep.mubr.bf16.mxu0 %v6181_v9  ;;  %v1017_v9 = vsel %vm5967_vm4, %v4201_v41, %v1016_v62  ;;  %v5598_v24 = vld [vmem:[%s7337_s3 + $0x98] sm:$0xff]   ;;  %v440_v41 = vrot.slane %v438_v22, 4  ;;  %v508_v22 = vrot.slane %v6379_v47, 5 }
  0x6e   : > { %5027 = vmatprep.subr.bf16.mxu1 %v5588_v42  ;;  %4987 = vmatprep.subr.bf16.mxu0 %v5587_v63  ;;  %v4228_v34 = vcombine.low %v6289_v59, %v1017_v9  ;;  %v5602_v59 = vld [vmem:[%s7337_s3 + $0x160] sm:$0xff]   ;;  %v429_v42 = vrot.slane %v427_v37, 5  ;;  %v5605_v63 = vld [vmem:[%s7337_s3 + $0xe8] sm:$0xff]   ;;  %v469_v9 = vshll.u32 %v6524_v19, 16  ;;  %v4157_v37 = vrot.slane %v6374_v43, 9  ;;  %v5614_v43 = vld [vmem:[%s7337_s3 + $0xf8] sm:$0xff]  }
  0x6f   : > { %2476 = vmatprep.mubr.bf16.mxu1 %v6449_v33  ;;  %v444_v45 = vor.u32 %v443_v44, %v440_v41  ;;  %v5615_v47 = vld [vmem:[%s7337_s3 + $0x178] sm:$0xff]  }
  0x70   : > { %4988 = vmatpush3.bf16.msra.mxu0 %v5589_v8  ;;  %v430_v54 = vor.u32 %v429_v42, %v426_v40  ;;  %v6513_v8 = vld [vmem:[%s6302_s11 + $0x30] sm:$0xf]  ;;  %v471_v14 = vrot.slane %v469_v9, 5 }
  0x71   : > { %5028 = vmatpush3.bf16.msra.mxu1 %v5590_v3  ;;  %4989 = vmatprep.subr.bf16.mxu0 %v5592_v26  ;;  %v445_v0 = vrot.slane %v444_v45, 4  ;;  %v5607_v3 = vld [vmem:[%s7337_s3 + $0xa8] sm:$0xff]   ;;  %v6527_v26 = vld [vmem:[%s6302_s11 + $0x3c] sm:$0x1]  ;;  %v452_v49 = vshrl.u32 %v6513_v8, 16  ;;  %v5613_v42 = vld [vmem:[%s7337_s3 + $0x130] sm:$0xff]  }
  0x72   : > { %5029 = vmatprep.subr.bf16.mxu1 %v5593_v7  ;;  %v431_v62 = vrot.slane %v430_v54, 4  ;;  %v5608_v7 = vld [vmem:[%s7337_s3 + $0x128] sm:$0xff]   ;;  %v505_v54 = vsel %vm5967_vm4, %v4156_v4, %v504_v5  ;;  %v5617_v45 = vld [vmem:[%s7337_s3 + $0x138] sm:$0xff]   ;;  %v516_v4 = vrot.slane %v6452_v13, 5 }
  0x73   : > { %5310 = vmatmul.mubr.bf16.gmra.mrb[36].mxu0 %v4228_v34  ;;  %v6503_v6 = vsel %vm5973_vm5, %v445_v0, %v449_v60  ;;  %v454_v34 = vrot.slane %v452_v49, 4  ;;  %v512_v60 = vrot.slane %v6385_v50, 5  ;;  %v5619_v0 = vld [vmem:[%s7337_s3 + $0x1c0] sm:$0xff]   ;;  %v4178_v50 = vcombine.low %v6382_v48, %v6444_v28  ;;  %v5623_v5 = vld [vmem:[%s7337_s3 + $0x1c8] sm:$0xff]  }
  0x74   : > { %2477 = vmatmul.mubr.bf16.gmra.mrb[36].mxu1 %v6438_v25  ;;  %4990 = vmatpush3.bf16.msra.mxu0 %v5594_v2  ;;  %v6495_v31 = vsel %vm5973_vm5, %v431_v62, %v435_v57  ;;  %v455_v2 = vshll.u32 %v6513_v8, 16  ;;  %v509_v57 = vsel %vm5967_vm4, %v4157_v37, %v508_v22  ;;  %v5625_v13 = vld [vmem:[%s7337_s3 + $0x188] sm:$0xff]   ;;  %v4160_v49 = vrot.slane %v6455_v46, 9  ;;  %v5634_v37 = vld [vmem:[%s7337_s3 + $0x198] sm:$0xff]   ;;  %v5631_v22 = vld [vmem:[%s7337_s3 + $0x490] sm:$0xff]  }
  0x75   : > { %5030 = vmatpush3.bf16.msra.mxu1 %v5595_v21  ;;  %4991 = vmatprep.subr.bf16.mxu0 %v5596_v10  ;;  %v6518_v16 = vcombine.low %v6495_v31, %v6503_v6  ;;  %v461_v21 = vshll.u32 %v6521_v17, 16  ;;  %v475_v10 = vshll.u32 %v6527_v26, 16  ;;  %v513_v48 = vsel %vm5967_vm4, %v4158_v11, %v512_v60  ;;  %v361_v11 = vld [vmem:[%s6302_s11 + $0x44] sm:$0x1] }
  0x76   : > { %5031 = vmatprep.subr.bf16.mxu1 %v5597_v29  ;;  %2533 = vmatprep.mubr.bf16.mxu0 %v4177_v15  ;;  %v5610_v29 = vld [vmem:[%s7337_s3 + $0xf0] sm:$0xff]   ;;  %v457_v15 = vrot.slane %v455_v2, 5  ;;  %v4181_v2 = vcombine.low %v6366_v32, %v6424_v23  ;;  %v6631_v32 = vcombine.low %v509_v57, %v513_v48  ;;  %v524_v23 = vrot.slane %v6521_v17, 5 }
  0x77   : > { %2484 = vmatprep.mubr.bf16.mxu1 %v6518_v16  ;;  %v463_v39 = vrot.slane %v461_v21, 5  ;;  %v477_v40 = vrot.slane %v475_v10, 5  ;;  %v5622_v21 = vld [vmem:[%s7337_s3 + $0x480] sm:$0xff]   ;;  %v5628_v10 = vld [vmem:[%s7337_s3 + $0x1d0] sm:$0xff]  }
  0x78   : > { %4992 = vmatpush3.bf16.msra.mxu0 %v5598_v24  ;;  %v458_v36 = vor.u32 %v457_v15, %v454_v34  ;;  %v472_v24 = vor.u32 %v471_v14, %v468_v35  ;;  %v4179_v34 = vcombine.low %v6455_v46, %v6513_v8  ;;  %v5626_v15 = vld [vmem:[%s7337_s3 + $0x488] sm:$0xff]   ;;  %v5632_v35 = vld [vmem:[%s7337_s3 + $0x1d8] sm:$0xff]   ;;  %v5629_v46 = vld [vmem:[%s7337_s3 + $0x4d0] sm:$0xff]   ;;  %v4182_v14 = vcombine.low %v6434_v58, %v6495_v31 }
  0x79   : > { %5032 = vmatpush3.bf16.msra.mxu1 %v5599_v27  ;;  %4993 = vmatprep.subr.bf16.mxu0 %v5601_v53  ;;  %v5611_v27 = vld [vmem:[%s7337_s3 + $0x170] sm:$0xff]   ;;  %v501_v53 = vsel %vm5967_vm4, %v4155_v30, %v500_v51  ;;  %v6581_v51 = vcombine.low %v6513_v8, %v6524_v19  ;;  %v5633_v58 = vld [vmem:[%s7337_s3 + $0x4d8] sm:$0xff]  }
  0x7a   : > { %5033 = vmatprep.subr.bf16.mxu1 %v5602_v59  ;;  %v5612_v59 = vld [vmem:[%s7337_s3 + $0xb0] sm:$0xff]   ;;  %v459_v41 = vrot.slane %v458_v36, 4  ;;  %v473_v44 = vrot.slane %v472_v24, 4  ;;  %v4173_v62 = vcombine.low %v501_v53, %v505_v54  ;;  %v5639_v24 = vld [vmem:[%s7337_s3 + $0x1a0] sm:$0xff]  }
  0x7c   : > { %4994 = vmatpush3.bf16.msra.mxu0 %v5603_v38  ;;  %2485 = vmatmul.mubr.bf16.gmra.mrb[40].mxu1 %v6507_v20  ;;  %v6569_v38 = vsel %vm5973_vm5, %v459_v41, %v463_v39  ;;  %v6577_v30 = vsel %vm5973_vm5, %v473_v44, %v477_v40  ;;  %v5637_v39 = vld [vmem:[%s7337_s3 + $0x1e0] sm:$0xff]   ;;  %v528_v40 = vrot.slane %v6527_v26, 5  ;;  %v5641_v41 = vld [vmem:[%s7337_s3 + $0x1e8] sm:$0xff]  }
  0x7d   : > { %5034 = vmatpush3.bf16.msra.mxu1 %v5604_v61  ;;  %4995 = vmatprep.subr.bf16.mxu0 %v5605_v63  ;;  %v6589_v61 = vcombine.low %v6569_v38, %v6577_v30  ;;  %v4185_v63 = vcombine.low %v505_v54, %v509_v57  ;;  %v5638_v26 = vld [vmem:[%s7337_s3 + $0x4e0] sm:$0xff]   ;;  %v5643_v44 = vld [vmem:[%s7337_s3 + $0x1a8] sm:$0xff]   ;;  %v4183_v53 = vcombine.low %v6503_v6, %v6569_v38  ;;  %v5646_v6 = vld [vmem:[%s7337_s3 + $0x1f0] sm:$0xff]   ;;  %v548_v38 = vrot.slane %v361_v11, 5 }
  0x7e   : > { %5035 = vmatprep.subr.bf16.mxu1 %v5606_v1  ;;  %v4159_v1 = vrot.slane %v6444_v28, 9  ;;  %v5642_v54 = vld [vmem:[%s7337_s3 + $0x4e8] sm:$0xff]   ;;  %v6711_v57 = vld [vmem:[%s6302_s11 + $0x40] sm:$0xf] }
  0x7f   : > { %2492 = vmatprep.mubr.bf16.mxu1 %v6589_v61  ;;  %v531_v60 = vshrl.u32 %v6711_v57, 16 }
  0x80   : > { %4996 = vmatpush3.bf16.msra.mxu0 %v5607_v3  ;;  %v5620_v3 = vld [vmem:[%s7337_s3 + $0x4c0] sm:$0xff]   ;;  %v517_v28 = vsel %vm5967_vm4, %v4159_v1, %v516_v4 }
  0x81   : > { %5036 = vmatpush3.bf16.msra.mxu1 %v5608_v7  ;;  %4997 = vmatprep.subr.bf16.mxu0 %v5610_v29  ;;  %v5621_v7 = vld [vmem:[%s7337_s3 + $0x180] sm:$0xff]   ;;  %v4186_v9 = vcombine.low %v513_v48, %v517_v28  ;;  %v4161_v29 = vrot.slane %v6513_v8, 9  ;;  %v521_v8 = vsel %vm5967_vm4, %v4160_v49, %v520_v18  ;;  %v5648_v48 = vld [vmem:[%s7337_s3 + $0x1b0] sm:$0xff]   ;;  %v5650_v49 = vld [vmem:[%s7337_s3 + $0x1f8] sm:$0xff]  }
  0x82   : > { %5037 = vmatprep.subr.bf16.mxu1 %v5611_v27  ;;  %v5624_v27 = vld [vmem:[%s7337_s3 + $0x4c8] sm:$0xff]   ;;  %v6679_v31 = vcombine.low %v517_v28, %v521_v8  ;;  %v5647_v28 = vld [vmem:[%s7337_s3 + $0x4f0] sm:$0xff]   ;;  %v5652_v18 = vld [vmem:[%s7337_s3 + $0x1b8] sm:$0xff]  }
  0x83   : > { %v525_v17 = vsel %vm5967_vm4, %v4161_v29, %v524_v23  ;;  %v6765_v29 = vld [vmem:[%s6746_s9] sm:$0xf]  ;;  %v6774_v23 = vld [vmem:[%s6746_s9 + $0xc] sm:$0x1] }
  0x84   : > { %4998 = vmatpush3.bf16.msra.mxu0 %v5612_v59  ;;  %2493 = vmatmul.mubr.bf16.gmra.mrb[44].mxu1 %v6581_v51  ;;  %v4187_v36 = vcombine.low %v521_v8, %v525_v17  ;;  %v4162_v59 = vrot.slane %v6524_v19, 9  ;;  %v5653_v8 = vld [vmem:[%s7337_s3 + $0x4b8] sm:$0xff]  }
  0x85   : > { %5038 = vmatpush3.bf16.msra.mxu1 %v5613_v42  ;;  %4999 = vmatprep.subr.bf16.mxu0 %v5614_v43  ;;  %v5635_v42 = vld [vmem:[%s7337_s3 + $0x498] sm:$0xff]   ;;  %v5640_v43 = vld [vmem:[%s7337_s3 + $0x4a0] sm:$0xff]  }
  0x86   : > { %5039 = vmatprep.subr.bf16.mxu1 %v5615_v47  ;;  %2598 = vmatprep.mubr.bf16.mxu1 %v4185_v63  ;;  %v529_v47 = vsel %vm5967_vm4, %v4162_v59, %v528_v40 }
  0x87   : > { %v6723_v63 = vcombine.low %v525_v17, %v529_v47 }
  0x88   : > { %5000 = vmatpush3.bf16.msra.mxu0 %v5616_v12  ;;  %v4180_v12 = vcombine.low %v6524_v19, %v6711_v57  ;;  %v533_v19 = vrot.slane %v531_v60, 4 }
  0x89   : > { %5040 = vmatpush3.bf16.msra.mxu1 %v5617_v45  ;;  %5065 = vmatprep.subr.bf16.mxu0 %v5619_v0  ;;  %v4163_v45 = vrot.slane %v6711_v57, 9  ;;  %v540_v0 = vshll.u32 %v361_v11, 16 }
  0x8a   : > { %5117 = vmatprep.subr.bf16.mxu1 %v5620_v3  ;;  %v5644_v3 = vld [vmem:[%s7337_s3 + $0x4a8] sm:$0xff]  }
  0x8b   : > { %2534 = vmatmul.mubr.bf16.vlgmr.msra.gmra.mrb[40].mxu0 %v4173_v62  ;;  %v534_v62 = vshll.u32 %v6711_v57, 16 }
  0x8c   : > { %5066 = vmatpush3.bf16.msra.mxu0 %v5621_v7  ;;  %2541 = vmatprep.mubr.bf16.mxu0 %v4178_v50  ;;  %v6730_v50 = vsel %vm5967_vm4, %v4163_v45, %v548_v38  ;;  %v5659_v38 = vld [vmem:[%s7337_s3 + $0x548] sm:$0xff]  }
  0x8d   : > { %5067 = vmatprep.subr.bf16.mxu0 %v5623_v5  ;;  %2599 = vmatmul.mubr.bf16.vlgmr.msra.gmra.mrb[48].mxu1 %v4181_v2  ;;  %v536_v1 = vrot.slane %v534_v62, 5  ;;  %v4188_v4 = vcombine.low %v529_v47, %v6730_v50  ;;  %v542_v5 = vrot.slane %v540_v0, 5  ;;  %v5649_v2 = vld [vmem:[%s7337_s3 + $0x4b0] sm:$0xff]  }
  0x8e   : > { %5118 = vmatpush3.bf16.msra.mxu1 %v5622_v21  ;;  %2606 = vmatprep.mubr.bf16.mxu1 %v4186_v9 }
  0x8f   : > { %5119 = vmatprep.subr.bf16.mxu1 %v5624_v27  ;;  %v537_v7 = vor.u32 %v536_v1, %v533_v19  ;;  %v6771_v27 = vld [vmem:[%s6746_s9 + $0x8] sm:$0xf] }
  0x90   : > { %5068 = vmatpush3.bf16.msra.mxu0 %v5625_v13  ;;  %v4527_v47 = vcombine.low %v6765_v29, %v6771_v27 }
  0x91   : > { %5069 = vmatprep.subr.bf16.mxu0 %v5628_v10  ;;  %v538_v13 = vrot.slane %v537_v7, 4  ;;  %v5651_v10 = vld [vmem:[%s7337_s3 + $0x4f8] sm:$0xff]  }
  0x92   : > { %5120 = vmatpush3.bf16.msra.mxu1 %v5626_v15  ;;  %v2796_v15 = vshrl.u32 %v6771_v27, 16 }
  0x93   : > { %2542 = vmatmul.mubr.bf16.gmra.mrb[44].mxu0 %v6631_v32  ;;  %5121 = vmatprep.subr.bf16.mxu1 %v5629_v46  ;;  %v6754_v21 = vsel %vm5973_vm5, %v538_v13, %v542_v5  ;;  %v2805_v46 = vshll.u32 %v6774_v23, 16 }
  0x94   : > { %5070 = vmatpush3.bf16.msra.mxu0 %v5630_v52  ;;  %2549 = vmatprep.mubr.bf16.mxu0 %v4179_v34  ;;  %v4184_v9 = vcombine.low %v6577_v30, %v6754_v21  ;;  %v2782_v52 = vshrl.u32 %v6765_v29, 16  ;;  %v2785_v34 = vshll.u32 %v6765_v29, 16 }
  0x95   : > { %5071 = vmatprep.subr.bf16.mxu0 %v5632_v35  ;;  %2607 = vmatmul.mubr.bf16.gmra.mrb[52].mxu1 %v4182_v14  ;;  %v2799_v35 = vshll.u32 %v6771_v27, 16  ;;  %v2807_v40 = vrot.slane %v2805_v46, 5  ;;  %v6863_v46 = vld [vmem:[%s6746_s9 + $0x2c] sm:$0x1] }
  0x96   : > { %5122 = vmatpush3.bf16.msra.mxu1 %v5631_v22  ;;  %2614 = vmatprep.mubr.bf16.mxu1 %v4187_v36  ;;  %v2784_v17 = vrot.slane %v2782_v52, 4  ;;  %v2798_v22 = vrot.slane %v2796_v15, 4 }
  0x97   : > { %5123 = vmatprep.subr.bf16.mxu1 %v5633_v58  ;;  %v2801_v36 = vrot.slane %v2799_v35, 5  ;;  %v5656_v58 = vld [vmem:[%s7337_s3 + $0x540] sm:$0xff]   ;;  %v6860_v35 = vld [vmem:[%s6746_s9 + $0x28] sm:$0xf] }
  0x98   : > { %5072 = vmatpush3.bf16.msra.mxu0 %v5634_v37  ;;  %v2787_v37 = vrot.slane %v2785_v34, 5  ;;  %v5666_v34 = vld [vmem:[%s7337_s3 + $0x558] sm:$0xff]  }
  0x99   : > { %5073 = vmatprep.subr.bf16.mxu0 %v5637_v39  ;;  %v5654_v39 = vld [vmem:[%s7337_s3 + $0x200] sm:$0xff]  }
  0x9a   : > { %5124 = vmatpush3.bf16.msra.mxu1 %v5635_v42  ;;  %v2788_v59 = vor.u32 %v2787_v37, %v2784_v17  ;;  %v5658_v42 = vld [vmem:[%s7337_s3 + $0x208] sm:$0xff]  }
  0x9b   : > { %2550 = vmatmul.mubr.bf16.gmra.mrb[48].mxu0 %v6679_v31  ;;  %5125 = vmatprep.subr.bf16.mxu1 %v5638_v26 }
  0x9c   : > { %5074 = vmatpush3.bf16.msra.mxu0 %v5639_v24  ;;  %2557 = vmatprep.mubr.bf16.mxu0 %v4180_v12  ;;  %v2802_v24 = vor.u32 %v2801_v36, %v2798_v22  ;;  %v6817_v12 = vld [vmem:[%s6746_s9 + $0x1c] sm:$0x1]  ;;  %v2852_v36 = vshrl.u32 %v6860_v35, 16 }
  0x9d   : > { %5075 = vmatprep.subr.bf16.mxu0 %v5641_v41  ;;  %2615 = vmatmul.mubr.bf16.gmra.mrb[56].mxu1 %v4183_v53  ;;  %v6811_v53 = vld [vmem:[%s6746_s9 + $0x14] sm:$0x1]  ;;  %v2833_v1 = vshll.u32 %v6817_v12, 16 }
  0x9e   : > { %5126 = vmatpush3.bf16.msra.mxu1 %v5640_v43  ;;  %2622 = vmatprep.mubr.bf16.mxu1 %v4188_v4  ;;  %v2803_v41 = vrot.slane %v2802_v24, 4  ;;  %v6802_v43 = vld [vmem:[%s6746_s9 + $0x10] sm:$0xf]  ;;  %v2819_v62 = vshll.u32 %v6811_v53, 16  ;;  %v2855_v24 = vshll.u32 %v6860_v35, 16 }
  0x9f   : > { %5127 = vmatprep.subr.bf16.mxu1 %v5642_v54  ;;  %v6814_v54 = vld [vmem:[%s6746_s9 + $0x18] sm:$0xf]  ;;  %v2810_v45 = vshrl.u32 %v6802_v43, 16  ;;  %v2813_v60 = vshll.u32 %v6802_v43, 16  ;;  %v2835_v13 = vrot.slane %v2833_v1, 5 }
  0xa0   : > { %5076 = vmatpush3.bf16.msra.mxu0 %v5643_v44  ;;  %v6806_v44 = vsel %vm5973_vm5, %v2803_v41, %v2807_v40  ;;  %v2824_v0 = vshrl.u32 %v6814_v54, 16  ;;  %v2827_v19 = vshll.u32 %v6814_v54, 16  ;;  %v2821_v5 = vrot.slane %v2819_v62, 5  ;;  %v5668_v40 = vld [vmem:[%s7337_s3 + $0x220] sm:$0xff]   ;;  %v6909_v1 = vld [vmem:[%s6302_s11 + $0x4c] sm:$0x1] }
  0xa1   : > { %5077 = vmatprep.subr.bf16.mxu0 %v5646_v6  ;;  %v5661_v6 = vld [vmem:[%s7337_s3 + $0x210] sm:$0xff]   ;;  %v2812_v4 = vrot.slane %v2810_v45, 4  ;;  %v2815_v7 = vrot.slane %v2813_v60, 5  ;;  %v2854_v41 = vrot.slane %v2852_v36, 4 }
  0xa2   : > { %5128 = vmatpush3.bf16.msra.mxu1 %v5644_v3  ;;  %v5660_v3 = vld [vmem:[%s7337_s3 + $0x508] sm:$0xff]  }
  0xa3   : > { %2558 = vmatmul.mubr.bf16.gmra.mrb[52].mxu0 %v6723_v63  ;;  %5129 = vmatprep.subr.bf16.mxu1 %v5647_v28  ;;  %v2829_v28 = vrot.slane %v2827_v19, 5  ;;  %v6906_v19 = vld [vmem:[%s6302_s11 + $0x48] sm:$0xf] }
  0xa4   : > { %5078 = vmatpush3.bf16.msra.mxu0 %v5648_v48  ;;  %2663 = vmatprep.mubr.bf16.mxu0 %v6449_v33  ;;  %v6768_v33 = vld [vmem:[%s6746_s9 + $0x4] sm:$0x1]  ;;  %v2826_v48 = vrot.slane %v2824_v0, 4 }
  0xa5   : > { %5079 = vmatprep.subr.bf16.mxu0 %v5650_v49  ;;  %2623 = vmatmul.mubr.bf16.gmra.mrb[60].mxu1 %v4184_v9  ;;  %v2791_v30 = vshll.u32 %v6768_v33, 16  ;;  %v5663_v49 = vld [vmem:[%s7337_s3 + $0x550] sm:$0xff]  }
  0xa6   : > { %5130 = vmatpush3.bf16.msra.mxu1 %v5649_v2  ;;  %v2816_v2 = vor.u32 %v2815_v7, %v2812_v4  ;;  %v5673_v4 = vld [vmem:[%s7337_s3 + $0x568] sm:$0xff]   ;;  %v551_v7 = vshrl.u32 %v6906_v19, 16 }
  0xa7   : > { %5131 = vmatprep.subr.bf16.mxu1 %v5651_v10  ;;  %v2793_v14 = vrot.slane %v2791_v30, 5  ;;  %v5664_v10 = vld [vmem:[%s7337_s3 + $0x510] sm:$0xff]   ;;  %v6850_v30 = vld [vmem:[%s6746_s9 + $0x20] sm:$0xf] }
  0xa8   : > { %5080 = vmatpush3.bf16.msra.mxu0 %v5652_v18  ;;  %v2830_v18 = vor.u32 %v2829_v28, %v2826_v48  ;;  %v2817_v9 = vrot.slane %v2816_v2, 4  ;;  %v2841_v17 = vshll.u32 %v6850_v30, 16  ;;  %v560_v48 = vshll.u32 %v6909_v1, 16  ;;  %v6921_v28 = vld [vmem:[%s6746_s9 + $0x30] sm:$0xf] }
  0xa9   : > { %5313 = vmatprep.subr.bf16.mxu0 %v5654_v39  ;;  %v6935_v2 = vld [vmem:[%s6746_s9 + $0x34] sm:$0x1]  ;;  %v2869_v36 = vshll.u32 %v6921_v28, 16 }
  0xaa   : > { %5132 = vmatpush3.bf16.msra.mxu1 %v5653_v8  ;;  %v2831_v52 = vrot.slane %v2830_v18, 4  ;;  %v6857_v15 = vsel %vm5973_vm5, %v2817_v9, %v2821_v5  ;;  %v2838_v8 = vshrl.u32 %v6850_v30, 16  ;;  %v554_v5 = vshll.u32 %v6906_v19, 16  ;;  %v6938_v18 = vld [vmem:[%s6746_s9 + $0x38] sm:$0xf] }
  0xab   : > { %2664 = vmatmul.mubr.bf16.vlgmr.msra.gmra.mrb[56].mxu0 %v6438_v25  ;;  %v2789_v25 = vrot.slane %v2788_v59, 4  ;;  %5157 = vmatprep.subr.bf16.mxu1 %v5656_v58  ;;  %v2843_v59 = vrot.slane %v2841_v17, 5  ;;  %v6941_v9 = vld [vmem:[%s6746_s9 + $0x3c] sm:$0x1]  ;;  %v5678_v17 = vld [vmem:[%s7337_s3 + $0x570] sm:$0xff]  }
  0xac   : > { %2671 = vmatprep.mubr.bf16.mxu0 %v6518_v16  ;;  %5314 = vmatpush3.bf16.msra.mxu0 %v5654_v39  ;;  %v5657_v16 = vld [vmem:[%s7337_s3 + $0x500] sm:$0xff]   ;;  %v6869_v37 = vsel %vm5973_vm5, %v2831_v52, %v2835_v13  ;;  %v2840_v58 = vrot.slane %v2838_v8, 4  ;;  %v553_v52 = vrot.slane %v551_v7, 4  ;;  %v562_v8 = vrot.slane %v560_v48, 5 }
  0xad   : > { %v2794_v26 = vsel %vm5973_vm5, %v2789_v25, %v2793_v14  ;;  %5315 = vmatprep.subr.bf16.mxu0 %v5658_v42  ;;  %v6873_v14 = vcombine.low %v6802_v43, %v6814_v54  ;;  %v6880_v39 = vcombine.low %v6857_v15, %v6869_v37  ;;  %v5667_v25 = vld [vmem:[%s7337_s3 + $0x518] sm:$0xff]  }
  0xae   : > { %v4531_v11 = vcombine.low %v2794_v26, %v6806_v44  ;;  %v2844_v26 = vor.u32 %v2843_v59, %v2840_v58  ;;  %v2875_v58 = vshll.u32 %v6935_v2, 16  ;;  %v2880_v59 = vshrl.u32 %v6938_v18, 16 }
  0xb0   : > { %5316 = vmatpush3.bf16.msra.mxu0 %v5658_v42  ;;  %3674 = vmatprep.mubr.bf16.mxu1 %v4531_v11  ;;  %v5672_v11 = vld [vmem:[%s7337_s3 + $0x228] sm:$0xff]   ;;  %v2845_v45 = vrot.slane %v2844_v26, 4  ;;  %v5679_v26 = vld [vmem:[%s7337_s3 + $0x530] sm:$0xff]  }
  0xb1   : > { %5317 = vmatprep.subr.bf16.mxu0 %v5661_v6  ;;  %3675 = vmatmul.mubr.bf16.vlgmr.msra.gmra.mrb[64].mxu1 %v4527_v47  ;;  %v5670_v47 = vld [vmem:[%s7337_s3 + $0x560] sm:$0xff]  }
  0xb2   : > { %5158 = vmatpush3.bf16.msra.mxu1 %v5657_v16  ;;  %3682 = vmatprep.mubr.bf16.mxu1 %v6880_v39  ;;  %v2857_v16 = vrot.slane %v2855_v24, 5 }
  0xb3   : > { %2672 = vmatmul.mubr.bf16.gmra.mrb[60].mxu0 %v6507_v20  ;;  %v5665_v20 = vld [vmem:[%s7337_s3 + $0x218] sm:$0xff]   ;;  %5159 = vmatprep.subr.bf16.mxu1 %v5659_v38 }
  0xb4   : > { %2679 = vmatprep.mubr.bf16.mxu0 %v6589_v61  ;;  %5318 = vmatpush3.bf16.msra.mxu0 %v5661_v6  ;;  %v6853_v61 = vld [vmem:[%s6746_s9 + $0x24] sm:$0x1]  ;;  %v2858_v60 = vor.u32 %v2857_v16, %v2854_v41  ;;  %v2871_v41 = vrot.slane %v2869_v36, 5  ;;  %v4517_v36 = vrot.slane %v6765_v29, 9 }
  0xb5   : > { %5319 = vmatprep.subr.bf16.mxu0 %v5665_v20  ;;  %v2847_v22 = vshll.u32 %v6853_v61, 16  ;;  %v5671_v6 = vld [vmem:[%s7337_s3 + $0x520] sm:$0xff]  }
  0xb6   : > { %5160 = vmatpush3.bf16.msra.mxu1 %v5660_v3  ;;  %v2859_v0 = vrot.slane %v2858_v60, 4  ;;  %v5676_v3 = vld [vmem:[%s7337_s3 + $0x230] sm:$0xff]   ;;  %v5686_v29 = vld [vmem:[%s7337_s3 + $0x580] sm:$0xff]  }
  0xb7   : > { %5161 = vmatprep.subr.bf16.mxu1 %v5663_v49  ;;  %v2849_v42 = vrot.slane %v2847_v22, 5  ;;  %v6929_v49 = vcombine.low %v6850_v30, %v6860_v35  ;;  %v2866_v22 = vshrl.u32 %v6921_v28, 16 }
  0xb8   : > { %5320 = vmatpush3.bf16.msra.mxu0 %v5665_v20  ;;  %v5674_v20 = vld [vmem:[%s7337_s3 + $0x528] sm:$0xff]  }
  0xb9   : > { %3683 = vmatmul.mubr.bf16.gmra.mrb[68].mxu1 %v6873_v14  ;;  %5321 = vmatprep.subr.bf16.mxu0 %v5668_v40  ;;  %v6903_v38 = vsel %vm5973_vm5, %v2845_v45, %v2849_v42  ;;  %v2868_v42 = vrot.slane %v2866_v22, 4  ;;  %v5680_v45 = vld [vmem:[%s7337_s3 + $0x238] sm:$0xff]  }
  0xba   : > { %5162 = vmatpush3.bf16.msra.mxu1 %v5664_v10 }
  0xbb   : > { %2680 = vmatmul.mubr.bf16.gmra.mrb[64].mxu0 %v6581_v51  ;;  %v2861_v51 = vshll.u32 %v6863_v46, 16  ;;  %5163 = vmatprep.subr.bf16.mxu1 %v5666_v34  ;;  %v556_v34 = vrot.slane %v554_v5, 5  ;;  %v2872_v60 = vor.u32 %v2871_v41, %v2868_v42  ;;  %v5687_v41 = vld [vmem:[%s7337_s3 + $0x600] sm:$0xff]  }
  0xbc   : > { %5322 = vmatpush3.bf16.msra.mxu0 %v5668_v40  ;;  %v2883_v40 = vshll.u32 %v6938_v18, 16 }
  0xbd   : > { %v2863_v62 = vrot.slane %v2861_v51, 5  ;;  %5323 = vmatprep.subr.bf16.mxu0 %v5672_v11  ;;  %v557_v24 = vor.u32 %v556_v34, %v553_v52  ;;  %v2882_v51 = vrot.slane %v2880_v59, 4  ;;  %v2873_v5 = vrot.slane %v2872_v60, 4  ;;  %v5682_v34 = vld [vmem:[%s7337_s3 + $0x538] sm:$0xff]  }
  0xbe   : > { %5164 = vmatpush3.bf16.msra.mxu1 %v5667_v25  ;;  %v2889_v25 = vshll.u32 %v6941_v9, 16  ;;  %v2911_v52 = vrot.slane %v6768_v33, 5  ;;  %v6990_v33 = vcombine.low %v6921_v28, %v6938_v18  ;;  %v4164_v59 = vrot.slane %v6906_v19, 9 }
  0xbf   : > { %5165 = vmatprep.subr.bf16.mxu1 %v5670_v47  ;;  %v6925_v13 = vsel %vm5973_vm5, %v2859_v0, %v2863_v62  ;;  %v558_v16 = vrot.slane %v557_v24, 4  ;;  %v2877_v47 = vrot.slane %v2875_v58, 5  ;;  %v4518_v58 = vrot.slane %v6771_v27, 9 }
  0xc0   : > { %v6945_v10 = vcombine.low %v6903_v38, %v6925_v13  ;;  %5324 = vmatpush3.bf16.msra.mxu0 %v5672_v11  ;;  %v2885_v11 = vrot.slane %v2883_v40, 5  ;;  %v2891_v0 = vrot.slane %v2889_v25, 5  ;;  %v5688_v40 = vld [vmem:[%s7337_s3 + $0x5c8] sm:$0xff]   ;;  %v4519_v25 = vrot.slane %v6802_v43, 9 }
  0xc1   : > { %5325 = vmatprep.subr.bf16.mxu0 %v5676_v3  ;;  %v563_v62 = vsel %vm5973_vm5, %v558_v16, %v562_v8  ;;  %v5691_v16 = vld [vmem:[%s7337_s3 + $0x608] sm:$0xff]   ;;  %v4521_v60 = vrot.slane %v6850_v30, 9 }
  0xc2   : > { %5166 = vmatpush3.bf16.msra.mxu1 %v5671_v6  ;;  %3690 = vmatprep.mubr.bf16.mxu1 %v6945_v10  ;;  %v2886_v6 = vor.u32 %v2885_v11, %v2882_v51  ;;  %v4190_v7 = vcombine.low %v6754_v21, %v563_v62  ;;  %v2915_v21 = vrot.slane %v6774_v23, 5  ;;  %v4539_v23 = vcombine.low %v6771_v27, %v6802_v43 }
  0xc3   : > { %5167 = vmatprep.subr.bf16.mxu1 %v5673_v4  ;;  %3691 = vmatmul.mubr.bf16.gmra.mrb[72].mxu1 %v6929_v49  ;;  %v4189_v4 = vcombine.low %v6711_v57, %v6906_v19  ;;  %v6978_v57 = vsel %vm5973_vm5, %v2873_v5, %v2877_v47  ;;  %v568_v27 = vrot.slane %v6909_v1, 5  ;;  %v2919_v19 = vrot.slane %v6811_v53, 5  ;;  %v5690_v1 = vld [vmem:[%s7337_s3 + $0x588] sm:$0xff]  }
  0xc4   : > { %5326 = vmatpush3.bf16.msra.mxu0 %v5676_v3  ;;  %v5681_v3 = vld [vmem:[%s7337_s3 + $0x578] sm:$0xff]   ;;  %v2887_v48 = vrot.slane %v2886_v6, 4  ;;  %2687 = vmatprep.mubr.bf16.mxu0 %v4190_v7  ;;  %v2916_v24 = vsel %vm5967_vm4, %v4518_v58, %v2915_v21  ;;  %v4520_v51 = vrot.slane %v6814_v54, 9  ;;  %v2923_v53 = vrot.slane %v6817_v12, 5  ;;  %v5694_v12 = vld [vmem:[%s7337_s3 + $0x650] sm:$0xff]  }
  0xc5   : > { %5327 = vmatprep.subr.bf16.mxu0 %v5680_v45  ;;  %2688 = vmatmul.mubr.bf16.gmra.mrb[68].mxu0 %v4189_v4  ;;  %v569_v43 = vsel %vm5967_vm4, %v4164_v59, %v568_v27  ;;  %v2927_v62 = vrot.slane %v6853_v61, 5  ;;  %v5696_v4 = vld [vmem:[%s7337_s3 + $0x610] sm:$0xff]   ;;  %v5699_v7 = vld [vmem:[%s7337_s3 + $0x598] sm:$0xff]   ;;  %v4541_v5 = vcombine.low %v6860_v35, %v6921_v28  ;;  %v4523_v21 = vrot.slane %v6921_v28, 9  ;;  %v5705_v59 = vld [vmem:[%s7337_s3 + $0x620] sm:$0xff]  }
  0xc6   : > { %5168 = vmatpush3.bf16.msra.mxu1 %v5674_v20  ;;  %v5684_v20 = vld [vmem:[%s7337_s3 + $0x5c0] sm:$0xff]   ;;  %v6986_v8 = vsel %vm5973_vm5, %v2887_v48, %v2891_v0  ;;  %5329 = vmatprep.mubr.bf16.mxu0 %v6631_v32  ;;  %v2912_v32 = vsel %vm5967_vm4, %v4517_v36, %v2911_v52  ;;  %v4191_v47 = vcombine.low %v6730_v50, %v569_v43  ;;  %v5697_v50 = vld [vmem:[%s7337_s3 + $0x5d8] sm:$0xff]   ;;  %v4524_v28 = vrot.slane %v6938_v18, 9  ;;  %v5709_v27 = vld [vmem:[%s7337_s3 + $0x628] sm:$0xff]  }
  0xc7   : > { %5169 = vmatprep.subr.bf16.mxu1 %v5678_v17  ;;  %v5685_v17 = vld [vmem:[%s7337_s3 + $0x640] sm:$0xff]   ;;  %v6997_v22 = vcombine.low %v6978_v57, %v6986_v8  ;;  %v4535_v42 = vcombine.low %v2912_v32, %v2916_v24  ;;  %v7051_v11 = vsel %vm5967_vm4, %v4520_v51, %v2923_v53  ;;  %v5698_v61 = vld [vmem:[%s7337_s3 + $0x658] sm:$0xff]   ;;  %v5708_v32 = vld [vmem:[%s7337_s3 + $0x5a8] sm:$0xff]  }
  0xc8   : > { %5328 = vmatpush3.bf16.msra.mxu0 %v5680_v45  ;;  %v5695_v45 = vld [vmem:[%s7337_s3 + $0x590] sm:$0xff]   ;;  %v5702_v48 = vld [vmem:[%s7337_s3 + $0x5e0] sm:$0xff]   ;;  %v5716_v43 = vld [vmem:[%s7337_s3 + $0x678] sm:$0xff]  }
  0xc9   : > { %5197 = vmatprep.subr.bf16.mxu0 %v5684_v20  ;;  %3698 = vmatprep.mubr.bf16.mxu1 %v6997_v22  ;;  %v7086_v20 = vsel %vm5967_vm4, %v4521_v60, %v2927_v62  ;;  %v5703_v52 = vld [vmem:[%s7337_s3 + $0x660] sm:$0xff]   ;;  %v5714_v51 = vld [vmem:[%s7337_s3 + $0x630] sm:$0xff]  }
  0xca   : > { %5170 = vmatpush3.bf16.msra.mxu1 %v5679_v26  ;;  %v4540_v26 = vcombine.low %v6814_v54, %v6850_v30  ;;  %v2920_v54 = vsel %vm5967_vm4, %v4519_v25, %v2919_v19  ;;  %v2931_v30 = vrot.slane %v6863_v46, 5  ;;  %v5700_v46 = vld [vmem:[%s7337_s3 + $0x618] sm:$0xff]   ;;  %v7104_v36 = vld [vmem:[%s6746_s9 + $0x40] sm:$0xf]  ;;  %v5713_v19 = vld [vmem:[%s7337_s3 + $0x5b0] sm:$0xff]   ;;  %v4548_v60 = vcombine.low %v7051_v11, %v7086_v20 }
  0xcb   : > { %5171 = vmatprep.subr.bf16.mxu1 %v5681_v3  ;;  %3699 = vmatmul.mubr.bf16.gmra.mrb[76].mxu1 %v6990_v33  ;;  %v4547_v6 = vcombine.low %v2916_v24, %v2920_v54  ;;  %v7062_v0 = vcombine.low %v2920_v54, %v7051_v11  ;;  %v4522_v3 = vrot.slane %v6860_v35, 9  ;;  %v5707_v24 = vld [vmem:[%s7337_s3 + $0x668] sm:$0xff]   ;;  %v5719_v53 = vld [vmem:[%s7337_s3 + $0x680] sm:$0xff]  }
  0xcc   : > { %3739 = vmatprep.mubr.bf16.mxu1 %v4539_v23  ;;  %v2935_v23 = vrot.slane %v6935_v2, 5  ;;  %v2939_v2 = vrot.slane %v6941_v9, 5  ;;  %v5712_v9 = vld [vmem:[%s7337_s3 + $0x670] sm:$0xff]  }
  0xcd   : > { %5330 = vmatmul.mubr.bf16.vlgmr.msra.gmra.mrb[32].mxu0 %v6679_v31  ;;  %v5689_v31 = vld [vmem:[%s7337_s3 + $0x648] sm:$0xff]   ;;  %v7090_v35 = vsel %vm5967_vm4, %v4522_v3, %v2931_v30 }
  0xce   : > { %5172 = vmatpush3.bf16.msra.mxu1 %v5682_v34  ;;  %5198 = vmatpush3.bf16.msra.mxu0 %v5686_v29  ;;  %v5704_v34 = vld [vmem:[%s7337_s3 + $0x5a0] sm:$0xff]   ;;  %v7108_v58 = vcombine.low %v7086_v20, %v7090_v35  ;;  %v4542_v29 = vcombine.low %v6938_v18, %v7104_v36  ;;  %v7135_v25 = vsel %vm5967_vm4, %v4523_v21, %v2935_v23  ;;  %v5721_v20 = vld [vmem:[%s7337_s3 + $0x690] sm:$0xff]  }
  0xcf   : > { %5237 = vmatprep.subr.bf16.mxu1 %v5685_v17  ;;  %5333 = vmatprep.mubr.bf16.mxu0 %v6723_v63  ;;  %v5693_v63 = vld [vmem:[%s7337_s3 + $0x5d0] sm:$0xff]   ;;  %v5706_v17 = vld [vmem:[%s7337_s3 + $0x5e8] sm:$0xff]   ;;  %v7139_v18 = vsel %vm5967_vm4, %v4524_v28, %v2939_v2  ;;  %v4544_v21 = vcombine.low %v6869_v37, %v6903_v38  ;;  %v2778_v23 = vld [vmem:[%s6746_s9 + $0x44] sm:$0x1]  ;;  %v4549_v37 = vcombine.low %v7090_v35, %v7135_v25 }
  0xd0   : > { %5199 = vmatprep.subr.bf16.mxu0 %v5688_v40  ;;  %v5711_v40 = vld [vmem:[%s7337_s3 + $0x5f0] sm:$0xff]   ;;  %v5722_v2 = vld [vmem:[%s7337_s3 + $0x698] sm:$0xff]   ;;  %v2951_v38 = vshll.u32 %v2778_v23, 16  ;;  %v5723_v35 = vld [vmem:[%s7337_s3 + $0x6a0] sm:$0xff]  }
  0xd2   : > { %5200 = vmatpush3.bf16.msra.mxu0 %v5690_v1  ;;  %v5717_v1 = vld [vmem:[%s7337_s3 + $0x5b8] sm:$0xff]  }
  0xd3   : > { %3740 = vmatmul.mubr.bf16.vlgmr.msra.gmra.mrb[80].mxu1 %v4535_v42  ;;  %5201 = vmatprep.subr.bf16.mxu0 %v5693_v63  ;;  %v5715_v42 = vld [vmem:[%s7337_s3 + $0x5f8] sm:$0xff]  }
  0xd4   : > { %5238 = vmatpush3.bf16.msra.mxu1 %v5687_v41  ;;  %3747 = vmatprep.mubr.bf16.mxu1 %v4540_v26  ;;  %v7149_v41 = vcombine.low %v7135_v25, %v7139_v18  ;;  %v5718_v63 = vld [vmem:[%s7337_s3 + $0x638] sm:$0xff]   ;;  %v2953_v25 = vrot.slane %v2951_v38, 5 }
  0xd5   : > { %5239 = vmatprep.subr.bf16.mxu1 %v5689_v31  ;;  %5334 = vmatmul.mubr.bf16.gmra.mrb[36].mxu0 %v4191_v47  ;;  %v4543_v31 = vcombine.low %v6806_v44, %v6857_v15 }
  0xd6   : > { %5202 = vmatpush3.bf16.msra.mxu0 %v5695_v45  ;;  %3804 = vmatprep.mubr.bf16.mxu0 %v4547_v6  ;;  %v2942_v45 = vshrl.u32 %v7104_v36, 16 }
  0xd7   : > { %5203 = vmatprep.subr.bf16.mxu0 %v5697_v50  ;;  %v2945_v50 = vshll.u32 %v7104_v36, 16 }
  0xd8   : > { %5240 = vmatpush3.bf16.msra.mxu1 %v5691_v16  ;;  %v7167_v16 = vld [vmem:[%s6746_s9 + $0x48] sm:$0xf] }
  0xd9   : > { %5241 = vmatprep.subr.bf16.mxu1 %v5694_v12  ;;  %v5720_v12 = vld [vmem:[%s7337_s3 + $0x688] sm:$0xff]  }
  0xda   : > { %5204 = vmatpush3.bf16.msra.mxu0 %v5699_v7 }
  0xdb   : > { %3748 = vmatmul.mubr.bf16.gmra.mrb[84].mxu1 %v7062_v0  ;;  %5205 = vmatprep.subr.bf16.mxu0 %v5702_v48  ;;  %v2944_v48 = vrot.slane %v2942_v45, 4 }
  0xdc   : > { %5242 = vmatpush3.bf16.msra.mxu1 %v5696_v4  ;;  %3755 = vmatprep.mubr.bf16.mxu1 %v4541_v5  ;;  %v2962_v4 = vshrl.u32 %v7167_v16, 16 }
  0xdd   : > { %5243 = vmatprep.subr.bf16.mxu1 %v5698_v61 }
  0xde   : > { %5206 = vmatpush3.bf16.msra.mxu0 %v5704_v34 }
  0xdf   : > { %5207 = vmatprep.subr.bf16.mxu0 %v5706_v17 }
  0xe0   : > { %5244 = vmatpush3.bf16.msra.mxu1 %v5700_v46  ;;  %v2947_v46 = vrot.slane %v2945_v50, 5 }
  0xe1   : > { %5245 = vmatprep.subr.bf16.mxu1 %v5703_v52  ;;  %v2964_v52 = vrot.slane %v2962_v4, 4 }
  0xe2   : > { %5208 = vmatpush3.bf16.msra.mxu0 %v5708_v32 }
  0xe3   : > { %3756 = vmatmul.mubr.bf16.gmra.mrb[88].mxu1 %v7108_v58  ;;  %5209 = vmatprep.subr.bf16.mxu0 %v5711_v40 }
  0xe4   : > { %5246 = vmatpush3.bf16.msra.mxu1 %v5705_v59  ;;  %3763 = vmatprep.mubr.bf16.mxu1 %v4542_v29  ;;  %v7194_v59 = vld [vmem:[%s6746_s9 + $0x4c] sm:$0x1] }
  0xe5   : > { %5247 = vmatprep.subr.bf16.mxu1 %v5707_v24  ;;  %v2971_v40 = vshll.u32 %v7194_v59, 16 }
  0xe6   : > { %5210 = vmatpush3.bf16.msra.mxu0 %v5713_v19  ;;  %v4525_v19 = vrot.slane %v7104_v36, 9 }
  0xe7   : > { %5211 = vmatprep.subr.bf16.mxu0 %v5715_v42 }
  0xe8   : > { %5248 = vmatpush3.bf16.msra.mxu1 %v5709_v27 }
  0xe9   : > { %5249 = vmatprep.subr.bf16.mxu1 %v5712_v9 }
  0xea   : > { %5212 = vmatpush3.bf16.msra.mxu0 %v5717_v1 }
  0xeb   : > { %3764 = vmatmul.mubr.bf16.gmra.mrb[92].mxu1 %v7149_v41  ;;  %5337 = vmatprep.subr.bf16.mxu0 %v5719_v53 }
  0xec   : > { %5250 = vmatpush3.bf16.msra.mxu1 %v5714_v51  ;;  %3869 = vmatprep.mubr.bf16.mxu1 %v6880_v39  ;;  %v2965_v39 = vshll.u32 %v7167_v16, 16 }
  0xed   : > { %5251 = vmatprep.subr.bf16.mxu1 %v5716_v43  ;;  %3805 = vmatmul.mubr.bf16.vlgmr.msra.gmra.mrb[72].mxu0 %v4543_v31  ;;  %v2973_v31 = vrot.slane %v2971_v40, 5 }
  0xee   : > { %5338 = vmatpush3.bf16.msra.mxu0 %v5719_v53  ;;  %3812 = vmatprep.mubr.bf16.mxu0 %v4548_v60  ;;  %v2967_v34 = vrot.slane %v2965_v39, 5 }
  0xef   : > { %5339 = vmatprep.subr.bf16.mxu0 %v5720_v12 }
  0xf0   : > { %5252 = vmatpush3.bf16.msra.mxu1 %v5718_v63  ;;  %v2968_v27 = vor.u32 %v2967_v34, %v2964_v52  ;;  %v2979_v34 = vrot.slane %v7194_v59, 5 }
  0xf1   : > { %5361 = vmatprep.subr.bf16.mxu1 %v5719_v53 }
  0xf2   : > { %5340 = vmatpush3.bf16.msra.mxu0 %v5720_v12 }
  0xf3   : > { %3870 = vmatmul.mubr.bf16.vlgmr.msra.gmra.mrb[96].mxu1 %v6873_v14  ;;  %v2948_v14 = vor.u32 %v2947_v46, %v2944_v48  ;;  %5341 = vmatprep.subr.bf16.mxu0 %v5721_v20  ;;  %v5727_v48 = vld [vmem:[%s7337_s3 + $0x6b8] sm:$0xff]  }
  0xf4   : > { %5369 = vmatpush3.bf16.msra.mxu1 %v5719_v53  ;;  %3877 = vmatprep.mubr.bf16.mxu1 %v6945_v10  ;;  %v2959_v10 = vrot.slane %v2778_v23, 5  ;;  %v2969_v53 = vrot.slane %v2968_v27, 4 }
  0xf5   : > { %5362 = vmatprep.subr.bf16.mxu1 %v5720_v12  ;;  %3813 = vmatmul.mubr.bf16.gmra.mrb[76].mxu0 %v4544_v21  ;;  %v2949_v1 = vrot.slane %v2948_v14, 4 }
  0xf6   : > { %5342 = vmatpush3.bf16.msra.mxu0 %v5721_v20  ;;  %3820 = vmatprep.mubr.bf16.mxu0 %v4549_v37  ;;  %v2974_v45 = vsel %vm5973_vm5, %v2969_v53, %v2973_v31 }
  0xf7   : > { %5343 = vmatprep.subr.bf16.mxu0 %v5722_v2 }
  0xf8   : > { %5370 = vmatpush3.bf16.msra.mxu1 %v5720_v12  ;;  %v7212_v12 = vsel %vm5967_vm4, %v4525_v19, %v2959_v10 }
  0xf9   : > { %5363 = vmatprep.subr.bf16.mxu1 %v5721_v20 }
  0xfa   : > { %5344 = vmatpush3.bf16.msra.mxu0 %v5722_v2 }
  0xfb   : > { %3878 = vmatmul.mubr.bf16.gmra.mrb[100].mxu1 %v6929_v49  ;;  %v5724_v49 = vld [vmem:[%s7337_s3 + $0x6a8] sm:$0xff]   ;;  %5345 = vmatprep.subr.bf16.mxu0 %v5723_v35 }
  0xfc   : > { %5371 = vmatpush3.bf16.msra.mxu1 %v5721_v20  ;;  %3885 = vmatprep.mubr.bf16.mxu1 %v6997_v22 }
  0xfd   : > { %5364 = vmatprep.subr.bf16.mxu1 %v5722_v2 }
  0xfe   : > { %v4789_v44 = vpop.f32.mrb[0].mxu0  ;;  %5346 = vmatpush3.bf16.msra.mxu0 %v5723_v35 }
  0xff   : > { %v4829_v26 = vpop.f32.mrb[0].mxu1  ;;  %v4790_v62 = vpop.f32.mrb[1].mxu0  ;;  %5347 = vmatprep.subr.bf16.mxu0 %v5724_v49 }
 0x100   : > { %v4830_v47 = vpop.f32.mrb[1].mxu1  ;;  %v4791_v3 = vadd.f32 %v4790_v62, %v4789_v44  ;;  %v4792_v7 = vpop.f32.mrb[2].mxu0  ;;  %5372 = vmatpush3.bf16.msra.mxu1 %v5722_v2 }
 0x101   : > { %v4831_v15 = vadd.f32 %v4830_v47, %v4829_v26  ;;  %v4832_v54 = vpop.f32.mrb[2].mxu1  ;;  %v4793_v61 = vpop.f32.mrb[3].mxu0  ;;  %v4545_v47 = vcombine.low %v6925_v13, %v6978_v57  ;;  %v4550_v13 = vcombine.low %v7139_v18, %v7212_v12  ;;  %v2954_v57 = vsel %vm5973_vm5, %v2949_v1, %v2953_v25  ;;  %5365 = vmatprep.subr.bf16.mxu1 %v5723_v35  ;;  %v5726_v18 = vld [vmem:[%s7337_s3 + $0x6b0] sm:$0xff]  }
 0x102   : > { %v4833_v6 = vpop.f32.mrb[3].mxu1  ;;  %v4794_v11 = vadd.f32 %v4793_v61, %v4792_v7  ;;  %v4552_v4 = vcombine.low %v2954_v57, %v2974_v45  ;;  %v4546_v7 = vcombine.low %v6986_v8, %v2954_v57  ;;  %5348 = vmatpush3.bf16.msra.mxu0 %v5724_v49  ;;  %v4551_v8 = vcombine.low %v7104_v36, %v7167_v16 }
 0x103   : > { %v4834_v30 = vadd.f32 %v4833_v6, %v4832_v54  ;;  %v7182_v5 = vadd.f32 %v4831_v15, %v4791_v3  ;;  %3821 = vmatmul.mubr.bf16.gmra.mrb[80].mxu0 %v4545_v47  ;;  %3886 = vmatmul.mubr.bf16.gmra.mrb[104].mxu1 %v6990_v33  ;;  %v4526_v33 = vrot.slane %v7167_v16, 9 }
 0x104   : > { %3828 = vmatprep.mubr.bf16.mxu0 %v4550_v13  ;;  %5373 = vmatpush3.bf16.msra.mxu1 %v5723_v35 }
 0x105   : > { %v7190_v17 = vadd.f32 %v4834_v30, %v4794_v11  ;;  %5366 = vmatprep.subr.bf16.mxu1 %v5724_v49  ;;  %3893 = vmatprep.mubr.bf16.mxu1 %v4552_v4  ;;  %v2980_v36 = vsel %vm5967_vm4, %v4526_v33, %v2979_v34 }
 0x106   : > { %v4795_v51 = vpop.f32.mrb[4].mxu0  ;;  %5349 = vmatprep.subr.bf16.mxu0 %v5726_v18 }
 0x107   : > { %v4835_v28 = vpop.f32.mrb[4].mxu1  ;;  %v4796_v43 = vpop.f32.mrb[5].mxu0  ;;  %5350 = vmatpush3.bf16.msra.mxu0 %v5726_v18 }
 0x108   : > { %v4836_v32 = vpop.f32.mrb[5].mxu1  ;;  %v4797_v26 = vadd.f32 %v4796_v43, %v4795_v51  ;;  %v4798_v63 = vpop.f32.mrb[6].mxu0  ;;  %5374 = vmatpush3.bf16.msra.mxu1 %v5724_v49  ;;  %5351 = vmatprep.subr.bf16.mxu0 %v5727_v48 }
 0x109   : > { %v4837_v24 = vadd.f32 %v4836_v32, %v4835_v28  ;;  %v4838_v29 = vpop.f32.mrb[6].mxu1  ;;  %v4799_v44 = vpop.f32.mrb[7].mxu0  ;;  %5367 = vmatprep.subr.bf16.mxu1 %v5726_v18 }
 0x10a   : > { %v4839_v9 = vpop.f32.mrb[7].mxu1  ;;  %v4800_v54 = vadd.f32 %v4799_v44, %v4798_v63 }
 0x10b   : > { %v4840_v42 = vadd.f32 %v4839_v9, %v4838_v29  ;;  %v7214_v15 = vadd.f32 %v4837_v24, %v4797_v26  ;;  %3829 = vmatmul.mubr.bf16.gmra.mrb[84].mxu0 %v4546_v7  ;;  %3894 = vmatmul.mubr.bf16.gmra.mrb[108].mxu1 %v4551_v8  ;;  %v4553_v29 = vcombine.low %v7212_v12, %v2980_v36 }
 0x10c   : > { %5353 = vmatprep.mubr.bf16.mxu0 %v7062_v0  ;;  %5375 = vmatpush3.bf16.msra.mxu1 %v5726_v18 }
 0x10d   : > { %v7226_v50 = vadd.f32 %v4840_v42, %v4800_v54  ;;  %5352 = vmatpush3.bf16.msra.mxu0 %v5727_v48  ;;  %5368 = vmatprep.subr.bf16.mxu1 %v5727_v48 }
 0x10e   : > { %v4801_v56 = vpop.f32.mrb[8].mxu0  ;;  %5357 = vmatprep.mubr.bf16.mxu1 %v7149_v41 }
 0x10f   : > { %v4841_v60 = vpop.f32.mrb[8].mxu1  ;;  %v4802_v30 = vpop.f32.mrb[9].mxu0 }
 0x110   : > { %v4842_v62 = vpop.f32.mrb[9].mxu1  ;;  %v4803_v61 = vadd.f32 %v4802_v30, %v4801_v56  ;;  %v4804_v11 = vpop.f32.mrb[10].mxu0  ;;  %5376 = vmatpush3.bf16.msra.mxu1 %v5727_v48 }
 0x111   : > { %v4843_v22 = vadd.f32 %v4842_v62, %v4841_v60  ;;  %v4844_v6 = vpop.f32.mrb[10].mxu1  ;;  %v4805_v46 = vpop.f32.mrb[11].mxu0 }
 0x112   : > { %v4845_v39 = vpop.f32.mrb[11].mxu1  ;;  %v4806_v52 = vadd.f32 %v4805_v46, %v4804_v11 }
 0x113   : > { %v4846_v3 = vadd.f32 %v4845_v39, %v4844_v6  ;;  %v7236_v20 = vadd.f32 %v4843_v22, %v4803_v61  ;;  %5354 = vmatmul.mubr.bf16.vlgmr.msra.gmra.mrb[32].mxu0 %v7108_v58  ;;  %5358 = vmatmul.mubr.bf16.vlgmr.msra.gmra.mrb[112].mxu1 %v4553_v29 }
 0x115   : > { %v7242_v21 = vadd.f32 %v4846_v3, %v4806_v52 }
 0x116   : > { %v4807_v59 = vpop.f32.mrb[12].mxu0 }
 0x117   : > { %v4847_v23 = vpop.f32.mrb[12].mxu1  ;;  %v4808_v24 = vpop.f32.mrb[13].mxu0 }
 0x118   : > { %v4848_v28 = vpop.f32.mrb[13].mxu1  ;;  %v4809_v0 = vadd.f32 %v4808_v24, %v4807_v59  ;;  %v4810_v37 = vpop.f32.mrb[14].mxu0 }
 0x119   : > { %v4849_v32 = vadd.f32 %v4848_v28, %v4847_v23  ;;  %v4850_v2 = vpop.f32.mrb[14].mxu1  ;;  %v4811_v38 = vpop.f32.mrb[15].mxu0 }
 0x11a   : > { %v4851_v16 = vpop.f32.mrb[15].mxu1  ;;  %v4812_v55 = vadd.f32 %v4811_v38, %v4810_v37 }
 0x11b   : > { %v4852_v14 = vadd.f32 %v4851_v16, %v4850_v2  ;;  %v7250_v27 = vadd.f32 %v4849_v32, %v4809_v0 }
 0x11d   : > { %v1806_v19 = vadd.f32 %v4852_v14, %v4812_v55 }
 0x11e   : > { %v4869_v51 = vpop.f32.mrb[16].mxu0 }
 0x11f   : > { %v4909_v40 = vpop.f32.mrb[16].mxu1  ;;  %v4870_v43 = vpop.f32.mrb[17].mxu0 }
 0x120   : > { %v4910_v9 = vpop.f32.mrb[17].mxu1  ;;  %v4871_v35 = vadd.f32 %v4870_v43, %v4869_v51  ;;  %v4872_v25 = vpop.f32.mrb[18].mxu0 }
 0x121   : > { %v4911_v10 = vadd.f32 %v4910_v9, %v4909_v40  ;;  %v4912_v41 = vpop.f32.mrb[18].mxu1  ;;  %v4873_v58 = vpop.f32.mrb[19].mxu0 }
 0x122   : > { %v4913_v42 = vpop.f32.mrb[19].mxu1  ;;  %v1844_v53 = vadd.f32 %v4871_v35, %v7182_v5  ;;  %v4874_v31 = vadd.f32 %v4873_v58, %v4872_v25 }
 0x123   : > { %v4914_v1 = vadd.f32 %v4913_v42, %v4912_v41 }
 0x124   : > { %v1909_v47 = vadd.f32 %v4911_v10, %v1844_v53  ;;  %v1847_v12 = vadd.f32 %v4874_v31, %v7190_v17 }
 0x126   : > { %v1912_v13 = vadd.f32 %v4914_v1, %v1847_v12  ;;  %v4875_v57 = vpop.f32.mrb[20].mxu0 }
 0x127   : > { %v4915_v26 = vpop.f32.mrb[20].mxu1  ;;  %v4876_v60 = vpop.f32.mrb[21].mxu0 }
 0x128   : > { %v4916_v63 = vpop.f32.mrb[21].mxu1  ;;  %v4877_v62 = vadd.f32 %v4876_v60, %v4875_v57  ;;  %v4878_v22 = vpop.f32.mrb[22].mxu0 }
 0x129   : > { %v4917_v44 = vadd.f32 %v4916_v63, %v4915_v26  ;;  %v4918_v54 = vpop.f32.mrb[22].mxu1  ;;  %v4879_v6 = vpop.f32.mrb[23].mxu0 }
 0x12a   : > { %v4919_v49 = vpop.f32.mrb[23].mxu1  ;;  %v1852_v4 = vadd.f32 %v4877_v62, %v7214_v15  ;;  %v4880_v39 = vadd.f32 %v4879_v6, %v4878_v22 }
 0x12b   : > { %v4920_v45 = vadd.f32 %v4919_v49, %v4918_v54 }
 0x12c   : > { %v1917_v56 = vadd.f32 %v4917_v44, %v1852_v4  ;;  %v1855_v3 = vadd.f32 %v4880_v39, %v7226_v50 }
 0x12e   : > { %v1920_v61 = vadd.f32 %v4920_v45, %v1855_v3  ;;  %v4881_v11 = vpop.f32.mrb[24].mxu0 }
 0x12f   : > { %v4921_v5 = vpop.f32.mrb[24].mxu1  ;;  %v4882_v46 = vpop.f32.mrb[25].mxu0 }
 0x130   : > { %v4922_v18 = vpop.f32.mrb[25].mxu1  ;;  %v4883_v52 = vadd.f32 %v4882_v46, %v4881_v11  ;;  %v4884_v8 = vpop.f32.mrb[26].mxu0 }
 0x131   : > { %v4923_v7 = vadd.f32 %v4922_v18, %v4921_v5  ;;  %v4924_v17 = vpop.f32.mrb[26].mxu1  ;;  %v4885_v33 = vpop.f32.mrb[27].mxu0 }
 0x132   : > { %v4925_v30 = vpop.f32.mrb[27].mxu1  ;;  %v1860_v34 = vadd.f32 %v4883_v52, %v7236_v20  ;;  %v4886_v23 = vadd.f32 %v4885_v33, %v4884_v8 }
 0x133   : > { %v4926_v48 = vadd.f32 %v4925_v30, %v4924_v17 }
 0x134   : > { %v1925_v28 = vadd.f32 %v4923_v7, %v1860_v34  ;;  %v1863_v32 = vadd.f32 %v4886_v23, %v7242_v21 }
 0x136   : > { %v1928_v16 = vadd.f32 %v4926_v48, %v1863_v32  ;;  %v4887_v59 = vpop.f32.mrb[28].mxu0 }
 0x137   : > { %v4927_v15 = vpop.f32.mrb[28].mxu1  ;;  %v4888_v24 = vpop.f32.mrb[29].mxu0 }
 0x138   : > { %v4928_v2 = vpop.f32.mrb[29].mxu1  ;;  %v4889_v0 = vadd.f32 %v4888_v24, %v4887_v59  ;;  %v4890_v37 = vpop.f32.mrb[30].mxu0 }
 0x139   : > { %v4929_v36 = vadd.f32 %v4928_v2, %v4927_v15  ;;  %v4930_v50 = vpop.f32.mrb[30].mxu1  ;;  %v4891_v38 = vpop.f32.mrb[31].mxu0 }
 0x13a   : > { %v4931_v14 = vpop.f32.mrb[31].mxu1  ;;  %v1868_v55 = vadd.f32 %v4889_v0, %v7250_v27  ;;  %v4892_v40 = vadd.f32 %v4891_v38, %v4890_v37 }
 0x13b   : > { %v4932_v29 = vadd.f32 %v4931_v14, %v4930_v50 }
 0x13c   : > { %v1933_v20 = vadd.f32 %v4929_v36, %v1868_v55  ;;  %v1871_v9 = vadd.f32 %v4892_v40, %v1806_v19 }
 0x13e   : > { %v1936_v42 = vadd.f32 %v4932_v29, %v1871_v9 }
 0x13f   : > { %v4961_v10 = vpop.f32.mrb[32].mxu1 }
 0x140   : > { %v4962_v41 = vpop.f32.mrb[33].mxu1 }
 0x141   : > { %v4963_v21 = vadd.f32 %v4962_v41, %v4961_v10  ;;  %v4964_v51 = vpop.f32.mrb[34].mxu1 }
 0x142   : > { %v4965_v1 = vpop.f32.mrb[35].mxu1 }
 0x143   : > { %v5383_v43 = vadd.f32 %v4963_v21, %v1909_v47  ;;  %v4966_v35 = vadd.f32 %v4965_v1, %v4964_v51 }
 0x145   : > { %v5395_v25 = vadd.f32 %v4966_v35, %v1912_v13 }
 0x147   : > { %v4967_v58 = vpop.f32.mrb[36].mxu1 }
 0x148   : > { %v4968_v53 = vpop.f32.mrb[37].mxu1 }
 0x149   : > { %v4969_v31 = vadd.f32 %v4968_v53, %v4967_v58  ;;  %v4970_v26 = vpop.f32.mrb[38].mxu1 }
 0x14a   : > { %v4971_v63 = vpop.f32.mrb[39].mxu1 }
 0x14b   : > { %v5377_v12 = vadd.f32 %v4969_v31, %v1917_v56  ;;  %v4972_v44 = vadd.f32 %v4971_v63, %v4970_v26 }
 0x14d   : > { %v5389_v27 = vadd.f32 %v4972_v44, %v1920_v61 }
 0x14f   : > { %v4973_v54 = vpop.f32.mrb[40].mxu1 }
 0x150   : > { %v4974_v49 = vpop.f32.mrb[41].mxu1 }
 0x151   : > { %v4975_v19 = vadd.f32 %v4974_v49, %v4973_v54  ;;  %v4976_v57 = vpop.f32.mrb[42].mxu1 }
 0x152   : > { %v4977_v45 = vpop.f32.mrb[43].mxu1 }
 0x153   : > { %v5408_v60 = vadd.f32 %v4975_v19, %v1925_v28  ;;  %v4978_v62 = vadd.f32 %v4977_v45, %v4976_v57 }
 0x155   : > { %v5422_v22 = vadd.f32 %v4978_v62, %v1928_v16 }
 0x157   : > { %v4979_v6 = vpop.f32.mrb[44].mxu1 }
 0x158   : > { %v4980_v47 = vpop.f32.mrb[45].mxu1 }
 0x159   : > { %v4981_v13 = vadd.f32 %v4980_v47, %v4979_v6  ;;  %v4982_v39 = vpop.f32.mrb[46].mxu1 }
 0x15a   : > { %v4983_v18 = vpop.f32.mrb[47].mxu1 }
 0x15b   : > { %v5401_v56 = vadd.f32 %v4981_v13, %v1933_v20  ;;  %v4984_v17 = vadd.f32 %v4983_v18, %v4982_v39 }
 0x15d   : > { %v5415_v48 = vadd.f32 %v4984_v17, %v1936_v42 }
 0x15e   : > { %v5001_v4 = vpop.f32.mrb[40].mxu0 }
 0x15f   : > { %v5002_v5 = vpop.f32.mrb[41].mxu0 }
 0x160   : > { %v5003_v3 = vadd.f32 %v5002_v5, %v5001_v4  ;;  %v5004_v7 = vpop.f32.mrb[42].mxu0  ;;  %v5041_v52 = vpop.f32.mrb[48].mxu1 }
 0x161   : > { %v5005_v30 = vpop.f32.mrb[43].mxu0  ;;  %v5042_v8 = vpop.f32.mrb[49].mxu1 }
 0x162   : > { %v5384_v61 = vadd.f32 %v5383_v43, %v5003_v3  ;;  %v5006_v11 = vadd.f32 %v5005_v30, %v5004_v7  ;;  %v5043_v33 = vadd.f32 %v5042_v8, %v5041_v52  ;;  %v5044_v34 = vpop.f32.mrb[50].mxu1 }
 0x163   : > { %v5045_v15 = vpop.f32.mrb[51].mxu1 }
 0x164   : > { %v5396_v46 = vadd.f32 %v5395_v25, %v5006_v11  ;;  %v5385_v32 = vadd.f32 %v5384_v61, %v5043_v33  ;;  %v5046_v2 = vadd.f32 %v5045_v15, %v5044_v34 }
 0x166   : > { %v5007_v23 = vpop.f32.mrb[44].mxu0  ;;  %v5397_v59 = vadd.f32 %v5396_v46, %v5046_v2 }
 0x167   : > { %v5008_v28 = vpop.f32.mrb[45].mxu0 }
 0x168   : > { %v5009_v36 = vadd.f32 %v5008_v28, %v5007_v23  ;;  %v5010_v50 = vpop.f32.mrb[46].mxu0  ;;  %v5047_v29 = vpop.f32.mrb[52].mxu1 }
 0x169   : > { %v5011_v16 = vpop.f32.mrb[47].mxu0  ;;  %v5048_v37 = vpop.f32.mrb[53].mxu1 }
 0x16a   : > { %v5378_v14 = vadd.f32 %v5377_v12, %v5009_v36  ;;  %v5012_v24 = vadd.f32 %v5011_v16, %v5010_v50  ;;  %v5049_v38 = vadd.f32 %v5048_v37, %v5047_v29  ;;  %v5050_v55 = vpop.f32.mrb[54].mxu1 }
 0x16b   : > { %v5051_v20 = vpop.f32.mrb[55].mxu1 }
 0x16c   : > { %v5390_v0 = vadd.f32 %v5389_v27, %v5012_v24  ;;  %v5379_v10 = vadd.f32 %v5378_v14, %v5049_v38  ;;  %v5052_v41 = vadd.f32 %v5051_v20, %v5050_v55 }
 0x16e   : > { %v5013_v40 = vpop.f32.mrb[48].mxu0  ;;  %v5391_v1 = vadd.f32 %v5390_v0, %v5052_v41 }
 0x16f   : > { %v5014_v9 = vpop.f32.mrb[49].mxu0 }
 0x170   : > { %v5015_v42 = vadd.f32 %v5014_v9, %v5013_v40  ;;  %v5016_v21 = vpop.f32.mrb[50].mxu0  ;;  %v5053_v25 = vpop.f32.mrb[56].mxu1 }
 0x171   : > { %v5017_v51 = vpop.f32.mrb[51].mxu0  ;;  %v5054_v53 = vpop.f32.mrb[57].mxu1 }
 0x172   : > { %v5409_v43 = vadd.f32 %v5408_v60, %v5015_v42  ;;  %v5018_v35 = vadd.f32 %v5017_v51, %v5016_v21  ;;  %v5055_v31 = vadd.f32 %v5054_v53, %v5053_v25  ;;  %v5056_v26 = vpop.f32.mrb[58].mxu1 }
 0x173   : > { %v5057_v12 = vpop.f32.mrb[59].mxu1 }
 0x174   : > { %v5423_v58 = vadd.f32 %v5422_v22, %v5018_v35  ;;  %v5410_v27 = vadd.f32 %v5409_v43, %v5055_v31  ;;  %v5058_v54 = vadd.f32 %v5057_v12, %v5056_v26 }
 0x176   : > { %v5019_v63 = vpop.f32.mrb[52].mxu0  ;;  %v5424_v45 = vadd.f32 %v5423_v58, %v5058_v54 }
 0x177   : > { %v5020_v44 = vpop.f32.mrb[53].mxu0 }
 0x178   : > { %v5021_v49 = vadd.f32 %v5020_v44, %v5019_v63  ;;  %v5022_v19 = vpop.f32.mrb[54].mxu0  ;;  %v5059_v47 = vpop.f32.mrb[60].mxu1 }
 0x179   : > { %v5023_v57 = vpop.f32.mrb[55].mxu0  ;;  %v5060_v60 = vpop.f32.mrb[61].mxu1 }
 0x17a   : > { %v5402_v62 = vadd.f32 %v5401_v56, %v5021_v49  ;;  %v5024_v6 = vadd.f32 %v5023_v57, %v5022_v19  ;;  %v5061_v13 = vadd.f32 %v5060_v60, %v5059_v47  ;;  %v5062_v39 = vpop.f32.mrb[62].mxu1 }
 0x17b   : > { %v5063_v5 = vpop.f32.mrb[63].mxu1 }
 0x17c   : > { %v5416_v4 = vadd.f32 %v5415_v48, %v5024_v6  ;;  %v5403_v3 = vadd.f32 %v5402_v62, %v5061_v13  ;;  %v5064_v7 = vadd.f32 %v5063_v5, %v5062_v39 }
 0x17e   : > { %v5081_v22 = vpop.f32.mrb[56].mxu0  ;;  %v5417_v11 = vadd.f32 %v5416_v4, %v5064_v7 }
 0x17f   : > { %v5082_v18 = vpop.f32.mrb[57].mxu0 }
 0x180   : > { %v5083_v17 = vadd.f32 %v5082_v18, %v5081_v22  ;;  %v5084_v30 = vpop.f32.mrb[58].mxu0 }
 0x181   : > { %v5085_v61 = vpop.f32.mrb[59].mxu0 }
 0x182   : > { %v7259_v46 = vadd.f32 %v5385_v32, %v5083_v17  ;;  %v5086_v52 = vadd.f32 %v5085_v61, %v5084_v30 }
 0x184   : > { %v7261_v8 = vadd.f32 %v5397_v59, %v5086_v52  ;;  %v5133_v48 = vpop.f32.mrb[64].mxu1 }
 0x185   : > { %v5134_v15 = vpop.f32.mrb[65].mxu1 }
 0x186   : > { %v5087_v56 = vpop.f32.mrb[60].mxu0  ;;  %v5135_v2 = vadd.f32 %v5134_v15, %v5133_v48  ;;  %v5136_v36 = vpop.f32.mrb[66].mxu1 }
 0x187   : > { %v5088_v33 = vpop.f32.mrb[61].mxu0  ;;  %v5137_v14 = vpop.f32.mrb[67].mxu1 }
 0x188   : > { %v5089_v34 = vadd.f32 %v5088_v33, %v5087_v56  ;;  %v5090_v23 = vpop.f32.mrb[62].mxu0  ;;  %v5138_v24 = vadd.f32 %v5137_v14, %v5136_v36 }
 0x189   : > { %v5091_v28 = vpop.f32.mrb[63].mxu0 }
 0x18a   : > { %v7263_v50 = vadd.f32 %v5379_v10, %v5089_v34  ;;  %v5092_v16 = vadd.f32 %v5091_v28, %v5090_v23 }
 0x18c   : > { %v7265_v29 = vadd.f32 %v5391_v1, %v5092_v16  ;;  %v5139_v55 = vpop.f32.mrb[68].mxu1 }
 0x18d   : > { %v5140_v9 = vpop.f32.mrb[69].mxu1 }
 0x18e   : > { %v5093_v32 = vpop.f32.mrb[64].mxu0  ;;  %v5141_v41 = vadd.f32 %v5140_v9, %v5139_v55  ;;  %v5142_v42 = vpop.f32.mrb[70].mxu1 }
 0x18f   : > { %v5094_v0 = vpop.f32.mrb[65].mxu0  ;;  %v5143_v51 = vpop.f32.mrb[71].mxu1 }
 0x190   : > { %v5095_v59 = vadd.f32 %v5094_v0, %v5093_v32  ;;  %v5096_v37 = vpop.f32.mrb[66].mxu0  ;;  %v5144_v10 = vadd.f32 %v5143_v51, %v5142_v42 }
 0x191   : > { %v5097_v38 = vpop.f32.mrb[67].mxu0 }
 0x192   : > { %v5098_v40 = vadd.f32 %v5097_v38, %v5096_v37  ;;  %v5411_v20 = vadd.f32 %v5410_v27, %v5095_v59 }
 0x194   : > { %v5425_v21 = vadd.f32 %v5424_v45, %v5098_v40 }
 0x196   : > { %v5145_v43 = vpop.f32.mrb[72].mxu1 }
 0x197   : > { %v5146_v35 = vpop.f32.mrb[73].mxu1 }
 0x198   : > { %v5147_v25 = vadd.f32 %v5146_v35, %v5145_v43  ;;  %v5148_v58 = vpop.f32.mrb[74].mxu1  ;;  %v5099_v31 = vpop.f32.mrb[68].mxu0 }
 0x199   : > { %v5149_v1 = vpop.f32.mrb[75].mxu1  ;;  %v5100_v26 = vpop.f32.mrb[69].mxu0 }
 0x19a   : > { %v5150_v53 = vadd.f32 %v5149_v1, %v5148_v58  ;;  %v5101_v63 = vadd.f32 %v5100_v26, %v5099_v31  ;;  %v5102_v12 = vpop.f32.mrb[70].mxu0 }
 0x19b   : > { %v5103_v44 = vpop.f32.mrb[71].mxu0 }
 0x19c   : > { %v5104_v49 = vadd.f32 %v5103_v44, %v5102_v12  ;;  %v5404_v27 = vadd.f32 %v5403_v3, %v5101_v63 }
 0x19e   : > { %v5151_v54 = vpop.f32.mrb[76].mxu1  ;;  %v5418_v45 = vadd.f32 %v5417_v11, %v5104_v49 }
 0x19f   : > { %v5152_v19 = vpop.f32.mrb[77].mxu1 }
 0x1a0   : > { %v5153_v57 = vadd.f32 %v5152_v19, %v5151_v54  ;;  %v5154_v62 = vpop.f32.mrb[78].mxu1 }
 0x1a1   : > { %v5155_v6 = vpop.f32.mrb[79].mxu1 }
 0x1a2   : > { %v5156_v47 = vadd.f32 %v5155_v6, %v5154_v62 }
 0x1a6   : > { %v5173_v4 = vpop.f32.mrb[80].mxu1 }
 0x1a7   : > { %v5174_v60 = vpop.f32.mrb[81].mxu1 }
 0x1a8   : > { %v5175_v13 = vadd.f32 %v5174_v60, %v5173_v4  ;;  %v5176_v39 = vpop.f32.mrb[82].mxu1  ;;  %v5335_v7 = vpop.f32.mrb[36].mxu0 }
 0x1a9   : > { %v5177_v22 = vpop.f32.mrb[83].mxu1  ;;  %v7267_v17 = vadd.f32 %v5404_v27, %v5335_v7  ;;  %v2746_v30 = vpop.f32.mrb[37].mxu0 }
 0x1aa   : > { %v3742_v5 = vadd.f32 %v5175_v13, %v5135_v2  ;;  %v5178_v18 = vadd.f32 %v5177_v22, %v5176_v39  ;;  %v7269_v52 = vadd.f32 %v5411_v20, %v2746_v30  ;;  %v5336_v3 = vpop.f32.mrb[38].mxu0 }
 0x1ab   : > { %v7271_v56 = vadd.f32 %v5418_v45, %v5336_v3  ;;  %v2749_v11 = vpop.f32.mrb[39].mxu0 }
 0x1ac   : > { %v3745_v61 = vadd.f32 %v5178_v18, %v5138_v24  ;;  %v7273_v48 = vadd.f32 %v5425_v21, %v2749_v11 }
 0x1ae   : > { %v5179_v33 = vpop.f32.mrb[84].mxu1 }
 0x1af   : > { %v5180_v34 = vpop.f32.mrb[85].mxu1 }
 0x1b0   : > { %v5181_v23 = vadd.f32 %v5180_v34, %v5179_v33  ;;  %v5182_v15 = vpop.f32.mrb[86].mxu1 }
 0x1b1   : > { %v5183_v28 = vpop.f32.mrb[87].mxu1 }
 0x1b2   : > { %v3750_v2 = vadd.f32 %v5181_v23, %v5141_v41  ;;  %v5184_v36 = vadd.f32 %v5183_v28, %v5182_v15 }
 0x1b4   : > { %v3753_v16 = vadd.f32 %v5184_v36, %v5144_v10 }
 0x1b6   : > { %v5185_v14 = vpop.f32.mrb[88].mxu1 }
 0x1b7   : > { %v5186_v32 = vpop.f32.mrb[89].mxu1 }
 0x1b8   : > { %v5187_v0 = vadd.f32 %v5186_v32, %v5185_v14  ;;  %v5188_v24 = vpop.f32.mrb[90].mxu1 }
 0x1b9   : > { %v5189_v59 = vpop.f32.mrb[91].mxu1 }
 0x1ba   : > { %v3758_v37 = vadd.f32 %v5187_v0, %v5147_v25  ;;  %v5190_v38 = vadd.f32 %v5189_v59, %v5188_v24 }
 0x1bc   : > { %v3761_v55 = vadd.f32 %v5190_v38, %v5150_v53 }
 0x1be   : > { %v5191_v40 = vpop.f32.mrb[92].mxu1 }
 0x1bf   : > { %v5192_v20 = vpop.f32.mrb[93].mxu1 }
 0x1c0   : > { %v5193_v9 = vadd.f32 %v5192_v20, %v5191_v40  ;;  %v5194_v42 = vpop.f32.mrb[94].mxu1  ;;  %v5213_v35 = vpop.f32.mrb[72].mxu0 }
 0x1c1   : > { %v5195_v21 = vpop.f32.mrb[95].mxu1  ;;  %v5214_v41 = vpop.f32.mrb[73].mxu0 }
 0x1c2   : > { %v7275_v51 = vadd.f32 %v5193_v9, %v5153_v57  ;;  %v5196_v43 = vadd.f32 %v5195_v21, %v5194_v42  ;;  %v5215_v10 = vadd.f32 %v5214_v41, %v5213_v35  ;;  %v5216_v1 = vpop.f32.mrb[74].mxu0 }
 0x1c3   : > { %v5217_v31 = vpop.f32.mrb[75].mxu0 }
 0x1c4   : > { %v7277_v58 = vadd.f32 %v5196_v43, %v5156_v47  ;;  %v3807_v63 = vadd.f32 %v5215_v10, %v3742_v5  ;;  %v5218_v25 = vadd.f32 %v5217_v31, %v5216_v1 }
 0x1c6   : > { %v5253_v26 = vpop.f32.mrb[96].mxu1  ;;  %v3810_v54 = vadd.f32 %v5218_v25, %v3745_v61 }
 0x1c7   : > { %v5254_v12 = vpop.f32.mrb[97].mxu1 }
 0x1c8   : > { %v5255_v53 = vadd.f32 %v5254_v12, %v5253_v26  ;;  %v5256_v44 = vpop.f32.mrb[98].mxu1  ;;  %v5219_v57 = vpop.f32.mrb[76].mxu0 }
 0x1c9   : > { %v5257_v49 = vpop.f32.mrb[99].mxu1  ;;  %v5220_v62 = vpop.f32.mrb[77].mxu0 }
 0x1ca   : > { %v3872_v27 = vadd.f32 %v5255_v53, %v3807_v63  ;;  %v5258_v19 = vadd.f32 %v5257_v49, %v5256_v44  ;;  %v5221_v6 = vadd.f32 %v5220_v62, %v5219_v57  ;;  %v5222_v4 = vpop.f32.mrb[78].mxu0 }
 0x1cb   : > { %v5223_v60 = vpop.f32.mrb[79].mxu0 }
 0x1cc   : > { %v3875_v45 = vadd.f32 %v5258_v19, %v3810_v54  ;;  %v5387_v47 = vadd.f32 %v7259_v46, %v3872_v27  ;;  %v3815_v39 = vadd.f32 %v5221_v6, %v3750_v2  ;;  %v5224_v22 = vadd.f32 %v5223_v60, %v5222_v4 }
 0x1ce   : > { %v5259_v13 = vpop.f32.mrb[100].mxu1  ;;  %v7281_v5 = vadd.f32 %v7261_v8, %v3875_v45  ;;  %v3818_v61 = vadd.f32 %v5224_v22, %v3753_v16 }
 0x1cf   : > { %v5260_v18 = vpop.f32.mrb[101].mxu1 }
 0x1d0   : > { %v5261_v7 = vadd.f32 %v5260_v18, %v5259_v13  ;;  %v5262_v30 = vpop.f32.mrb[102].mxu1 }
 0x1d1   : > { %v5263_v3 = vpop.f32.mrb[103].mxu1 }
 0x1d2   : > { %v3880_v11 = vadd.f32 %v5261_v7, %v3815_v39  ;;  %v5264_v33 = vadd.f32 %v5263_v3, %v5262_v30 }
 0x1d4   : > { %v3883_v15 = vadd.f32 %v5264_v33, %v3818_v61  ;;  %v5381_v2 = vadd.f32 %v7263_v50, %v3880_v11 }
 0x1d6   : > { %v5225_v34 = vpop.f32.mrb[80].mxu0  ;;  %v5265_v14 = vpop.f32.mrb[104].mxu1  ;;  %v5393_v0 = vadd.f32 %v7265_v29, %v3883_v15 }
 0x1d7   : > { %v5226_v23 = vpop.f32.mrb[81].mxu0  ;;  %v5266_v24 = vpop.f32.mrb[105].mxu1 }
 0x1d8   : > { %v5227_v46 = vadd.f32 %v5226_v23, %v5225_v34  ;;  %v5228_v28 = vpop.f32.mrb[82].mxu0  ;;  %v5267_v16 = vadd.f32 %v5266_v24, %v5265_v14  ;;  %v5268_v59 = vpop.f32.mrb[106].mxu1 }
 0x1d9   : > { %v5229_v36 = vpop.f32.mrb[83].mxu0  ;;  %v5269_v40 = vpop.f32.mrb[107].mxu1 }
 0x1da   : > { %v3823_v8 = vadd.f32 %v5227_v46, %v3758_v37  ;;  %v5230_v32 = vadd.f32 %v5229_v36, %v5228_v28  ;;  %v5270_v9 = vadd.f32 %v5269_v40, %v5268_v59 }
 0x1dc   : > { %v3826_v38 = vadd.f32 %v5230_v32, %v3761_v55  ;;  %v3888_v20 = vadd.f32 %v5267_v16, %v3823_v8 }
 0x1de   : > { %v5231_v42 = vpop.f32.mrb[84].mxu0  ;;  %v3891_v43 = vadd.f32 %v5270_v9, %v3826_v38  ;;  %v5413_v41 = vadd.f32 %v7269_v52, %v3888_v20  ;;  %v5271_v29 = vpop.f32.mrb[108].mxu1  ;;  %v4770_v52 = vld [vmem:[%s7338_s4] ss:$0 sm:$0xff] }
 0x1df   : > { %v5232_v21 = vpop.f32.mrb[85].mxu0  ;;  %v5272_v31 = vpop.f32.mrb[109].mxu1 }
 0x1e0   : > { %v5233_v50 = vadd.f32 %v5232_v21, %v5231_v42  ;;  %v5234_v35 = vpop.f32.mrb[86].mxu0  ;;  %v5427_v55 = vadd.f32 %v7273_v48, %v3891_v43  ;;  %v5273_v26 = vadd.f32 %v5272_v31, %v5271_v29  ;;  %v5274_v63 = vpop.f32.mrb[110].mxu1 }
 0x1e1   : > { %v5235_v37 = vpop.f32.mrb[87].mxu0  ;;  %v5275_v12 = vpop.f32.mrb[111].mxu1 }
 0x1e2   : > { %v3831_v10 = vadd.f32 %v5233_v50, %v7275_v51  ;;  %v5236_v1 = vadd.f32 %v5235_v37, %v5234_v35  ;;  %v5276_v44 = vadd.f32 %v5275_v12, %v5274_v63 }
 0x1e4   : > { %v3834_v25 = vadd.f32 %v5236_v1, %v7277_v58  ;;  %v3896_v53 = vadd.f32 %v5273_v26, %v3831_v10 }
 0x1e6   : > { %v5355_v54 = vpop.f32.mrb[32].mxu0  ;;  %v3899_v27 = vadd.f32 %v5276_v44, %v3834_v25  ;;  %v5406_v48 = vadd.f32 %v7267_v17, %v3896_v53  ;;  %v5359_v6 = vpop.f32.mrb[112].mxu1 }
 0x1e7   : > { %v5382_v49 = vadd.f32 %v5381_v2, %v5355_v54  ;;  %v3936_v51 = vpop.f32.mrb[33].mxu0  ;;  %v3952_v39 = vpop.f32.mrb[113].mxu1 }
 0x1e8   : > { %v5388_v19 = vadd.f32 %v5387_v47, %v3936_v51  ;;  %v5356_v57 = vpop.f32.mrb[34].mxu0  ;;  %v5420_v60 = vadd.f32 %v7271_v56, %v3899_v27  ;;  %v5407_v47 = vadd.f32 %v5406_v48, %v5359_v6  ;;  %v5414_v7 = vadd.f32 %v5413_v41, %v3952_v39  ;;  %v5360_v30 = vpop.f32.mrb[114].mxu1 }
 0x1e9   : > { %v3984_v62 = vadd.f32 %v5382_v49, %v4770_v52  ;;  %v5394_v45 = vadd.f32 %v5393_v0, %v5356_v57  ;;  %v3939_v58 = vpop.f32.mrb[35].mxu0  ;;  %v3955_v56 = vpop.f32.mrb[115].mxu1 }
 0x1ea   : > { %v3982_v4 = vadd.f32 %v5388_v19, %v4770_v52  ;;  %v5400_v13 = vadd.f32 %v7281_v5, %v3939_v58  ;;  %v3988_v3 = vadd.f32 %v5407_v47, %v4770_v52  ;;  %v5421_v33 = vadd.f32 %v5420_v60, %v5360_v30 }
 0x1eb   : > { %v3992_v17 = vmax.f32 %v3984_v62, 0.0  ;;  %v3985_v22 = vadd.f32 %v5394_v45, %v4770_v52  ;;  %v3986_v5 = vadd.f32 %v5414_v7, %v4770_v52  ;;  %v5428_v23 = vadd.f32 %v5427_v55, %v3955_v56 }
 0x1ec   : > { %v3990_v18 = vmax.f32 %v3982_v4, 0.0  ;;  %v3983_v61 = vadd.f32 %v5400_v13, %v4770_v52  ;;  %v3996_v15 = vmax.f32 %v3988_v3, 0.0  ;;  %v3989_v46 = vadd.f32 %v5421_v33, %v4770_v52 }
 0x1ed   : > { %4001 = vst.msk [vmem:[%s7299_s29 + $0x10] sm:$0xff] %vm3998_vm6, %v3992_v17  ;;  %v3993_v11 = vmax.f32 %v3985_v22, 0.0  ;;  %v3994_v28 = vmax.f32 %v3986_v5, 0.0  ;;  %v3987_v2 = vadd.f32 %v5428_v23, %v4770_v52 }
 0x1ee   : > { %3999 = vst.msk [vmem:[%s7299_s29] sm:$0xff] %vm3998_vm6, %v3990_v18  ;;  %v3991_v34 = vmax.f32 %v3983_v61, 0.0  ;;  %4005 = vst.msk [vmem:[%s7299_s29 + $0x30] sm:$0xff] %vm3998_vm6, %v3996_v15  ;;  %v3997_v36 = vmax.f32 %v3989_v46, 0.0 }
 0x1ef   : > { %4002 = vst.msk [vmem:[%s7299_s29 + $0x18] sm:$0xff] %vm3998_vm6, %v3993_v11  ;;  %4003 = vst.msk [vmem:[%s7299_s29 + $0x20] sm:$0xff] %vm3998_vm6, %v3994_v28  ;;  %v3995_v14 = vmax.f32 %v3987_v2, 0.0 }
 0x1f0   : > { %4000 = vst.msk [vmem:[%s7299_s29 + $0x8] sm:$0xff] %vm3998_vm6, %v3991_v34  ;;  %4006 = vst.msk [vmem:[%s7299_s29 + $0x38] sm:$0xff] %vm3998_vm6, %v3997_v36 }
 0x1f1   : > { %4004 = vst.msk [vmem:[%s7299_s29 + $0x28] sm:$0xff] %vm3998_vm6, %v3995_v14 }
 0x1f2 PF: > { %s15_s22 = sadd.s32 1, %s5766_s22   ;;  %s7345_s18 = smov %s5758_s20 }
 0x1f3   : > { %p12_p10 = scmp.ge.s32.totalorder %s15_s22, 10   ;;  %s7346_s19 = smov %s5762_s21 }
 0x1f4   : > { %s7347_s20 = smov %s7350_s23  ;;  %s7348_s21 = smov %s7354_s24 }
 0x1f5   :  { %14 = sbr.rel (!%p12_p10) target bundleno = 3 (0x3), region = 78 }

</bundles_post_ra>
